<compile_context>
chip_gen: v7x
topology: tpu7x:2x2x1
jax: 0.10.0
libtpu: 0.0.40
codegen_flags: <defaults>
</compile_context>

<pallas_src>
import jax
import jax.numpy as jnp
from jax.experimental import pallas as pl
from jax.experimental.pallas import tpu as pltpu

_TM = 256     # destination-row tile (keep n_pad//_TM >= 2 for v7x's 2 TCs)
_TK = 512     # source-node (reduction) tile — deep K amortizes per-step overhead
_LANE = 128   # lane width / feature padding


def _round_up(v, m):
    return ((v + m - 1) // m) * m


def _pad2(a, rows, cols):
    return jnp.pad(a, ((0, rows - a.shape[0]), (0, cols - a.shape[1])))


# ---------------- Kernel 1: SAGEConv1 (mean aggr) + ReLU ----------------
def sage1_kernel(a_ref, xk_ref, xi_ref, wl_ref, wr_ref, b_ref, h_ref, acc_ref):
    k = pl.program_id(1)

    @pl.when(k == 0)
    def _():
        acc_ref[...] = jnp.zeros_like(acc_ref)

    # agg_i += A[i, k] @ x[k]   (bf16 operands, f32 accumulation on the MXU)
    acc_ref[...] += jnp.dot(a_ref[...], xk_ref[...],
                            preferred_element_type=jnp.float32)

    @pl.when(k == pl.num_programs(1) - 1)
    def _():
        # lin_l(agg) + lin_r(x_i) + b, then ReLU  (no concat -> no (TM,2F) copy)
        agg = acc_ref[...].astype(jnp.bfloat16)
        h = (jnp.dot(agg, wl_ref[...], preferred_element_type=jnp.float32)
             + jnp.dot(xi_ref[...], wr_ref[...], preferred_element_type=jnp.float32)
             + b_ref[...])
        h_ref[...] = jnp.maximum(h, 0.0).astype(h_ref.dtype)


# -------- Kernel 2: SAGEConv2 (mean aggr) + EdgeDecoder (lin-relu-lin) --------
def sage2_decoder_kernel(a_ref, hk_ref, hi_ref, w2l_ref, w2r_ref, b2_ref,
                         wd1_ref, bd1_ref, wd2t_ref, bd2_ref, o_ref, acc_ref):
    k = pl.program_id(1)

    @pl.when(k == 0)
    def _():
        acc_ref[...] = jnp.zeros_like(acc_ref)

    acc_ref[...] += jnp.dot(a_ref[...], hk_ref[...],
                            preferred_element_type=jnp.float32)

    @pl.when(k == pl.num_programs(1) - 1)
    def _():
        agg = acc_ref[...].astype(jnp.bfloat16)
        h2 = (jnp.dot(agg, w2l_ref[...], preferred_element_type=jnp.float32)
              + jnp.dot(hi_ref[...], w2r_ref[...], preferred_element_type=jnp.float32)
              + b2_ref[...])
        # dropout (eval mode) -> identity
        d = jnp.maximum(
            jnp.dot(h2.astype(jnp.bfloat16), wd1_ref[...],
                    preferred_element_type=jnp.float32) + bd1_ref[...], 0.0)
        # Final Linear(lh -> 1) emitted lane-dense: (1, lh) x (TM, lh)^T -> (1, TM)
        row = jnp.einsum('ok,nk->on', wd2t_ref[...], d.astype(jnp.bfloat16),
                         preferred_element_type=jnp.float32) + bd2_ref[0]
        o_ref[...] = row[None]          # (1, 1, TM) lane-dense store, 4 B/node


def graphsage_forward(x, edge_index, params):
    n, f_in = x.shape
    (w1l, b1l, w1r, w2l, b2l, w2r, wd1, bd1, wd2, bd2) = params
    h_dim = w1l.shape[1]
    lh_dim = wd1.shape[1]

    n_pad = _round_up(n, max(_TM, _TK))
    f_pad = _round_up(f_in, _LANE)
    h_pad = _round_up(h_dim, _LANE)
    lh_pad = _round_up(lh_dim, _LANE)

    # --- glue: dense row-normalized (mean) adjacency, cast to bf16 ---
    # (bf16 A + re-cast agg compounds rounding for very high-degree graphs;
    #  acceptable under the loose tolerance used below.)
    src, dst = edge_index[0], edge_index[1]
    A = jnp.zeros((n_pad, n_pad), jnp.float32).at[dst, src].add(1.0)
    A = (A / jnp.maximum(A.sum(axis=1, keepdims=True), 1.0)).astype(jnp.bfloat16)

    xp = _pad2(x, n_pad, f_pad).astype(jnp.bfloat16)

    # Zero-padded bf16 weights (lin_l / lin_r kept separate — no in-kernel concat).
    w1l_p = _pad2(w1l, f_pad, h_pad).astype(jnp.bfloat16)
    w1r_p = _pad2(w1r, f_pad, h_pad).astype(jnp.bfloat16)
    b1_p = _pad2(b1l, 1, h_pad)
    w2l_p = _pad2(w2l, h_pad, h_pad).astype(jnp.bfloat16)
    w2r_p = _pad2(w2r, h_pad, h_pad).astype(jnp.bfloat16)
    b2_p = _pad2(b2l, 1, h_pad)
    wd1_p = _pad2(wd1, h_pad, lh_pad).astype(jnp.bfloat16)
    bd1_p = _pad2(bd1, 1, lh_pad)
    wd2t_p = _pad2(wd2.T, 1, lh_pad).astype(jnp.bfloat16)   # (1, lh_pad) row vector
    bd2_s = bd2.reshape(-1).astype(jnp.float32)             # (1,) scalar -> SMEM

    grid = (n_pad // _TM, n_pad // _TK)
    n_row_tiles = n_pad // _TM
    cparams = pltpu.CompilerParams(
        dimension_semantics=("parallel", "arbitrary"))

    ce1 = pl.CostEstimate(
        flops=2 * n_pad * n_pad * f_pad + 4 * n_pad * f_pad * h_pad,
        transcendentals=0,
        bytes_accessed=(n_pad * n_pad * 2 + 2 * n_pad * f_pad * 2
                        + 2 * f_pad * h_pad * 2 + n_pad * h_pad * 2))
    ce2 = pl.CostEstimate(
        flops=(2 * n_pad * n_pad * h_pad + 4 * n_pad * h_pad * h_pad
               + 2 * n_pad * h_pad * lh_pad + 2 * n_pad * lh_pad),
        transcendentals=0,
        bytes_accessed=(n_pad * n_pad * 2 + 2 * n_pad * h_pad * 2
                        + (2 * h_pad * h_pad + h_pad * lh_pad + lh_pad) * 2
                        + n_pad * 4))

    # ---- layer 1: h = relu(SAGEConv1(x)) ----
    h = pl.pallas_call(
        sage1_kernel,
        out_shape=jax.ShapeDtypeStruct((n_pad, h_pad), jnp.bfloat16),
        grid_spec=pltpu.PrefetchScalarGridSpec(
            num_scalar_prefetch=0,
            grid=grid,
            in_specs=[
                pl.BlockSpec((_TM, _TK), lambda i, k: (i, k)),       # A tile
                pl.BlockSpec((_TK, f_pad), lambda i, k: (k, 0)),     # x (neighbours)
                pl.BlockSpec((_TM, f_pad), lambda i, k: (i, 0)),     # x (self)
                pl.BlockSpec((f_pad, h_pad), lambda i, k: (0, 0)),   # Wl
                pl.BlockSpec((f_pad, h_pad), lambda i, k: (0, 0)),   # Wr
                pl.BlockSpec((1, h_pad), lambda i, k: (0, 0)),       # bias
            ],
            out_specs=pl.BlockSpec((_TM, h_pad), lambda i, k: (i, 0)),
            scratch_shapes=[pltpu.VMEM((_TM, f_pad), jnp.float32)],
        ),
        compiler_params=cparams,
        cost_estimate=ce1,
    )(A, xp, xp, w1l_p, w1r_p, b1_p)

    # ---- layer 2 + decoder: out = lin2(relu(lin1(SAGEConv2(h)))) ----
    out3d = pl.pallas_call(
        sage2_decoder_kernel,
        out_shape=jax.ShapeDtypeStruct((n_row_tiles, 1, _TM), jnp.float32),
        grid_spec=pltpu.PrefetchScalarGridSpec(
            num_scalar_prefetch=0,
            grid=grid,
            in_specs=[
                pl.BlockSpec((_TM, _TK), lambda i, k: (i, k)),        # A tile
                pl.BlockSpec((_TK, h_pad), lambda i, k: (k, 0)),      # h (neighbours)
                pl.BlockSpec((_TM, h_pad), lambda i, k: (i, 0)),      # h (self)
                pl.BlockSpec((h_pad, h_pad), lambda i, k: (0, 0)),    # Wl
                pl.BlockSpec((h_pad, h_pad), lambda i, k: (0, 0)),    # Wr
                pl.BlockSpec((1, h_pad), lambda i, k: (0, 0)),        # bias
                pl.BlockSpec((h_pad, lh_pad), lambda i, k: (0, 0)),   # dec lin1 W
                pl.BlockSpec((1, lh_pad), lambda i, k: (0, 0)),       # dec lin1 b
                pl.BlockSpec((1, lh_pad), lambda i, k: (0, 0)),       # dec lin2 W^T
                pl.BlockSpec(memory_space=pltpu.MemorySpace.SMEM),    # dec lin2 b
            ],
            out_specs=pl.BlockSpec((1, 1, _TM), lambda i, k: (i, 0, 0)),
            scratch_shapes=[pltpu.VMEM((_TM, h_pad), jnp.float32)],
        ),
        compiler_params=cparams,
        cost_estimate=ce2,
    )(A, h, h, w2l_p, w2r_p, b2_p, wd1_p, bd1_p, wd2t_p, bd2_s)

    return out3d.reshape(-1)[:n]   # .view(-1)


def reference_forward(x, edge_index, params):
    """Pure-JAX f32 reference (same eval-mode semantics)."""
    n = x.shape[0]
    src, dst = edge_index[0], edge_index[1]
    A = jnp.zeros((n, n), jnp.float32).at[dst, src].add(1.0)
    A = A / jnp.maximum(A.sum(axis=1, keepdims=True), 1.0)
    (w1l, b1l, w1r, w2l, b2l, w2r, wd1, bd1, wd2, bd2) = params
    h = jnp.maximum(A @ x @ w1l + b1l + x @ w1r, 0.0)
    h2 = A @ h @ w2l + b2l + h @ w2r
    d = jnp.maximum(h2 @ wd1 + bd1, 0.0)
    return (d @ wd2 + bd2).reshape(-1)


def init_params(key, in_features, sage_hidden, linear_hidden):
    """Deterministic uniform init (PyTorch-style bounds), weights as [in, out]."""
    keys = jax.random.split(key, 10)

    def lin_w(k, fan_in, fan_out):
        bound = 1.0 / jnp.sqrt(jnp.float32(fan_in))
        return jax.random.uniform(k, (fan_in, fan_out), jnp.float32, -bound, bound)

    def lin_b(k, fan_in, fan_out):
        bound = 1.0 / jnp.sqrt(jnp.float32(fan_in))
        return jax.random.uniform(k, (1, fan_out), jnp.float32, -bound, bound)

    # SAGEConv1: lin_l (with bias), lin_r (no bias)
    w1l = lin_w(keys[0], in_features, sage_hidden)
    b1l = lin_b(keys[1], in_features, sage_hidden)
    w1r = lin_w(keys[2], in_features, sage_hidden)
    # SAGEConv2
    w2l = lin_w(keys[3], sage_hidden, sage_hidden)
    b2l = lin_b(keys[4], sage_hidden, sage_hidden)
    w2r = lin_w(keys[5], sage_hidden, sage_hidden)
    # EdgeDecoder
    wd1 = lin_w(keys[6], sage_hidden, linear_hidden)
    bd1 = lin_b(keys[7], sage_hidden, linear_hidden)
    wd2 = lin_w(keys[8], linear_hidden, 1)
    bd2 = lin_b(keys[9], linear_hidden, 1)
    return (w1l, b1l, w1r, w2l, b2l, w2r, wd1, bd1, wd2, bd2)


if __name__ == "__main__":
    # N=600 pads to 1024 -> grid (4, 2): row axis has >=2 tiles (megacore) and
    # the K-reduction / accumulator path is exercised.
    N = 600
    F_IN = 16
    SAGE_HIDDEN = 32
    LINEAR_HIDDEN = 64
    E = 2400

    key = jax.random.PRNGKey(0)
    k_x, k_e, k_p = jax.random.split(key, 3)

    x = jax.random.normal(k_x, (N, F_IN), jnp.float32)
    edge_index = jax.random.randint(k_e, (2, E), 0, N, jnp.int32)
    params = init_params(k_p, F_IN, SAGE_HIDDEN, LINEAR_HIDDEN)

    out = jax.jit(graphsage_forward)(x, edge_index, params)
    jax.block_until_ready(out)
    assert out.shape == (N,), out.shape

    # Loose check vs f32 reference (bf16 operands -> ~1e-2 relative error).
    ref = reference_forward(x, edge_index, params)
    rel_err = float(jnp.max(jnp.abs(out - ref)) / (jnp.max(jnp.abs(ref)) + 1e-6))
    assert rel_err < 0.08, f"mismatch vs reference: rel err {rel_err}"

    print("KERNEL_OK")
</pallas_src>

<mosaic_0001>
module attributes {stable_mosaic.version = 11 : i64} {
  func.func private @main(%arg0: i32) attributes {dimension_semantics = [#tpu.dimension_semantics<core_parallel>], iteration_bounds = array<i64: 2>, tpu.core_type = #tpu.core_type<sc_scalar_subcore>, window_params = []} {
    return
  }
}

module attributes {stable_mosaic.version = 11 : i64} {
  func.func private @main(%arg0: i32) attributes {dimension_semantics = [#tpu.dimension_semantics<core_parallel>], iteration_bounds = array<i64: 2>, tpu.core_type = #tpu.core_type<sc_scalar_subcore>, window_params = []} {
    return
  }
}

module attributes {stable_mosaic.version = 11 : i64} {
  func.func @sage1_kernel(%arg0: i32, %arg1: i32, %arg2: memref<256x512xbf16, #tpu.memory_space<vmem>>, %arg3: memref<512x128xbf16, #tpu.memory_space<vmem>>, %arg4: memref<256x128xbf16, #tpu.memory_space<vmem>>, %arg5: memref<128x128xbf16, #tpu.memory_space<vmem>>, %arg6: memref<128x128xbf16, #tpu.memory_space<vmem>>, %arg7: memref<1x128xf32, #tpu.memory_space<vmem>>, %arg8: memref<256x128xbf16, #tpu.memory_space<vmem>>, %arg9: memref<256x128xf32, #tpu.memory_space<vmem>>) attributes {dimension_semantics = [#tpu.dimension_semantics<parallel>, #tpu.dimension_semantics<arbitrary>], iteration_bounds = array<i64: 4, 2>, scalar_prefetch = 0 : i64, scratch_operands = 1 : i64, tpu.core_type = #tpu.core_type<tc>, window_params = [{transform_indices = @transform_0, window_bounds = array<i64: 256, 512>}, {transform_indices = @transform_1, window_bounds = array<i64: 512, 128>}, {transform_indices = @transform_2, window_bounds = array<i64: 256, 128>}, {pipeline_mode = #tpu.pipeline_mode<synchronous>, transform_indices = @transform_3, window_bounds = array<i64: 128, 128>}, {pipeline_mode = #tpu.pipeline_mode<synchronous>, transform_indices = @transform_4, window_bounds = array<i64: 128, 128>}, {pipeline_mode = #tpu.pipeline_mode<synchronous>, transform_indices = @transform_5, window_bounds = array<i64: 1, 128>}, {transform_indices = @transform_6, window_bounds = array<i64: 256, 128>}]} {
    %c0_i32 = arith.constant 0 : i32
    %0 = arith.cmpi eq, %arg1, %c0_i32 : i32
    %1 = arith.extui %0 : i1 to i32
    %c0_i32_0 = arith.constant 0 : i32
    %2 = arith.cmpi ne, %1, %c0_i32_0 : i32
    scf.if %2 {
      %cst_9 = arith.constant 0.000000e+00 : f32
      %12 = vector.broadcast %cst_9 : f32 to vector<256x128xf32>
      %c0_10 = arith.constant 0 : index
      %c0_11 = arith.constant 0 : index
      %13 = vector.load %arg9[%c0_10, %c0_11] : memref<256x128xf32, #tpu.memory_space<vmem>>, vector<256x128xf32>
      tpu.vector_store %arg9[%c0_10, %c0_11], %12 {strides = array<i32>} : memref<256x128xf32, #tpu.memory_space<vmem>>, vector<256x128xf32>,
    } else {
    }
    %c0 = arith.constant 0 : index
    %c0_1 = arith.constant 0 : index
    %3 = vector.load %arg9[%c0, %c0_1] : memref<256x128xf32, #tpu.memory_space<vmem>>, vector<256x128xf32>
    %c0_2 = arith.constant 0 : index
    %c0_3 = arith.constant 0 : index
    %4 = vector.load %arg2[%c0_2, %c0_3] : memref<256x512xbf16, #tpu.memory_space<vmem>>, vector<256x512xbf16>
    %c0_4 = arith.constant 0 : index
    %c0_5 = arith.constant 0 : index
    %5 = vector.load %arg3[%c0_4, %c0_5] : memref<512x128xbf16, #tpu.memory_space<vmem>>, vector<512x128xbf16>
    %cst = arith.constant dense<0.000000e+00> : vector<256x128xf32>
    %6 = tpu.matmul %4, %5, %cst {dimension_numbers = #tpu.dot_dimension_numbers<[1], [0], [0], [1], [0, 0, 1, 1], [], []>} : vector<256x512xbf16>, vector<512x128xbf16>, vector<256x128xf32> -> vector<256x128xf32>
    %7 = arith.addf %3, %6 : vector<256x128xf32>
    %c0_6 = arith.constant 0 : index
    %c0_7 = arith.constant 0 : index
    %8 = vector.load %arg9[%c0_6, %c0_7] : memref<256x128xf32, #tpu.memory_space<vmem>>, vector<256x128xf32>
    tpu.vector_store %arg9[%c0_6, %c0_7], %7 {strides = array<i32>} : memref<256x128xf32, #tpu.memory_space<vmem>>, vector<256x128xf32>,
    %c1_i32 = arith.constant 1 : i32
    %9 = arith.cmpi eq, %arg1, %c1_i32 : i32
    %10 = arith.extui %9 : i1 to i32
    %c0_i32_8 = arith.constant 0 : i32
    %11 = arith.cmpi ne, %10, %c0_i32_8 : i32
    scf.if %11 {
      %c0_9 = arith.constant 0 : index
      %c0_10 = arith.constant 0 : index
      %12 = vector.load %arg9[%c0_9, %c0_10] : memref<256x128xf32, #tpu.memory_space<vmem>>, vector<256x128xf32>
      %13 = arith.truncf %12 : vector<256x128xf32> to vector<256x128xbf16>
      %c0_11 = arith.constant 0 : index
      %c0_12 = arith.constant 0 : index
      %14 = vector.load %arg5[%c0_11, %c0_12] : memref<128x128xbf16, #tpu.memory_space<vmem>>, vector<128x128xbf16>
      %cst_13 = arith.constant dense<0.000000e+00> : vector<256x128xf32>
      %15 = tpu.matmul %13, %14, %cst_13 {dimension_numbers = #tpu.dot_dimension_numbers<[1], [0], [0], [1], [0, 0, 1, 1], [], []>} : vector<256x128xbf16>, vector<128x128xbf16>, vector<256x128xf32> -> vector<256x128xf32>
      %c0_14 = arith.constant 0 : index
      %c0_15 = arith.constant 0 : index
      %16 = vector.load %arg4[%c0_14, %c0_15] : memref<256x128xbf16, #tpu.memory_space<vmem>>, vector<256x128xbf16>
      %c0_16 = arith.constant 0 : index
      %c0_17 = arith.constant 0 : index
      %17 = vector.load %arg6[%c0_16, %c0_17] : memref<128x128xbf16, #tpu.memory_space<vmem>>, vector<128x128xbf16>
      %cst_18 = arith.constant dense<0.000000e+00> : vector<256x128xf32>
      %18 = tpu.matmul %16, %17, %cst_18 {dimension_numbers = #tpu.dot_dimension_numbers<[1], [0], [0], [1], [0, 0, 1, 1], [], []>} : vector<256x128xbf16>, vector<128x128xbf16>, vector<256x128xf32> -> vector<256x128xf32>
      %19 = arith.addf %15, %18 : vector<256x128xf32>
      %c0_19 = arith.constant 0 : index
      %c0_20 = arith.constant 0 : index
      %20 = vector.load %arg7[%c0_19, %c0_20] : memref<1x128xf32, #tpu.memory_space<vmem>>, vector<1x128xf32>
      %21 = vector.broadcast %20 : vector<1x128xf32> to vector<256x128xf32>
      %22 = arith.addf %19, %21 : vector<256x128xf32>
      %cst_21 = arith.constant 0.000000e+00 : f32
      %23 = vector.broadcast %cst_21 : f32 to vector<256x128xf32>
      %24 = arith.maximumf %22, %23 : vector<256x128xf32>
      %25 = arith.truncf %24 : vector<256x128xf32> to vector<256x128xbf16>
      %c0_22 = arith.constant 0 : index
      %c0_23 = arith.constant 0 : index
      %26 = vector.load %arg8[%c0_22, %c0_23] : memref<256x128xbf16, #tpu.memory_space<vmem>>, vector<256x128xbf16>
      tpu.vector_store %arg8[%c0_22, %c0_23], %25 {strides = array<i32>} : memref<256x128xbf16, #tpu.memory_space<vmem>>, vector<256x128xbf16>,
    } else {
    }
    return
  }
  func.func @transform_0(%arg0: i32, %arg1: i32) -> (i32, i32) {
    %c0_i32 = arith.constant 0 : i32
    return %arg0, %arg1 : i32, i32
  }
  func.func @transform_1(%arg0: i32, %arg1: i32) -> (i32, i32) {
    %c0_i32 = arith.constant 0 : i32
    %c0_i32_0 = arith.constant 0 : i32
    return %arg1, %c0_i32 : i32, i32
  }
  func.func @transform_2(%arg0: i32, %arg1: i32) -> (i32, i32) {
    %c0_i32 = arith.constant 0 : i32
    %c0_i32_0 = arith.constant 0 : i32
    return %arg0, %c0_i32 : i32, i32
  }
  func.func @transform_3(%arg0: i32, %arg1: i32) -> (i32, i32) {
    %c0_i32 = arith.constant 0 : i32
    %c0_i32_0 = arith.constant 0 : i32
    %c0_i32_1 = arith.constant 0 : i32
    return %c0_i32, %c0_i32_0 : i32, i32
  }
  func.func @transform_4(%arg0: i32, %arg1: i32) -> (i32, i32) {
    %c0_i32 = arith.constant 0 : i32
    %c0_i32_0 = arith.constant 0 : i32
    %c0_i32_1 = arith.constant 0 : i32
    return %c0_i32, %c0_i32_0 : i32, i32
  }
  func.func @transform_5(%arg0: i32, %arg1: i32) -> (i32, i32) {
    %c0_i32 = arith.constant 0 : i32
    %c0_i32_0 = arith.constant 0 : i32
    %c0_i32_1 = arith.constant 0 : i32
    return %c0_i32, %c0_i32_0 : i32, i32
  }
  func.func @transform_6(%arg0: i32, %arg1: i32) -> (i32, i32) {
    %c0_i32 = arith.constant 0 : i32
    %c0_i32_0 = arith.constant 0 : i32
    return %arg0, %c0_i32 : i32, i32
  }
}

module attributes {stable_mosaic.version = 11 : i64} {
  func.func @sage2_decoder_kernel(%arg0: i32, %arg1: i32, %arg2: memref<256x512xbf16, #tpu.memory_space<vmem>>, %arg3: memref<512x128xbf16, #tpu.memory_space<vmem>>, %arg4: memref<256x128xbf16, #tpu.memory_space<vmem>>, %arg5: memref<128x128xbf16, #tpu.memory_space<vmem>>, %arg6: memref<128x128xbf16, #tpu.memory_space<vmem>>, %arg7: memref<1x128xf32, #tpu.memory_space<vmem>>, %arg8: memref<128x128xbf16, #tpu.memory_space<vmem>>, %arg9: memref<1x128xf32, #tpu.memory_space<vmem>>, %arg10: memref<1x128xbf16, #tpu.memory_space<vmem>>, %arg11: memref<1xf32, #tpu.memory_space<smem>>, %arg12: memref<1x1x256xf32, #tpu.memory_space<vmem>>, %arg13: memref<256x128xf32, #tpu.memory_space<vmem>>) attributes {dimension_semantics = [#tpu.dimension_semantics<parallel>, #tpu.dimension_semantics<arbitrary>], iteration_bounds = array<i64: 4, 2>, scalar_prefetch = 0 : i64, scratch_operands = 1 : i64, tpu.core_type = #tpu.core_type<tc>, window_params = [{transform_indices = @transform_0, window_bounds = array<i64: 256, 512>}, {transform_indices = @transform_1, window_bounds = array<i64: 512, 128>}, {transform_indices = @transform_2, window_bounds = array<i64: 256, 128>}, {pipeline_mode = #tpu.pipeline_mode<synchronous>, transform_indices = @transform_3, window_bounds = array<i64: 128, 128>}, {pipeline_mode = #tpu.pipeline_mode<synchronous>, transform_indices = @transform_4, window_bounds = array<i64: 128, 128>}, {pipeline_mode = #tpu.pipeline_mode<synchronous>, transform_indices = @transform_5, window_bounds = array<i64: 1, 128>}, {pipeline_mode = #tpu.pipeline_mode<synchronous>, transform_indices = @transform_6, window_bounds = array<i64: 128, 128>}, {pipeline_mode = #tpu.pipeline_mode<synchronous>, transform_indices = @transform_7, window_bounds = array<i64: 1, 128>}, {pipeline_mode = #tpu.pipeline_mode<synchronous>, transform_indices = @transform_8, window_bounds = array<i64: 1, 128>}, {transform_indices = @transform_9, window_bounds = array<i64: 1>}, {transform_indices = @transform_10, window_bounds = array<i64: 1, 1, 256>}]} {
    %c0_i32 = arith.constant 0 : i32
    %0 = arith.cmpi eq, %arg1, %c0_i32 : i32
    %1 = arith.extui %0 : i1 to i32
    %c0_i32_0 = arith.constant 0 : i32
    %2 = arith.cmpi ne, %1, %c0_i32_0 : i32
    scf.if %2 {
      %cst_9 = arith.constant 0.000000e+00 : f32
      %12 = vector.broadcast %cst_9 : f32 to vector<256x128xf32>
      %c0_10 = arith.constant 0 : index
      %c0_11 = arith.constant 0 : index
      %13 = vector.load %arg13[%c0_10, %c0_11] : memref<256x128xf32, #tpu.memory_space<vmem>>, vector<256x128xf32>
      tpu.vector_store %arg13[%c0_10, %c0_11], %12 {strides = array<i32>} : memref<256x128xf32, #tpu.memory_space<vmem>>, vector<256x128xf32>,
    } else {
    }
    %c0 = arith.constant 0 : index
    %c0_1 = arith.constant 0 : index
    %3 = vector.load %arg13[%c0, %c0_1] : memref<256x128xf32, #tpu.memory_space<vmem>>, vector<256x128xf32>
    %c0_2 = arith.constant 0 : index
    %c0_3 = arith.constant 0 : index
    %4 = vector.load %arg2[%c0_2, %c0_3] : memref<256x512xbf16, #tpu.memory_space<vmem>>, vector<256x512xbf16>
    %c0_4 = arith.constant 0 : index
    %c0_5 = arith.constant 0 : index
    %5 = vector.load %arg3[%c0_4, %c0_5] : memref<512x128xbf16, #tpu.memory_space<vmem>>, vector<512x128xbf16>
    %cst = arith.constant dense<0.000000e+00> : vector<256x128xf32>
    %6 = tpu.matmul %4, %5, %cst {dimension_numbers = #tpu.dot_dimension_numbers<[1], [0], [0], [1], [0, 0, 1, 1], [], []>} : vector<256x512xbf16>, vector<512x128xbf16>, vector<256x128xf32> -> vector<256x128xf32>
    %7 = arith.addf %3, %6 : vector<256x128xf32>
    %c0_6 = arith.constant 0 : index
    %c0_7 = arith.constant 0 : index
    %8 = vector.load %arg13[%c0_6, %c0_7] : memref<256x128xf32, #tpu.memory_space<vmem>>, vector<256x128xf32>
    tpu.vector_store %arg13[%c0_6, %c0_7], %7 {strides = array<i32>} : memref<256x128xf32, #tpu.memory_space<vmem>>, vector<256x128xf32>,
    %c1_i32 = arith.constant 1 : i32
    %9 = arith.cmpi eq, %arg1, %c1_i32 : i32
    %10 = arith.extui %9 : i1 to i32
    %c0_i32_8 = arith.constant 0 : i32
    %11 = arith.cmpi ne, %10, %c0_i32_8 : i32
    scf.if %11 {
      %c0_9 = arith.constant 0 : index
      %c0_10 = arith.constant 0 : index
      %12 = vector.load %arg13[%c0_9, %c0_10] : memref<256x128xf32, #tpu.memory_space<vmem>>, vector<256x128xf32>
      %13 = arith.truncf %12 : vector<256x128xf32> to vector<256x128xbf16>
      %c0_11 = arith.constant 0 : index
      %c0_12 = arith.constant 0 : index
      %14 = vector.load %arg5[%c0_11, %c0_12] : memref<128x128xbf16, #tpu.memory_space<vmem>>, vector<128x128xbf16>
      %cst_13 = arith.constant dense<0.000000e+00> : vector<256x128xf32>
      %15 = tpu.matmul %13, %14, %cst_13 {dimension_numbers = #tpu.dot_dimension_numbers<[1], [0], [0], [1], [0, 0, 1, 1], [], []>} : vector<256x128xbf16>, vector<128x128xbf16>, vector<256x128xf32> -> vector<256x128xf32>
      %c0_14 = arith.constant 0 : index
      %c0_15 = arith.constant 0 : index
      %16 = vector.load %arg4[%c0_14, %c0_15] : memref<256x128xbf16, #tpu.memory_space<vmem>>, vector<256x128xbf16>
      %c0_16 = arith.constant 0 : index
      %c0_17 = arith.constant 0 : index
      %17 = vector.load %arg6[%c0_16, %c0_17] : memref<128x128xbf16, #tpu.memory_space<vmem>>, vector<128x128xbf16>
      %cst_18 = arith.constant dense<0.000000e+00> : vector<256x128xf32>
      %18 = tpu.matmul %16, %17, %cst_18 {dimension_numbers = #tpu.dot_dimension_numbers<[1], [0], [0], [1], [0, 0, 1, 1], [], []>} : vector<256x128xbf16>, vector<128x128xbf16>, vector<256x128xf32> -> vector<256x128xf32>
      %19 = arith.addf %15, %18 : vector<256x128xf32>
      %c0_19 = arith.constant 0 : index
      %c0_20 = arith.constant 0 : index
      %20 = vector.load %arg7[%c0_19, %c0_20] : memref<1x128xf32, #tpu.memory_space<vmem>>, vector<1x128xf32>
      %21 = vector.broadcast %20 : vector<1x128xf32> to vector<256x128xf32>
      %22 = arith.addf %19, %21 : vector<256x128xf32>
      %23 = arith.truncf %22 : vector<256x128xf32> to vector<256x128xbf16>
      %c0_21 = arith.constant 0 : index
      %c0_22 = arith.constant 0 : index
      %24 = vector.load %arg8[%c0_21, %c0_22] : memref<128x128xbf16, #tpu.memory_space<vmem>>, vector<128x128xbf16>
      %cst_23 = arith.constant dense<0.000000e+00> : vector<256x128xf32>
      %25 = tpu.matmul %23, %24, %cst_23 {dimension_numbers = #tpu.dot_dimension_numbers<[1], [0], [0], [1], [0, 0, 1, 1], [], []>} : vector<256x128xbf16>, vector<128x128xbf16>, vector<256x128xf32> -> vector<256x128xf32>
      %c0_24 = arith.constant 0 : index
      %c0_25 = arith.constant 0 : index
      %26 = vector.load %arg9[%c0_24, %c0_25] : memref<1x128xf32, #tpu.memory_space<vmem>>, vector<1x128xf32>
      %27 = vector.broadcast %26 : vector<1x128xf32> to vector<256x128xf32>
      %28 = arith.addf %25, %27 : vector<256x128xf32>
      %cst_26 = arith.constant 0.000000e+00 : f32
      %29 = vector.broadcast %cst_26 : f32 to vector<256x128xf32>
      %30 = arith.maximumf %28, %29 : vector<256x128xf32>
      %c0_27 = arith.constant 0 : index
      %c0_28 = arith.constant 0 : index
      %31 = vector.load %arg10[%c0_27, %c0_28] : memref<1x128xbf16, #tpu.memory_space<vmem>>, vector<1x128xbf16>
      %32 = arith.truncf %30 : vector<256x128xf32> to vector<256x128xbf16>
      "tpu.trace_start"() <{level = 10 : i32, message = "ok,nk->on"}> : () -> ()
      %cst_29 = arith.constant dense<0.000000e+00> : vector<1x256xf32>
      %33 = tpu.matmul %31, %32, %cst_29 {dimension_numbers = #tpu.dot_dimension_numbers<[1], [1], [0], [0], [0, 0, 1, 0], [], []>} : vector<1x128xbf16>, vector<256x128xbf16>, vector<1x256xf32> -> vector<1x256xf32>
      "tpu.trace_stop"() : () -> ()
      %c0_30 = arith.constant 0 : index
      %34 = memref.load %arg11[%c0_30] : memref<1xf32, #tpu.memory_space<smem>>
      %35 = vector.broadcast %34 : f32 to vector<1x256xf32>
      %36 = arith.addf %33, %35 : vector<1x256xf32>
      %37 = vector.shape_cast %36 : vector<1x256xf32> to vector<1x1x256xf32>
      %c0_31 = arith.constant 0 : index
      %c0_32 = arith.constant 0 : index
      %c0_33 = arith.constant 0 : index
      %38 = vector.load %arg12[%c0_31, %c0_32, %c0_33] : memref<1x1x256xf32, #tpu.memory_space<vmem>>, vector<1x1x256xf32>
      tpu.vector_store %arg12[%c0_31, %c0_32, %c0_33], %37 {strides = array<i32>} : memref<1x1x256xf32, #tpu.memory_space<vmem>>, vector<1x1x256xf32>,
    } else {
    }
    return
  }
  func.func @transform_0(%arg0: i32, %arg1: i32) -> (i32, i32) {
    %c0_i32 = arith.constant 0 : i32
    return %arg0, %arg1 : i32, i32
  }
  func.func @transform_1(%arg0: i32, %arg1: i32) -> (i32, i32) {
    %c0_i32 = arith.constant 0 : i32
    %c0_i32_0 = arith.constant 0 : i32
    return %arg1, %c0_i32 : i32, i32
  }
  func.func @transform_2(%arg0: i32, %arg1: i32) -> (i32, i32) {
    %c0_i32 = arith.constant 0 : i32
    %c0_i32_0 = arith.constant 0 : i32
    return %arg0, %c0_i32 : i32, i32
  }
  func.func @transform_3(%arg0: i32, %arg1: i32) -> (i32, i32) {
    %c0_i32 = arith.constant 0 : i32
    %c0_i32_0 = arith.constant 0 : i32
    %c0_i32_1 = arith.constant 0 : i32
    return %c0_i32, %c0_i32_0 : i32, i32
  }
  func.func @transform_4(%arg0: i32, %arg1: i32) -> (i32, i32) {
    %c0_i32 = arith.constant 0 : i32
    %c0_i32_0 = arith.constant 0 : i32
    %c0_i32_1 = arith.constant 0 : i32
    return %c0_i32, %c0_i32_0 : i32, i32
  }
  func.func @transform_5(%arg0: i32, %arg1: i32) -> (i32, i32) {
    %c0_i32 = arith.constant 0 : i32
    %c0_i32_0 = arith.constant 0 : i32
    %c0_i32_1 = arith.constant 0 : i32
    return %c0_i32, %c0_i32_0 : i32, i32
  }
  func.func @transform_6(%arg0: i32, %arg1: i32) -> (i32, i32) {
    %c0_i32 = arith.constant 0 : i32
    %c0_i32_0 = arith.constant 0 : i32
    %c0_i32_1 = arith.constant 0 : i32
    return %c0_i32, %c0_i32_0 : i32, i32
  }
  func.func @transform_7(%arg0: i32, %arg1: i32) -> (i32, i32) {
    %c0_i32 = arith.constant 0 : i32
    %c0_i32_0 = arith.constant 0 : i32
    %c0_i32_1 = arith.constant 0 : i32
    return %c0_i32, %c0_i32_0 : i32, i32
  }
  func.func @transform_8(%arg0: i32, %arg1: i32) -> (i32, i32) {
    %c0_i32 = arith.constant 0 : i32
    %c0_i32_0 = arith.constant 0 : i32
    %c0_i32_1 = arith.constant 0 : i32
    return %c0_i32, %c0_i32_0 : i32, i32
  }
  func.func @transform_9(%arg0: i32, %arg1: i32) -> i32 {
    %c0_i32 = arith.constant 0 : i32
    %c0_i32_0 = arith.constant 0 : i32
    return %c0_i32 : i32
  }
  func.func @transform_10(%arg0: i32, %arg1: i32) -> (i32, i32, i32) {
    %c0_i32 = arith.constant 0 : i32
    %c0_i32_0 = arith.constant 0 : i32
    %c0_i32_1 = arith.constant 0 : i32
    return %arg0, %c0_i32, %c0_i32_0 : i32, i32, i32
  }
}

</mosaic_0001>

<bundles_post_ra>
// kernel: graphsage_forward.2
= control target key start
LH: loop header
LB: loop body
LE: loop exit
PB: predicated region body
PF: predicated region fallthrough
CT: control target
= control target key end

     0   :  { %s3538_s21 = smov 0   ;;  %s3540_s22 = smov 0   ;;  %s3988_s0 = inlined_call_operand.vmem [shape: bf16[1024,1024], index: 0, kind: input, shape index: {}]   ;;  %s3989_s1 = inlined_call_operand.vmem [shape: bf16[1024,128], index: 1, kind: input, shape index: {}, may-alias: {1,2}]   ;;  %s3990_s2 = inlined_call_operand.vmem [shape: bf16[1024,128], index: 2, kind: input, shape index: {}, may-alias: {1,2}]   ;;  %s3991_s3 = inlined_call_operand.vmem [shape: bf16[128,128], index: 3, kind: input, shape index: {}]   ;;  %s3992_s4 = inlined_call_operand.vmem [shape: bf16[128,128], index: 4, kind: input, shape index: {}]   ;;  %s3993_s5 = inlined_call_operand.vmem [shape: f32[1,128], index: 5, kind: input, shape index: {}]   ;;  %s3994_s6 = inlined_call_operand.vmem [shape: bf16[1024,128], index: 6, kind: output, shape index: {}]  }
   0x1   :  { %s3542_s23 = smov 0   ;;  %s3544_s24 = smov 0  }
   0x2   :  { %s3546_s25 = smov 0   ;;  %s3548_s26 = smov 0  }
   0x3   :  { %s3550_s27 = smov 0  }
   0x4 LB: > { %s25_s28 = sadd.s32 1, %s3492_s25  ;;  %s28_s29 = sadd.s32 1, %s3496_s26  ;;  %s3500_s27 = sphi %s3550_s27, %s16_s27   ;;  %s3496_s26 = sphi %s3548_s26, %s4000_s26   ;;  %s3492_s25 = sphi %s3546_s25, %s3999_s25   ;;  %s3488_s24 = sphi %s3544_s24, %s3998_s24   ;;  %s3484_s23 = sphi %s3542_s23, %s3997_s23   ;;  %s3480_s22 = sphi %s3540_s22, %s3996_s22   ;;  %s3476_s21 = sphi %s3538_s21, %s3995_s21  }
   0x5   : > { %p26_p0 = scmp.ge.s32.totalorder %s25_s28, 2  ;;  %p44_p1 = scmp.ne.s32.totalorder %s3480_s22, %s3476_s21 }
   0x6   : > { %p45_p2 = scmp.eq.s32.totalorder %s3500_s27, 0  ;;  %s37_s9 = sadd.s32 1, %s3480_s22 }
   0x7   : > { %s4002_s28 = smov (%p26_p0, %s25_s28), 0  ;;  %s4004_s29 = smov (!%p26_p0, %s28_s29), %s3496_s26 }
   0x8   : > { %p46_p3 = por %p45_p2, %p44_p1  ;;  %p30_p4 = scmp.ge.s32.totalorder %s4004_s29, 4 }
   0x9   : > { %s33_s30 = ssub.s32 %s3492_s25, %s4002_s28  ;;  %p2522_p6 = scmp.ge.s32.totalorder %s3500_s27, 8 }
   0xa   : > { %s4006_s29 = smov (%p30_p4, %s4004_s29), 0 }
   0xb   : > { %s32_s7 = ssub.s32 %s3496_s26, %s4006_s29  ;;  %220 = sbr.rel (%p2522_p6) target bundleno = 57 (0x39), region = 28 }
   0xc   : > { %s34_s8 = sor.u32 %s33_s30, %s32_s7 }
   0xd   : > { %p35_p5 = scmp.eq.s32.totalorder %s34_s8, 0 }
   0xf   : > { %s3589_s10 = scalar_select %p35_p5, %s3480_s22, %s37_s9  }
  0x12   : > { %223 = sbr.rel (!%p46_p3) target bundleno = 57 (0x39), region = 32  ;;  %s225_s11 = sand.u32 (%p46_p3), 1, %s3480_s22  }
  0x13   : > { %s2525_s12 = sshll.u32 (%p46_p3), %s3492_s25, 2  ;;  %s2523_s13 = sshll.u32 (%p46_p3), %s225_s11, 9 }
  0x14   : > { %s2701_s14 = sshll.u32 (%p46_p3), %s3496_s26, 8  ;;  %s3603_s20 = scalar_lea.vmem (%p46_p3), [#allocation3], %s2523_s13 }
  0x15   : > { %s231_s15 = sadd.s32 (%p46_p3), %s2701_s14, %s2525_s12 }
  0x16   : > { %s2527_s16 = sshll.u32 (%p46_p3), %s231_s15, 2 }
  0x17   : > { %s3598_s19 = scalar_lea.vmem (%p46_p3), %s3988_s0, %s2527_s16 }
  0x18   : > { %v246_v0 = vld [vmem:[%s3598_s19] sm:$0xff] (%p46_p3)  ;;  %v248_v1 = vld [vmem:[%s3598_s19 + $0x8] sm:$0xff] (%p46_p3) }
  0x19   : > { %v250_v2 = vld [vmem:[%s3598_s19 + $0x20] sm:$0xff]  ;;  %247 = vst [vmem:[%s3603_s20] sm:$0xff] %v246_v0  ;;  %249 = vst [vmem:[%s3603_s20 + $0x8] sm:$0xff] %v248_v1  ;;  %v252_v3 = vld [vmem:[%s3598_s19 + $0x28] sm:$0xff] }
  0x1a   : > { %251 = vst [vmem:[%s3603_s20 + $0x10] sm:$0xff] %v250_v2  ;;  %v254_v4 = vld [vmem:[%s3598_s19 + $0x40] sm:$0xff]  ;;  %v256_v5 = vld [vmem:[%s3598_s19 + $0x48] sm:$0xff]  ;;  %253 = vst [vmem:[%s3603_s20 + $0x18] sm:$0xff] %v252_v3 }
  0x1b   : > { %255 = vst [vmem:[%s3603_s20 + $0x20] sm:$0xff] %v254_v4  ;;  %257 = vst [vmem:[%s3603_s20 + $0x28] sm:$0xff] %v256_v5  ;;  %v258_v6 = vld [vmem:[%s3598_s19 + $0x60] sm:$0xff]  ;;  %v260_v7 = vld [vmem:[%s3598_s19 + $0x68] sm:$0xff] }
  0x1c   : > { %v262_v8 = vld [vmem:[%s3598_s19 + $0x80] sm:$0xff]  ;;  %259 = vst [vmem:[%s3603_s20 + $0x30] sm:$0xff] %v258_v6  ;;  %261 = vst [vmem:[%s3603_s20 + $0x38] sm:$0xff] %v260_v7  ;;  %v264_v9 = vld [vmem:[%s3598_s19 + $0x88] sm:$0xff] }
  0x1d   : > { %263 = vst [vmem:[%s3603_s20 + $0x40] sm:$0xff] %v262_v8  ;;  %v266_v10 = vld [vmem:[%s3598_s19 + $0xa0] sm:$0xff]  ;;  %v268_v11 = vld [vmem:[%s3598_s19 + $0xa8] sm:$0xff]  ;;  %265 = vst [vmem:[%s3603_s20 + $0x48] sm:$0xff] %v264_v9 }
  0x1e   : > { %267 = vst [vmem:[%s3603_s20 + $0x50] sm:$0xff] %v266_v10  ;;  %269 = vst [vmem:[%s3603_s20 + $0x58] sm:$0xff] %v268_v11  ;;  %v270_v12 = vld [vmem:[%s3598_s19 + $0xc0] sm:$0xff]  ;;  %v272_v13 = vld [vmem:[%s3598_s19 + $0xc8] sm:$0xff] }
  0x1f   : > { %v274_v14 = vld [vmem:[%s3598_s19 + $0xe0] sm:$0xff]  ;;  %271 = vst [vmem:[%s3603_s20 + $0x60] sm:$0xff] %v270_v12  ;;  %273 = vst [vmem:[%s3603_s20 + $0x68] sm:$0xff] %v272_v13  ;;  %v276_v15 = vld [vmem:[%s3598_s19 + $0xe8] sm:$0xff] }
  0x20   : > { %275 = vst [vmem:[%s3603_s20 + $0x70] sm:$0xff] %v274_v14  ;;  %v278_v16 = vld [vmem:[%s3598_s19 + $0x100] sm:$0xff]  ;;  %v280_v17 = vld [vmem:[%s3598_s19 + $0x108] sm:$0xff]  ;;  %277 = vst [vmem:[%s3603_s20 + $0x78] sm:$0xff] %v276_v15 }
  0x21   : > { %279 = vst [vmem:[%s3603_s20 + $0x80] sm:$0xff] %v278_v16  ;;  %281 = vst [vmem:[%s3603_s20 + $0x88] sm:$0xff] %v280_v17  ;;  %v282_v18 = vld [vmem:[%s3598_s19 + $0x120] sm:$0xff]  ;;  %v284_v19 = vld [vmem:[%s3598_s19 + $0x128] sm:$0xff] }
  0x22   : > { %v286_v20 = vld [vmem:[%s3598_s19 + $0x140] sm:$0xff]  ;;  %283 = vst [vmem:[%s3603_s20 + $0x90] sm:$0xff] %v282_v18  ;;  %285 = vst [vmem:[%s3603_s20 + $0x98] sm:$0xff] %v284_v19  ;;  %v288_v21 = vld [vmem:[%s3598_s19 + $0x148] sm:$0xff] }
  0x23   : > { %287 = vst [vmem:[%s3603_s20 + $0xa0] sm:$0xff] %v286_v20  ;;  %v290_v22 = vld [vmem:[%s3598_s19 + $0x160] sm:$0xff]  ;;  %v292_v23 = vld [vmem:[%s3598_s19 + $0x168] sm:$0xff]  ;;  %289 = vst [vmem:[%s3603_s20 + $0xa8] sm:$0xff] %v288_v21 }
  0x24   : > { %291 = vst [vmem:[%s3603_s20 + $0xb0] sm:$0xff] %v290_v22  ;;  %293 = vst [vmem:[%s3603_s20 + $0xb8] sm:$0xff] %v292_v23  ;;  %v294_v24 = vld [vmem:[%s3598_s19 + $0x180] sm:$0xff]  ;;  %v296_v25 = vld [vmem:[%s3598_s19 + $0x188] sm:$0xff] }
  0x25   : > { %v298_v26 = vld [vmem:[%s3598_s19 + $0x1a0] sm:$0xff]  ;;  %295 = vst [vmem:[%s3603_s20 + $0xc0] sm:$0xff] %v294_v24  ;;  %297 = vst [vmem:[%s3603_s20 + $0xc8] sm:$0xff] %v296_v25  ;;  %v300_v27 = vld [vmem:[%s3598_s19 + $0x1a8] sm:$0xff] }
  0x26   : > { %299 = vst [vmem:[%s3603_s20 + $0xd0] sm:$0xff] %v298_v26  ;;  %v302_v28 = vld [vmem:[%s3598_s19 + $0x1c0] sm:$0xff]  ;;  %v304_v29 = vld [vmem:[%s3598_s19 + $0x1c8] sm:$0xff]  ;;  %301 = vst [vmem:[%s3603_s20 + $0xd8] sm:$0xff] %v300_v27 }
  0x27   : > { %303 = vst [vmem:[%s3603_s20 + $0xe0] sm:$0xff] %v302_v28  ;;  %305 = vst [vmem:[%s3603_s20 + $0xe8] sm:$0xff] %v304_v29  ;;  %v306_v30 = vld [vmem:[%s3598_s19 + $0x1e0] sm:$0xff]  ;;  %v308_v31 = vld [vmem:[%s3598_s19 + $0x1e8] sm:$0xff] }
  0x28   : > { %v310_v32 = vld [vmem:[%s3598_s19 + $0x200] sm:$0xff]  ;;  %307 = vst [vmem:[%s3603_s20 + $0xf0] sm:$0xff] %v306_v30  ;;  %309 = vst [vmem:[%s3603_s20 + $0xf8] sm:$0xff] %v308_v31  ;;  %v312_v33 = vld [vmem:[%s3598_s19 + $0x208] sm:$0xff] }
  0x29   : > { %311 = vst [vmem:[%s3603_s20 + $0x100] sm:$0xff] %v310_v32  ;;  %v314_v34 = vld [vmem:[%s3598_s19 + $0x220] sm:$0xff]  ;;  %v316_v35 = vld [vmem:[%s3598_s19 + $0x228] sm:$0xff]  ;;  %313 = vst [vmem:[%s3603_s20 + $0x108] sm:$0xff] %v312_v33 }
  0x2a   : > { %315 = vst [vmem:[%s3603_s20 + $0x110] sm:$0xff] %v314_v34  ;;  %317 = vst [vmem:[%s3603_s20 + $0x118] sm:$0xff] %v316_v35  ;;  %v318_v36 = vld [vmem:[%s3598_s19 + $0x240] sm:$0xff]  ;;  %v320_v37 = vld [vmem:[%s3598_s19 + $0x248] sm:$0xff] }
  0x2b   : > { %v322_v38 = vld [vmem:[%s3598_s19 + $0x260] sm:$0xff]  ;;  %319 = vst [vmem:[%s3603_s20 + $0x120] sm:$0xff] %v318_v36  ;;  %321 = vst [vmem:[%s3603_s20 + $0x128] sm:$0xff] %v320_v37  ;;  %v324_v39 = vld [vmem:[%s3598_s19 + $0x268] sm:$0xff] }
  0x2c   : > { %323 = vst [vmem:[%s3603_s20 + $0x130] sm:$0xff] %v322_v38  ;;  %v326_v40 = vld [vmem:[%s3598_s19 + $0x280] sm:$0xff]  ;;  %v328_v41 = vld [vmem:[%s3598_s19 + $0x288] sm:$0xff]  ;;  %325 = vst [vmem:[%s3603_s20 + $0x138] sm:$0xff] %v324_v39 }
  0x2d   : > { %327 = vst [vmem:[%s3603_s20 + $0x140] sm:$0xff] %v326_v40  ;;  %329 = vst [vmem:[%s3603_s20 + $0x148] sm:$0xff] %v328_v41  ;;  %v330_v42 = vld [vmem:[%s3598_s19 + $0x2a0] sm:$0xff]  ;;  %v332_v43 = vld [vmem:[%s3598_s19 + $0x2a8] sm:$0xff] }
  0x2e   : > { %v334_v44 = vld [vmem:[%s3598_s19 + $0x2c0] sm:$0xff]  ;;  %331 = vst [vmem:[%s3603_s20 + $0x150] sm:$0xff] %v330_v42  ;;  %333 = vst [vmem:[%s3603_s20 + $0x158] sm:$0xff] %v332_v43  ;;  %v336_v45 = vld [vmem:[%s3598_s19 + $0x2c8] sm:$0xff] }
  0x2f   : > { %335 = vst [vmem:[%s3603_s20 + $0x160] sm:$0xff] %v334_v44  ;;  %v338_v46 = vld [vmem:[%s3598_s19 + $0x2e0] sm:$0xff]  ;;  %v340_v47 = vld [vmem:[%s3598_s19 + $0x2e8] sm:$0xff]  ;;  %337 = vst [vmem:[%s3603_s20 + $0x168] sm:$0xff] %v336_v45 }
  0x30   : > { %339 = vst [vmem:[%s3603_s20 + $0x170] sm:$0xff] %v338_v46  ;;  %341 = vst [vmem:[%s3603_s20 + $0x178] sm:$0xff] %v340_v47  ;;  %v342_v48 = vld [vmem:[%s3598_s19 + $0x300] sm:$0xff]  ;;  %v344_v49 = vld [vmem:[%s3598_s19 + $0x308] sm:$0xff] }
  0x31   : > { %v346_v50 = vld [vmem:[%s3598_s19 + $0x320] sm:$0xff]  ;;  %343 = vst [vmem:[%s3603_s20 + $0x180] sm:$0xff] %v342_v48  ;;  %345 = vst [vmem:[%s3603_s20 + $0x188] sm:$0xff] %v344_v49  ;;  %v348_v51 = vld [vmem:[%s3598_s19 + $0x328] sm:$0xff] }
  0x32   : > { %347 = vst [vmem:[%s3603_s20 + $0x190] sm:$0xff] %v346_v50  ;;  %v350_v52 = vld [vmem:[%s3598_s19 + $0x340] sm:$0xff]  ;;  %v352_v53 = vld [vmem:[%s3598_s19 + $0x348] sm:$0xff]  ;;  %349 = vst [vmem:[%s3603_s20 + $0x198] sm:$0xff] %v348_v51 }
  0x33   : > { %351 = vst [vmem:[%s3603_s20 + $0x1a0] sm:$0xff] %v350_v52  ;;  %353 = vst [vmem:[%s3603_s20 + $0x1a8] sm:$0xff] %v352_v53  ;;  %v354_v54 = vld [vmem:[%s3598_s19 + $0x360] sm:$0xff]  ;;  %v356_v55 = vld [vmem:[%s3598_s19 + $0x368] sm:$0xff] }
  0x34   : > { %v358_v56 = vld [vmem:[%s3598_s19 + $0x380] sm:$0xff]  ;;  %355 = vst [vmem:[%s3603_s20 + $0x1b0] sm:$0xff] %v354_v54  ;;  %357 = vst [vmem:[%s3603_s20 + $0x1b8] sm:$0xff] %v356_v55  ;;  %v360_v57 = vld [vmem:[%s3598_s19 + $0x388] sm:$0xff] }
  0x35   : > { %359 = vst [vmem:[%s3603_s20 + $0x1c0] sm:$0xff] %v358_v56  ;;  %v362_v58 = vld [vmem:[%s3598_s19 + $0x3a0] sm:$0xff]  ;;  %v364_v59 = vld [vmem:[%s3598_s19 + $0x3a8] sm:$0xff]  ;;  %361 = vst [vmem:[%s3603_s20 + $0x1c8] sm:$0xff] %v360_v57 }
  0x36   : > { %363 = vst [vmem:[%s3603_s20 + $0x1d0] sm:$0xff] %v362_v58  ;;  %365 = vst [vmem:[%s3603_s20 + $0x1d8] sm:$0xff] %v364_v59  ;;  %v366_v60 = vld [vmem:[%s3598_s19 + $0x3c0] sm:$0xff]  ;;  %v368_v61 = vld [vmem:[%s3598_s19 + $0x3c8] sm:$0xff] }
  0x37   : > { %v370_v62 = vld [vmem:[%s3598_s19 + $0x3e0] sm:$0xff]  ;;  %367 = vst [vmem:[%s3603_s20 + $0x1e0] sm:$0xff] %v366_v60  ;;  %369 = vst [vmem:[%s3603_s20 + $0x1e8] sm:$0xff] %v368_v61  ;;  %v372_v63 = vld [vmem:[%s3598_s19 + $0x3e8] sm:$0xff] }
  0x38   : > { %371 = vst [vmem:[%s3603_s20 + $0x1f0] sm:$0xff] %v370_v62  ;;  %373 = vst [vmem:[%s3603_s20 + $0x1f8] sm:$0xff] %v372_v63 }
  0x39 PF: > { %p2528_p7 = scmp.ge.s32.totalorder %s3500_s27, 1  ;;  %p396_p8 = scmp.lt.s32.totalorder %s3500_s27, 9 }
  0x3b   : > { %p397_p9 = pnand %p2528_p7, %p396_p8 }
  0x3c   : > { %s403_s30 = sand.u32 (!%p397_p9), 1, %s3476_s21   ;;  %s2530_s7 = sshll.u32 (!%p397_p9), %s3484_s23, 6 }
  0x3d   : > { %400 = sbr.rel (%p397_p9) target bundleno = 747 (0x2eb), region = 63  ;;  %s2529_s8 = sshll.u32 (!%p397_p9), %s403_s30, 9 }
  0x3e   : > { %p445_p10 = scmp.lt.s32.totalorder (!%p397_p9), %s2530_s7, 127  ;;  %s2532_s9 = sshll.u32 (!%p397_p9), %s3488_s24, 5 }
  0x3f   : > { %p451_p11 = scmp.lt.s32.totalorder (!%p397_p9), %s2532_s9, 127  ;;  %s3750_s24 = scalar_lea.vmem (!%p397_p9), [#allocation3], %s2529_s8 }
  0x40   : > { %p2536_p12 = scmp.ne.s32.totalorder (!%p397_p9), %s3484_s23, 0 }
  0x44   : > { %s4008_s7 = smov (!%p445_p10, %s2530_s7), 127  ;;  %s4010_s9 = smov (!%p451_p11, %s2532_s9), 127 }
  0x45   : > { %s2531_s11 = sshll.u32 %s4008_s7, 2  ;;  %s2533_s15 = sshll.u32 %s4010_s9, 2  ;;  %v3502_v0 = vmov (!%p2536_p12), 0.0  }
  0x46   : > { %s3738_s14 = scalar_lea.vmem %s3989_s1, %s2531_s11  ;;  %s3743_s18 = scalar_lea.vmem %s3990_s2, %s2533_s15  ;;  %467 = vst [vmem:[#allocation2] sm:$0xff] (!%p2536_p12), %v3502_v0  ;;  %468 = vst [vmem:[#allocation2 + $0x8] sm:$0xff] (!%p2536_p12), %v3502_v0 }
  0x47   : > { %s3748_s20 = scalar_lea.vmem %s3994_s6, %s2533_s15  ;;  %466 = sbr.rel (%p2536_p12) target bundleno = 86 (0x56), region = 71  ;;  %469 = vst [vmem:[#allocation2 + $0x10] sm:$0xff] (!%p2536_p12), %v3502_v0  ;;  %470 = vst [vmem:[#allocation2 + $0x18] sm:$0xff] (!%p2536_p12), %v3502_v0 }
  0x48   : > { %471 = vst [vmem:[#allocation2 + $0x20] sm:$0xff] (!%p2536_p12), %v3502_v0  ;;  %472 = vst [vmem:[#allocation2 + $0x28] sm:$0xff] (!%p2536_p12), %v3502_v0 }
  0x49   : > { %473 = vst [vmem:[#allocation2 + $0x30] sm:$0xff] (!%p2536_p12), %v3502_v0  ;;  %474 = vst [vmem:[#allocation2 + $0x38] sm:$0xff] (!%p2536_p12), %v3502_v0 }
  0x4a   : > { %475 = vst [vmem:[#allocation2 + $0x40] sm:$0xff] (!%p2536_p12), %v3502_v0  ;;  %476 = vst [vmem:[#allocation2 + $0x48] sm:$0xff] (!%p2536_p12), %v3502_v0 }
  0x4b   : > { %477 = vst [vmem:[#allocation2 + $0x50] sm:$0xff] (!%p2536_p12), %v3502_v0  ;;  %478 = vst [vmem:[#allocation2 + $0x58] sm:$0xff] (!%p2536_p12), %v3502_v0 }
  0x4c   : > { %479 = vst [vmem:[#allocation2 + $0x60] sm:$0xff] (!%p2536_p12), %v3502_v0  ;;  %480 = vst [vmem:[#allocation2 + $0x68] sm:$0xff] (!%p2536_p12), %v3502_v0 }
  0x4d   : > { %481 = vst [vmem:[#allocation2 + $0x70] sm:$0xff] (!%p2536_p12), %v3502_v0  ;;  %482 = vst [vmem:[#allocation2 + $0x78] sm:$0xff] (!%p2536_p12), %v3502_v0 }
  0x4e   : > { %483 = vst [vmem:[#allocation2 + $0x80] sm:$0xff] %v3502_v0  ;;  %484 = vst [vmem:[#allocation2 + $0x88] sm:$0xff] %v3502_v0 }
  0x4f   : > { %485 = vst [vmem:[#allocation2 + $0x90] sm:$0xff] %v3502_v0  ;;  %486 = vst [vmem:[#allocation2 + $0x98] sm:$0xff] %v3502_v0 }
  0x50   : > { %487 = vst [vmem:[#allocation2 + $0xa0] sm:$0xff] %v3502_v0  ;;  %488 = vst [vmem:[#allocation2 + $0xa8] sm:$0xff] %v3502_v0 }
  0x51   : > { %489 = vst [vmem:[#allocation2 + $0xb0] sm:$0xff] %v3502_v0  ;;  %490 = vst [vmem:[#allocation2 + $0xb8] sm:$0xff] %v3502_v0 }
  0x52   : > { %491 = vst [vmem:[#allocation2 + $0xc0] sm:$0xff] %v3502_v0  ;;  %492 = vst [vmem:[#allocation2 + $0xc8] sm:$0xff] %v3502_v0 }
  0x53   : > { %493 = vst [vmem:[#allocation2 + $0xd0] sm:$0xff] %v3502_v0  ;;  %494 = vst [vmem:[#allocation2 + $0xd8] sm:$0xff] %v3502_v0 }
  0x54   : > { %495 = vst [vmem:[#allocation2 + $0xe0] sm:$0xff] %v3502_v0  ;;  %496 = vst [vmem:[#allocation2 + $0xe8] sm:$0xff] %v3502_v0 }
  0x55   : > { %497 = vst [vmem:[#allocation2 + $0xf0] sm:$0xff] %v3502_v0  ;;  %498 = vst [vmem:[#allocation2 + $0xf8] sm:$0xff] %v3502_v0 }
  0x56 PF: > { %v3286_v1 = vld [vmem:[%s3738_s14 + $0x40] sm:$0xff]   ;;  %v3290_v5 = vld [vmem:[%s3738_s14 + $0x48] sm:$0xff]   ;;  %v3294_v9 = vld [vmem:[%s3738_s14 + $0x50] sm:$0xff]   ;;  %p2633_p13 = scmp.ne.s32.totalorder %s3484_s23, 1 }
  0x57   : > { %v3287_v2 = vld [vmem:[%s3738_s14 + $0xc0] sm:$0xff]   ;;  %2829 = vmatprep.subr.bf16.mxu0 %v3286_v1  ;;  %v3291_v6 = vld [vmem:[%s3738_s14 + $0xc8] sm:$0xff]   ;;  %v3295_v10 = vld [vmem:[%s3738_s14 + $0xd0] sm:$0xff]  }
  0x58   : > { %v3288_v3 = vld [vmem:[%s3738_s14] sm:$0xff]   ;;  %2941 = vmatprep.subr.bf16.mxu1 %v3287_v2  ;;  %v3292_v7 = vld [vmem:[%s3738_s14 + $0x8] sm:$0xff]   ;;  %v3296_v11 = vld [vmem:[%s3738_s14 + $0x10] sm:$0xff]  }
  0x59   : > { %v3289_v4 = vld [vmem:[%s3738_s14 + $0x80] sm:$0xff]   ;;  %2830 = vmatpush3.bf16.msra.mxu0 %v3288_v3  ;;  %v3293_v8 = vld [vmem:[%s3738_s14 + $0x88] sm:$0xff]   ;;  %v3297_v12 = vld [vmem:[%s3738_s14 + $0x90] sm:$0xff]  }
  0x5a   : > { %2942 = vmatpush3.bf16.msra.mxu1 %v3289_v4  ;;  %2831 = vmatprep.subr.bf16.mxu0 %v3290_v5  ;;  %v3298_v13 = vld [vmem:[%s3738_s14 + $0x58] sm:$0xff]   ;;  %v3302_v17 = vld [vmem:[%s3738_s14 + $0x60] sm:$0xff]   ;;  %v3306_v21 = vld [vmem:[%s3738_s14 + $0x68] sm:$0xff]  }
  0x5b   : > { %2943 = vmatprep.subr.bf16.mxu1 %v3291_v6  ;;  %v3299_v14 = vld [vmem:[%s3738_s14 + $0xd8] sm:$0xff]   ;;  %v3303_v18 = vld [vmem:[%s3738_s14 + $0xe0] sm:$0xff]   ;;  %v3307_v22 = vld [vmem:[%s3738_s14 + $0xe8] sm:$0xff]  }
  0x5c   : > { %v3300_v15 = vld [vmem:[%s3738_s14 + $0x18] sm:$0xff]   ;;  %v3304_v19 = vld [vmem:[%s3738_s14 + $0x20] sm:$0xff]   ;;  %v3308_v23 = vld [vmem:[%s3738_s14 + $0x28] sm:$0xff]  }
  0x5d   : > { %2832 = vmatpush3.bf16.msra.mxu0 %v3292_v7  ;;  %v3301_v16 = vld [vmem:[%s3738_s14 + $0x98] sm:$0xff]   ;;  %v3305_v20 = vld [vmem:[%s3738_s14 + $0xa0] sm:$0xff]   ;;  %v3309_v24 = vld [vmem:[%s3738_s14 + $0xa8] sm:$0xff]  }
  0x5e   : > { %2944 = vmatpush3.bf16.msra.mxu1 %v3293_v8  ;;  %2833 = vmatprep.subr.bf16.mxu0 %v3294_v9  ;;  %v3310_v25 = vld [vmem:[%s3738_s14 + $0x70] sm:$0xff]   ;;  %v3314_v29 = vld [vmem:[%s3738_s14 + $0x78] sm:$0xff]  }
  0x5f   : > { %2945 = vmatprep.subr.bf16.mxu1 %v3295_v10  ;;  %v3311_v26 = vld [vmem:[%s3738_s14 + $0xf0] sm:$0xff]   ;;  %v3315_v30 = vld [vmem:[%s3738_s14 + $0xf8] sm:$0xff]  }
  0x60   : > { %v3312_v27 = vld [vmem:[%s3738_s14 + $0x30] sm:$0xff]   ;;  %v3316_v31 = vld [vmem:[%s3738_s14 + $0x38] sm:$0xff]  }
  0x61   : > { %2834 = vmatpush3.bf16.msra.mxu0 %v3296_v11  ;;  %v3313_v28 = vld [vmem:[%s3738_s14 + $0xb0] sm:$0xff]   ;;  %v3317_v32 = vld [vmem:[%s3738_s14 + $0xb8] sm:$0xff]  }
  0x62   : > { %2946 = vmatpush3.bf16.msra.mxu1 %v3297_v12  ;;  %2835 = vmatprep.subr.bf16.mxu0 %v3298_v13  ;;  %v3318_v33 = vld [vmem:[%s3750_s24] ss:$16 sps:$4 sm:$0xff]   ;;  %v3320_v34 = vld [vmem:[%s3750_s24 + $0x4] ss:$16 sps:$4 sm:$0xff]   ;;  %v3321_v35 = vld [vmem:[%s3750_s24 + $0x8] ss:$16 sps:$4 sm:$0xff]  }
  0x63   : > { %2947 = vmatprep.subr.bf16.mxu1 %v3299_v14  ;;  %v3323_v36 = vld [vmem:[%s3750_s24 + $0xc] ss:$16 sps:$4 sm:$0xff]   ;;  %1203 = vmatprep.mubr.bf16.mxu0 %v3320_v34  ;;  %v3324_v37 = vld [vmem:[%s3750_s24 + $0x24] ss:$16 sps:$4 sm:$0xff]   ;;  %v3328_v39 = vld [vmem:[%s3750_s24 + $0x20] ss:$16 sps:$4 sm:$0xff]  }
  0x64   : > { %1364 = vmatprep.mubr.bf16.mxu1 %v3323_v36  ;;  %v3326_v38 = vld [vmem:[%s3750_s24 + $0x2c] ss:$16 sps:$4 sm:$0xff]   ;;  %v3329_v40 = vld [vmem:[%s3750_s24 + $0x28] ss:$16 sps:$4 sm:$0xff]   ;;  %v3330_v41 = vld [vmem:[%s3750_s24 + $0x44] ss:$16 sps:$4 sm:$0xff]  }
  0x65   : > { %2836 = vmatpush3.bf16.msra.mxu0 %v3300_v15  ;;  %v3332_v42 = vld [vmem:[%s3750_s24 + $0x4c] ss:$16 sps:$4 sm:$0xff]   ;;  %v3334_v43 = vld [vmem:[%s3750_s24 + $0x40] ss:$16 sps:$4 sm:$0xff]   ;;  %v3335_v44 = vld [vmem:[%s3750_s24 + $0x48] ss:$16 sps:$4 sm:$0xff]  }
  0x66   : > { %2948 = vmatpush3.bf16.msra.mxu1 %v3301_v16  ;;  %2837 = vmatprep.subr.bf16.mxu0 %v3302_v17  ;;  %v3336_v45 = vld [vmem:[%s3750_s24 + $0x64] ss:$16 sps:$4 sm:$0xff]   ;;  %v3338_v46 = vld [vmem:[%s3750_s24 + $0x6c] ss:$16 sps:$4 sm:$0xff]   ;;  %v3340_v47 = vld [vmem:[%s3750_s24 + $0x60] ss:$16 sps:$4 sm:$0xff]  }
  0x67   : > { %2949 = vmatprep.subr.bf16.mxu1 %v3303_v18  ;;  %v3341_v48 = vld [vmem:[%s3750_s24 + $0x68] ss:$16 sps:$4 sm:$0xff]   ;;  %v3342_v49 = vld [vmem:[%s3750_s24 + $0x84] ss:$16 sps:$4 sm:$0xff]   ;;  %v3344_v50 = vld [vmem:[%s3750_s24 + $0x8c] ss:$16 sps:$4 sm:$0xff]  }
  0x68   : > { %v3346_v51 = vld [vmem:[%s3750_s24 + $0x80] ss:$16 sps:$4 sm:$0xff]   ;;  %v3347_v52 = vld [vmem:[%s3750_s24 + $0x88] ss:$16 sps:$4 sm:$0xff]   ;;  %v3348_v53 = vld [vmem:[%s3750_s24 + $0xa4] ss:$16 sps:$4 sm:$0xff]  }
  0x69   : > { %2838 = vmatpush3.bf16.msra.mxu0 %v3304_v19  ;;  %v3350_v54 = vld [vmem:[%s3750_s24 + $0xac] ss:$16 sps:$4 sm:$0xff]   ;;  %v3352_v55 = vld [vmem:[%s3750_s24 + $0xa0] ss:$16 sps:$4 sm:$0xff]   ;;  %v3353_v56 = vld [vmem:[%s3750_s24 + $0xa8] ss:$16 sps:$4 sm:$0xff]  }
  0x6a   : > { %2950 = vmatpush3.bf16.msra.mxu1 %v3305_v20  ;;  %2839 = vmatprep.subr.bf16.mxu0 %v3306_v21  ;;  %v3354_v57 = vld [vmem:[%s3750_s24 + $0xc4] ss:$16 sps:$4 sm:$0xff]   ;;  %v3356_v58 = vld [vmem:[%s3750_s24 + $0xcc] ss:$16 sps:$4 sm:$0xff]   ;;  %v3358_v59 = vld [vmem:[%s3750_s24 + $0xc0] ss:$16 sps:$4 sm:$0xff]  }
  0x6b   : > { %2951 = vmatprep.subr.bf16.mxu1 %v3307_v22  ;;  %v3359_v60 = vld [vmem:[%s3750_s24 + $0xc8] ss:$16 sps:$4 sm:$0xff]   ;;  %v3360_v61 = vld [vmem:[%s3750_s24 + $0xe4] ss:$16 sps:$4 sm:$0xff]   ;;  %v3362_v62 = vld [vmem:[%s3750_s24 + $0xec] ss:$16 sps:$4 sm:$0xff]  }
  0x6c   : > { %v3364_v63 = vld [vmem:[%s3750_s24 + $0xe0] ss:$16 sps:$4 sm:$0xff]   ;;  %v3365_v0 = vld [vmem:[%s3750_s24 + $0xe8] ss:$16 sps:$4 sm:$0xff]   ;;  %v3366_v1 = vld [vmem:[%s3750_s24 + $0x104] ss:$16 sps:$4 sm:$0xff]  }
  0x6d   : > { %2840 = vmatpush3.bf16.msra.mxu0 %v3308_v23  ;;  %v3368_v2 = vld [vmem:[%s3750_s24 + $0x10c] ss:$16 sps:$4 sm:$0xff]   ;;  %v3370_v3 = vld [vmem:[%s3750_s24 + $0x100] ss:$16 sps:$4 sm:$0xff]   ;;  %v3371_v4 = vld [vmem:[%s3750_s24 + $0x108] ss:$16 sps:$4 sm:$0xff]  }
  0x6e   : > { %2952 = vmatpush3.bf16.msra.mxu1 %v3309_v24  ;;  %2841 = vmatprep.subr.bf16.mxu0 %v3310_v25  ;;  %v3372_v5 = vld [vmem:[%s3750_s24 + $0x124] ss:$16 sps:$4 sm:$0xff]   ;;  %v3374_v6 = vld [vmem:[%s3750_s24 + $0x12c] ss:$16 sps:$4 sm:$0xff]   ;;  %v3376_v7 = vld [vmem:[%s3750_s24 + $0x120] ss:$16 sps:$4 sm:$0xff]  }
  0x6f   : > { %2953 = vmatprep.subr.bf16.mxu1 %v3311_v26  ;;  %v3377_v8 = vld [vmem:[%s3750_s24 + $0x128] ss:$16 sps:$4 sm:$0xff]   ;;  %v3378_v9 = vld [vmem:[%s3750_s24 + $0x144] ss:$16 sps:$4 sm:$0xff]   ;;  %v3380_v10 = vld [vmem:[%s3750_s24 + $0x14c] ss:$16 sps:$4 sm:$0xff]  }
  0x70   : > { %v3382_v11 = vld [vmem:[%s3750_s24 + $0x140] ss:$16 sps:$4 sm:$0xff]   ;;  %v3383_v12 = vld [vmem:[%s3750_s24 + $0x148] ss:$16 sps:$4 sm:$0xff]   ;;  %v3384_v13 = vld [vmem:[%s3750_s24 + $0x164] ss:$16 sps:$4 sm:$0xff]  }
  0x71   : > { %2842 = vmatpush3.bf16.msra.mxu0 %v3312_v27  ;;  %v3386_v14 = vld [vmem:[%s3750_s24 + $0x16c] ss:$16 sps:$4 sm:$0xff]   ;;  %v3388_v15 = vld [vmem:[%s3750_s24 + $0x160] ss:$16 sps:$4 sm:$0xff]   ;;  %v3389_v16 = vld [vmem:[%s3750_s24 + $0x168] ss:$16 sps:$4 sm:$0xff]  }
  0x72   : > { %2954 = vmatpush3.bf16.msra.mxu1 %v3313_v28  ;;  %2843 = vmatprep.subr.bf16.mxu0 %v3314_v29  ;;  %v3390_v17 = vld [vmem:[%s3750_s24 + $0x184] ss:$16 sps:$4 sm:$0xff]   ;;  %v3392_v18 = vld [vmem:[%s3750_s24 + $0x18c] ss:$16 sps:$4 sm:$0xff]   ;;  %v3394_v19 = vld [vmem:[%s3750_s24 + $0x180] ss:$16 sps:$4 sm:$0xff]  }
  0x73   : > { %2955 = vmatprep.subr.bf16.mxu1 %v3315_v30  ;;  %v3395_v20 = vld [vmem:[%s3750_s24 + $0x188] ss:$16 sps:$4 sm:$0xff]   ;;  %v3396_v21 = vld [vmem:[%s3750_s24 + $0x1a4] ss:$16 sps:$4 sm:$0xff]   ;;  %v3398_v22 = vld [vmem:[%s3750_s24 + $0x1ac] ss:$16 sps:$4 sm:$0xff]  }
  0x74   : > { %v3400_v23 = vld [vmem:[%s3750_s24 + $0x1a0] ss:$16 sps:$4 sm:$0xff]   ;;  %v3401_v24 = vld [vmem:[%s3750_s24 + $0x1a8] ss:$16 sps:$4 sm:$0xff]   ;;  %v3402_v25 = vld [vmem:[%s3750_s24 + $0x1c4] ss:$16 sps:$4 sm:$0xff]  }
  0x75   : > { %2844 = vmatpush3.bf16.msra.mxu0 %v3316_v31  ;;  %v3404_v26 = vld [vmem:[%s3750_s24 + $0x1cc] ss:$16 sps:$4 sm:$0xff]   ;;  %v3406_v27 = vld [vmem:[%s3750_s24 + $0x1c0] ss:$16 sps:$4 sm:$0xff]   ;;  %v3407_v28 = vld [vmem:[%s3750_s24 + $0x1c8] ss:$16 sps:$4 sm:$0xff]  }
  0x76   : > { %2956 = vmatpush3.bf16.msra.mxu1 %v3317_v32  ;;  %v3408_v29 = vld [vmem:[%s3750_s24 + $0x1e4] ss:$16 sps:$4 sm:$0xff]   ;;  %v3410_v30 = vld [vmem:[%s3750_s24 + $0x1ec] ss:$16 sps:$4 sm:$0xff]   ;;  %v3412_v31 = vld [vmem:[%s3750_s24 + $0x1e0] ss:$16 sps:$4 sm:$0xff]  }
  0x77   : > { %v3413_v32 = vld [vmem:[%s3750_s24 + $0x1e8] ss:$16 sps:$4 sm:$0xff]  }
  0x78   : > { %1204 = vmatmul.mubr.bf16.vlgmr.msra.gmra.mrb[0].mxu0 %v3318_v33 }
  0x79   : > { %1365 = vmatmul.mubr.bf16.vlgmr.msra.gmra.mrb[0].mxu1 %v3321_v35  ;;  %1211 = vmatprep.mubr.bf16.mxu0 %v3324_v37 }
  0x7a   : > { %1372 = vmatprep.mubr.bf16.mxu1 %v3326_v38 }
  0x80   : > { %1212 = vmatmul.mubr.bf16.gmra.mrb[4].mxu0 %v3328_v39 }
  0x81   : > { %1373 = vmatmul.mubr.bf16.gmra.mrb[4].mxu1 %v3329_v40  ;;  %1219 = vmatprep.mubr.bf16.mxu0 %v3330_v41 }
  0x82   : > { %1380 = vmatprep.mubr.bf16.mxu1 %v3332_v42  ;;  %v499_v42 = vld [vmem:[#allocation2] sm:$0xff] }
  0x88   : > { %1220 = vmatmul.mubr.bf16.gmra.mrb[8].mxu0 %v3334_v43 }
  0x89   : > { %1381 = vmatmul.mubr.bf16.gmra.mrb[8].mxu1 %v3335_v44  ;;  %1227 = vmatprep.mubr.bf16.mxu0 %v3336_v45 }
  0x8a   : > { %1388 = vmatprep.mubr.bf16.mxu1 %v3338_v46 }
  0x90   : > { %1228 = vmatmul.mubr.bf16.gmra.mrb[12].mxu0 %v3340_v47  ;;  %v500_v47 = vld [vmem:[#allocation2 + $0x8] sm:$0xff] }
  0x91   : > { %1389 = vmatmul.mubr.bf16.gmra.mrb[12].mxu1 %v3341_v48  ;;  %1235 = vmatprep.mubr.bf16.mxu0 %v3342_v49 }
  0x92   : > { %1396 = vmatprep.mubr.bf16.mxu1 %v3344_v50 }
  0x98   : > { %1236 = vmatmul.mubr.bf16.gmra.mrb[16].mxu0 %v3346_v51 }
  0x99   : > { %1397 = vmatmul.mubr.bf16.gmra.mrb[16].mxu1 %v3347_v52  ;;  %1243 = vmatprep.mubr.bf16.mxu0 %v3348_v53 }
  0x9a   : > { %1404 = vmatprep.mubr.bf16.mxu1 %v3350_v54 }
  0xa0   : > { %1244 = vmatmul.mubr.bf16.gmra.mrb[20].mxu0 %v3352_v55 }
  0xa1   : > { %1405 = vmatmul.mubr.bf16.gmra.mrb[20].mxu1 %v3353_v56  ;;  %1251 = vmatprep.mubr.bf16.mxu0 %v3354_v57 }
  0xa2   : > { %1412 = vmatprep.mubr.bf16.mxu1 %v3356_v58 }
  0xa8   : > { %1252 = vmatmul.mubr.bf16.gmra.mrb[24].mxu0 %v3358_v59 }
  0xa9   : > { %1413 = vmatmul.mubr.bf16.gmra.mrb[24].mxu1 %v3359_v60  ;;  %1259 = vmatprep.mubr.bf16.mxu0 %v3360_v61  ;;  %v501_v60 = vld [vmem:[#allocation2 + $0x10] sm:$0xff] }
  0xaa   : > { %1420 = vmatprep.mubr.bf16.mxu1 %v3362_v62 }
  0xb0   : > { %1260 = vmatmul.mubr.bf16.gmra.mrb[28].mxu0 %v3364_v63 }
  0xb1   : > { %1421 = vmatmul.mubr.bf16.gmra.mrb[28].mxu1 %v3365_v0  ;;  %1267 = vmatprep.mubr.bf16.mxu0 %v3366_v1  ;;  %v502_v1 = vld [vmem:[#allocation2 + $0x18] sm:$0xff] }
  0xb2   : > { %1428 = vmatprep.mubr.bf16.mxu1 %v3368_v2 }
  0xb8   : > { %1268 = vmatmul.mubr.bf16.gmra.mrb[32].mxu0 %v3370_v3 }
  0xb9   : > { %1429 = vmatmul.mubr.bf16.gmra.mrb[32].mxu1 %v3371_v4  ;;  %1275 = vmatprep.mubr.bf16.mxu0 %v3372_v5 }
  0xba   : > { %1436 = vmatprep.mubr.bf16.mxu1 %v3374_v6 }
  0xc0   : > { %1276 = vmatmul.mubr.bf16.gmra.mrb[36].mxu0 %v3376_v7 }
  0xc1   : > { %1437 = vmatmul.mubr.bf16.gmra.mrb[36].mxu1 %v3377_v8  ;;  %1283 = vmatprep.mubr.bf16.mxu0 %v3378_v9 }
  0xc2   : > { %1444 = vmatprep.mubr.bf16.mxu1 %v3380_v10 }
  0xc8   : > { %1284 = vmatmul.mubr.bf16.gmra.mrb[40].mxu0 %v3382_v11 }
  0xc9   : > { %1445 = vmatmul.mubr.bf16.gmra.mrb[40].mxu1 %v3383_v12  ;;  %1291 = vmatprep.mubr.bf16.mxu0 %v3384_v13 }
  0xca   : > { %1452 = vmatprep.mubr.bf16.mxu1 %v3386_v14  ;;  %v503_v14 = vld [vmem:[#allocation2 + $0x20] sm:$0xff] }
  0xd0   : > { %1292 = vmatmul.mubr.bf16.gmra.mrb[44].mxu0 %v3388_v15 }
  0xd1   : > { %1453 = vmatmul.mubr.bf16.gmra.mrb[44].mxu1 %v3389_v16  ;;  %1299 = vmatprep.mubr.bf16.mxu0 %v3390_v17 }
  0xd2   : > { %1460 = vmatprep.mubr.bf16.mxu1 %v3392_v18 }
  0xd8   : > { %1300 = vmatmul.mubr.bf16.gmra.mrb[48].mxu0 %v3394_v19  ;;  %v504_v19 = vld [vmem:[#allocation2 + $0x28] sm:$0xff] }
  0xd9   : > { %1461 = vmatmul.mubr.bf16.gmra.mrb[48].mxu1 %v3395_v20  ;;  %1307 = vmatprep.mubr.bf16.mxu0 %v3396_v21 }
  0xda   : > { %1468 = vmatprep.mubr.bf16.mxu1 %v3398_v22 }
  0xe0   : > { %1308 = vmatmul.mubr.bf16.gmra.mrb[52].mxu0 %v3400_v23 }
  0xe1   : > { %1469 = vmatmul.mubr.bf16.gmra.mrb[52].mxu1 %v3401_v24  ;;  %1315 = vmatprep.mubr.bf16.mxu0 %v3402_v25 }
  0xe2   : > { %1476 = vmatprep.mubr.bf16.mxu1 %v3404_v26 }
  0xe8   : > { %1316 = vmatmul.mubr.bf16.gmra.mrb[56].mxu0 %v3406_v27 }
  0xe9   : > { %1477 = vmatmul.mubr.bf16.gmra.mrb[56].mxu1 %v3407_v28  ;;  %1323 = vmatprep.mubr.bf16.mxu0 %v3408_v29 }
  0xea   : > { %1484 = vmatprep.mubr.bf16.mxu1 %v3410_v30 }
  0xf0   : > { %1324 = vmatmul.mubr.bf16.gmra.mrb[60].mxu0 %v3412_v31 }
  0xf1   : > { %1485 = vmatmul.mubr.bf16.gmra.mrb[60].mxu1 %v3413_v32  ;;  %v505_v32 = vld [vmem:[#allocation2 + $0x30] sm:$0xff] }
 0x14b   : > { %v2845_v33 = vpop.f32.mrb[0].mxu0 }
 0x14c   : > { %v2957_v34 = vpop.f32.mrb[0].mxu1  ;;  %v2846_v35 = vpop.f32.mrb[1].mxu0 }
 0x14d   : > { %v2847_v36 = vadd.f32 %v2846_v35, %v2845_v33  ;;  %v2958_v37 = vpop.f32.mrb[1].mxu1  ;;  %v2848_v38 = vpop.f32.mrb[2].mxu0 }
 0x14e   : > { %v2959_v39 = vadd.f32 %v2958_v37, %v2957_v34  ;;  %v2960_v40 = vpop.f32.mrb[2].mxu1  ;;  %v2849_v41 = vpop.f32.mrb[3].mxu0  ;;  %v506_v37 = vld [vmem:[#allocation2 + $0x38] sm:$0xff] }
 0x14f   : > { %v2850_v43 = vadd.f32 %v2849_v41, %v2848_v38  ;;  %v2961_v44 = vpop.f32.mrb[3].mxu1 }
 0x150   : > { %v1367_v45 = vadd.f32 %v2959_v39, %v2847_v36  ;;  %v2962_v46 = vadd.f32 %v2961_v44, %v2960_v40 }
 0x152   : > { %v1493_v48 = vadd.f32 %v1367_v45, %v499_v42  ;;  %v1370_v49 = vadd.f32 %v2962_v46, %v2850_v43 }
 0x153   : > { %v2851_v50 = vpop.f32.mrb[4].mxu0 }
 0x154   : > { %1525 = vst [vmem:[#allocation2] sm:$0xff] %v1493_v48  ;;  %v1494_v51 = vadd.f32 %v1370_v49, %v500_v47  ;;  %v2963_v52 = vpop.f32.mrb[4].mxu1  ;;  %v2852_v53 = vpop.f32.mrb[5].mxu0 }
 0x155   : > { %v2853_v54 = vadd.f32 %v2852_v53, %v2851_v50  ;;  %v2964_v55 = vpop.f32.mrb[5].mxu1  ;;  %v2854_v56 = vpop.f32.mrb[6].mxu0  ;;  %v507_v50 = vld [vmem:[#allocation2 + $0x40] sm:$0xff] }
 0x156   : > { %1526 = vst [vmem:[#allocation2 + $0x8] sm:$0xff] %v1494_v51  ;;  %v2965_v57 = vadd.f32 %v2964_v55, %v2963_v52  ;;  %v2966_v58 = vpop.f32.mrb[6].mxu1  ;;  %v2855_v59 = vpop.f32.mrb[7].mxu0  ;;  %v508_v55 = vld [vmem:[#allocation2 + $0x48] sm:$0xff] }
 0x157   : > { %v2856_v61 = vadd.f32 %v2855_v59, %v2854_v56  ;;  %v2967_v62 = vpop.f32.mrb[7].mxu1 }
 0x158   : > { %v1375_v63 = vadd.f32 %v2965_v57, %v2853_v54  ;;  %v2968_v0 = vadd.f32 %v2967_v62, %v2966_v58 }
 0x15a   : > { %v1495_v2 = vadd.f32 %v1375_v63, %v501_v60  ;;  %v1378_v3 = vadd.f32 %v2968_v0, %v2856_v61 }
 0x15b   : > { %v2857_v4 = vpop.f32.mrb[8].mxu0 }
 0x15c   : > { %1527 = vst [vmem:[#allocation2 + $0x10] sm:$0xff] %v1495_v2  ;;  %v1496_v5 = vadd.f32 %v1378_v3, %v502_v1  ;;  %v2969_v6 = vpop.f32.mrb[8].mxu1  ;;  %v2858_v7 = vpop.f32.mrb[9].mxu0 }
 0x15d   : > { %v2859_v8 = vadd.f32 %v2858_v7, %v2857_v4  ;;  %v2970_v9 = vpop.f32.mrb[9].mxu1  ;;  %v2860_v10 = vpop.f32.mrb[10].mxu0  ;;  %v509_v4 = vld [vmem:[#allocation2 + $0x50] sm:$0xff] }
 0x15e   : > { %1528 = vst [vmem:[#allocation2 + $0x18] sm:$0xff] %v1496_v5  ;;  %v2971_v11 = vadd.f32 %v2970_v9, %v2969_v6  ;;  %v2972_v12 = vpop.f32.mrb[10].mxu1  ;;  %v2861_v13 = vpop.f32.mrb[11].mxu0  ;;  %v510_v9 = vld [vmem:[#allocation2 + $0x58] sm:$0xff] }
 0x15f   : > { %v2862_v15 = vadd.f32 %v2861_v13, %v2860_v10  ;;  %v2973_v16 = vpop.f32.mrb[11].mxu1 }
 0x160   : > { %v1383_v17 = vadd.f32 %v2971_v11, %v2859_v8  ;;  %v2974_v18 = vadd.f32 %v2973_v16, %v2972_v12 }
 0x162   : > { %v1497_v20 = vadd.f32 %v1383_v17, %v503_v14  ;;  %v1386_v21 = vadd.f32 %v2974_v18, %v2862_v15 }
 0x163   : > { %v2863_v22 = vpop.f32.mrb[12].mxu0 }
 0x164   : > { %1529 = vst [vmem:[#allocation2 + $0x20] sm:$0xff] %v1497_v20  ;;  %v1498_v23 = vadd.f32 %v1386_v21, %v504_v19  ;;  %v2975_v24 = vpop.f32.mrb[12].mxu1  ;;  %v2864_v25 = vpop.f32.mrb[13].mxu0 }
 0x165   : > { %v2865_v26 = vadd.f32 %v2864_v25, %v2863_v22  ;;  %v2976_v27 = vpop.f32.mrb[13].mxu1  ;;  %v2866_v28 = vpop.f32.mrb[14].mxu0  ;;  %v511_v22 = vld [vmem:[#allocation2 + $0x60] sm:$0xff] }
 0x166   : > { %1530 = vst [vmem:[#allocation2 + $0x28] sm:$0xff] %v1498_v23  ;;  %v2977_v29 = vadd.f32 %v2976_v27, %v2975_v24  ;;  %v2978_v30 = vpop.f32.mrb[14].mxu1  ;;  %v2867_v31 = vpop.f32.mrb[15].mxu0  ;;  %v512_v27 = vld [vmem:[#allocation2 + $0x68] sm:$0xff] }
 0x167   : > { %v2868_v33 = vadd.f32 %v2867_v31, %v2866_v28  ;;  %v2979_v34 = vpop.f32.mrb[15].mxu1 }
 0x168   : > { %v1391_v35 = vadd.f32 %v2977_v29, %v2865_v26  ;;  %v2980_v36 = vadd.f32 %v2979_v34, %v2978_v30 }
 0x16a   : > { %v1499_v38 = vadd.f32 %v1391_v35, %v505_v32  ;;  %v1394_v39 = vadd.f32 %v2980_v36, %v2868_v33 }
 0x16b   : > { %v2869_v40 = vpop.f32.mrb[16].mxu0 }
 0x16c   : > { %1531 = vst [vmem:[#allocation2 + $0x30] sm:$0xff] %v1499_v38  ;;  %v1500_v41 = vadd.f32 %v1394_v39, %v506_v37  ;;  %v2981_v42 = vpop.f32.mrb[16].mxu1  ;;  %v2870_v43 = vpop.f32.mrb[17].mxu0 }
 0x16d   : > { %v2871_v44 = vadd.f32 %v2870_v43, %v2869_v40  ;;  %v2982_v45 = vpop.f32.mrb[17].mxu1  ;;  %v2872_v46 = vpop.f32.mrb[18].mxu0  ;;  %v513_v40 = vld [vmem:[#allocation2 + $0x70] sm:$0xff] }
 0x16e   : > { %1532 = vst [vmem:[#allocation2 + $0x38] sm:$0xff] %v1500_v41  ;;  %v2983_v47 = vadd.f32 %v2982_v45, %v2981_v42  ;;  %v2984_v48 = vpop.f32.mrb[18].mxu1  ;;  %v2873_v49 = vpop.f32.mrb[19].mxu0  ;;  %v514_v45 = vld [vmem:[#allocation2 + $0x78] sm:$0xff] }
 0x16f   : > { %v2874_v51 = vadd.f32 %v2873_v49, %v2872_v46  ;;  %v2985_v52 = vpop.f32.mrb[19].mxu1 }
 0x170   : > { %v1399_v53 = vadd.f32 %v2983_v47, %v2871_v44  ;;  %v2986_v54 = vadd.f32 %v2985_v52, %v2984_v48 }
 0x172   : > { %v1501_v56 = vadd.f32 %v1399_v53, %v507_v50  ;;  %v1402_v57 = vadd.f32 %v2986_v54, %v2874_v51 }
 0x173   : > { %v2875_v58 = vpop.f32.mrb[20].mxu0 }
 0x174   : > { %1533 = vst [vmem:[#allocation2 + $0x40] sm:$0xff] %v1501_v56  ;;  %v1502_v59 = vadd.f32 %v1402_v57, %v508_v55  ;;  %v2987_v60 = vpop.f32.mrb[20].mxu1  ;;  %v2876_v61 = vpop.f32.mrb[21].mxu0 }
 0x175   : > { %v2877_v62 = vadd.f32 %v2876_v61, %v2875_v58  ;;  %v2988_v63 = vpop.f32.mrb[21].mxu1  ;;  %v2878_v0 = vpop.f32.mrb[22].mxu0  ;;  %v515_v58 = vld [vmem:[#allocation2 + $0x80] sm:$0xff] }
 0x176   : > { %1534 = vst [vmem:[#allocation2 + $0x48] sm:$0xff] %v1502_v59  ;;  %v2989_v1 = vadd.f32 %v2988_v63, %v2987_v60  ;;  %v2990_v2 = vpop.f32.mrb[22].mxu1  ;;  %v2879_v3 = vpop.f32.mrb[23].mxu0  ;;  %v516_v63 = vld [vmem:[#allocation2 + $0x88] sm:$0xff] }
 0x177   : > { %v2880_v5 = vadd.f32 %v2879_v3, %v2878_v0  ;;  %v2991_v6 = vpop.f32.mrb[23].mxu1 }
 0x178   : > { %v1407_v7 = vadd.f32 %v2989_v1, %v2877_v62  ;;  %v2992_v8 = vadd.f32 %v2991_v6, %v2990_v2 }
 0x17a   : > { %v1503_v10 = vadd.f32 %v1407_v7, %v509_v4  ;;  %v1410_v11 = vadd.f32 %v2992_v8, %v2880_v5 }
 0x17b   : > { %v2881_v12 = vpop.f32.mrb[24].mxu0 }
 0x17c   : > { %1535 = vst [vmem:[#allocation2 + $0x50] sm:$0xff] %v1503_v10  ;;  %v1504_v13 = vadd.f32 %v1410_v11, %v510_v9  ;;  %v2993_v14 = vpop.f32.mrb[24].mxu1  ;;  %v2882_v15 = vpop.f32.mrb[25].mxu0 }
 0x17d   : > { %v2883_v16 = vadd.f32 %v2882_v15, %v2881_v12  ;;  %v2994_v17 = vpop.f32.mrb[25].mxu1  ;;  %v2884_v18 = vpop.f32.mrb[26].mxu0  ;;  %v517_v12 = vld [vmem:[#allocation2 + $0x90] sm:$0xff] }
 0x17e   : > { %1536 = vst [vmem:[#allocation2 + $0x58] sm:$0xff] %v1504_v13  ;;  %v2995_v19 = vadd.f32 %v2994_v17, %v2993_v14  ;;  %v2996_v20 = vpop.f32.mrb[26].mxu1  ;;  %v2885_v21 = vpop.f32.mrb[27].mxu0  ;;  %v518_v17 = vld [vmem:[#allocation2 + $0x98] sm:$0xff] }
 0x17f   : > { %v2886_v23 = vadd.f32 %v2885_v21, %v2884_v18  ;;  %v2997_v24 = vpop.f32.mrb[27].mxu1 }
 0x180   : > { %v1415_v25 = vadd.f32 %v2995_v19, %v2883_v16  ;;  %v2998_v26 = vadd.f32 %v2997_v24, %v2996_v20 }
 0x182   : > { %v1505_v28 = vadd.f32 %v1415_v25, %v511_v22  ;;  %v1418_v29 = vadd.f32 %v2998_v26, %v2886_v23 }
 0x183   : > { %v2887_v30 = vpop.f32.mrb[28].mxu0 }
 0x184   : > { %1537 = vst [vmem:[#allocation2 + $0x60] sm:$0xff] %v1505_v28  ;;  %v1506_v31 = vadd.f32 %v1418_v29, %v512_v27  ;;  %v2999_v32 = vpop.f32.mrb[28].mxu1  ;;  %v2888_v33 = vpop.f32.mrb[29].mxu0 }
 0x185   : > { %v2889_v34 = vadd.f32 %v2888_v33, %v2887_v30  ;;  %v3000_v35 = vpop.f32.mrb[29].mxu1  ;;  %v2890_v36 = vpop.f32.mrb[30].mxu0  ;;  %v519_v30 = vld [vmem:[#allocation2 + $0xa0] sm:$0xff] }
 0x186   : > { %1538 = vst [vmem:[#allocation2 + $0x68] sm:$0xff] %v1506_v31  ;;  %v3001_v37 = vadd.f32 %v3000_v35, %v2999_v32  ;;  %v3002_v38 = vpop.f32.mrb[30].mxu1  ;;  %v2891_v39 = vpop.f32.mrb[31].mxu0  ;;  %v520_v35 = vld [vmem:[#allocation2 + $0xa8] sm:$0xff] }
 0x187   : > { %v2892_v41 = vadd.f32 %v2891_v39, %v2890_v36  ;;  %v3003_v42 = vpop.f32.mrb[31].mxu1 }
 0x188   : > { %v1423_v43 = vadd.f32 %v3001_v37, %v2889_v34  ;;  %v3004_v44 = vadd.f32 %v3003_v42, %v3002_v38 }
 0x18a   : > { %v1507_v46 = vadd.f32 %v1423_v43, %v513_v40  ;;  %v1426_v47 = vadd.f32 %v3004_v44, %v2892_v41 }
 0x18b   : > { %v2893_v48 = vpop.f32.mrb[32].mxu0 }
 0x18c   : > { %1539 = vst [vmem:[#allocation2 + $0x70] sm:$0xff] %v1507_v46  ;;  %v1508_v49 = vadd.f32 %v1426_v47, %v514_v45  ;;  %v3005_v50 = vpop.f32.mrb[32].mxu1  ;;  %v2894_v51 = vpop.f32.mrb[33].mxu0 }
 0x18d   : > { %v2895_v52 = vadd.f32 %v2894_v51, %v2893_v48  ;;  %v3006_v53 = vpop.f32.mrb[33].mxu1  ;;  %v2896_v54 = vpop.f32.mrb[34].mxu0  ;;  %v521_v48 = vld [vmem:[#allocation2 + $0xb0] sm:$0xff] }
 0x18e   : > { %1540 = vst [vmem:[#allocation2 + $0x78] sm:$0xff] %v1508_v49  ;;  %v3007_v55 = vadd.f32 %v3006_v53, %v3005_v50  ;;  %v3008_v56 = vpop.f32.mrb[34].mxu1  ;;  %v2897_v57 = vpop.f32.mrb[35].mxu0  ;;  %v522_v53 = vld [vmem:[#allocation2 + $0xb8] sm:$0xff] }
 0x18f   : > { %v2898_v59 = vadd.f32 %v2897_v57, %v2896_v54  ;;  %v3009_v60 = vpop.f32.mrb[35].mxu1 }
 0x190   : > { %v1431_v61 = vadd.f32 %v3007_v55, %v2895_v52  ;;  %v3010_v62 = vadd.f32 %v3009_v60, %v3008_v56 }
 0x192   : > { %v1509_v0 = vadd.f32 %v1431_v61, %v515_v58  ;;  %v1434_v1 = vadd.f32 %v3010_v62, %v2898_v59 }
 0x193   : > { %v2899_v2 = vpop.f32.mrb[36].mxu0 }
 0x194   : > { %1541 = vst [vmem:[#allocation2 + $0x80] sm:$0xff] %v1509_v0  ;;  %v1510_v3 = vadd.f32 %v1434_v1, %v516_v63  ;;  %v3011_v4 = vpop.f32.mrb[36].mxu1  ;;  %v2900_v5 = vpop.f32.mrb[37].mxu0 }
 0x195   : > { %v2901_v6 = vadd.f32 %v2900_v5, %v2899_v2  ;;  %v3012_v7 = vpop.f32.mrb[37].mxu1  ;;  %v2902_v8 = vpop.f32.mrb[38].mxu0  ;;  %v523_v2 = vld [vmem:[#allocation2 + $0xc0] sm:$0xff] }
 0x196   : > { %1542 = vst [vmem:[#allocation2 + $0x88] sm:$0xff] %v1510_v3  ;;  %v3013_v9 = vadd.f32 %v3012_v7, %v3011_v4  ;;  %v3014_v10 = vpop.f32.mrb[38].mxu1  ;;  %v2903_v11 = vpop.f32.mrb[39].mxu0  ;;  %v524_v7 = vld [vmem:[#allocation2 + $0xc8] sm:$0xff] }
 0x197   : > { %v2904_v13 = vadd.f32 %v2903_v11, %v2902_v8  ;;  %v3015_v14 = vpop.f32.mrb[39].mxu1 }
 0x198   : > { %v1439_v15 = vadd.f32 %v3013_v9, %v2901_v6  ;;  %v3016_v16 = vadd.f32 %v3015_v14, %v3014_v10 }
 0x19a   : > { %v1511_v18 = vadd.f32 %v1439_v15, %v517_v12  ;;  %v1442_v19 = vadd.f32 %v3016_v16, %v2904_v13 }
 0x19b   : > { %v2905_v20 = vpop.f32.mrb[40].mxu0 }
 0x19c   : > { %1543 = vst [vmem:[#allocation2 + $0x90] sm:$0xff] %v1511_v18  ;;  %v1512_v21 = vadd.f32 %v1442_v19, %v518_v17  ;;  %v3017_v22 = vpop.f32.mrb[40].mxu1  ;;  %v2906_v23 = vpop.f32.mrb[41].mxu0 }
 0x19d   : > { %v2907_v24 = vadd.f32 %v2906_v23, %v2905_v20  ;;  %v3018_v25 = vpop.f32.mrb[41].mxu1  ;;  %v2908_v26 = vpop.f32.mrb[42].mxu0  ;;  %v525_v20 = vld [vmem:[#allocation2 + $0xd0] sm:$0xff] }
 0x19e   : > { %1544 = vst [vmem:[#allocation2 + $0x98] sm:$0xff] %v1512_v21  ;;  %v3019_v27 = vadd.f32 %v3018_v25, %v3017_v22  ;;  %v3020_v28 = vpop.f32.mrb[42].mxu1  ;;  %v2909_v29 = vpop.f32.mrb[43].mxu0  ;;  %v526_v25 = vld [vmem:[#allocation2 + $0xd8] sm:$0xff] }
 0x19f   : > { %v2910_v31 = vadd.f32 %v2909_v29, %v2908_v26  ;;  %v3021_v32 = vpop.f32.mrb[43].mxu1 }
 0x1a0   : > { %v1447_v33 = vadd.f32 %v3019_v27, %v2907_v24  ;;  %v3022_v34 = vadd.f32 %v3021_v32, %v3020_v28 }
 0x1a2   : > { %v1513_v36 = vadd.f32 %v1447_v33, %v519_v30  ;;  %v1450_v37 = vadd.f32 %v3022_v34, %v2910_v31 }
 0x1a3   : > { %v2911_v38 = vpop.f32.mrb[44].mxu0 }
 0x1a4   : > { %1545 = vst [vmem:[#allocation2 + $0xa0] sm:$0xff] %v1513_v36  ;;  %v1514_v39 = vadd.f32 %v1450_v37, %v520_v35  ;;  %v3023_v40 = vpop.f32.mrb[44].mxu1  ;;  %v2912_v41 = vpop.f32.mrb[45].mxu0 }
 0x1a5   : > { %v2913_v42 = vadd.f32 %v2912_v41, %v2911_v38  ;;  %v3024_v43 = vpop.f32.mrb[45].mxu1  ;;  %v2914_v44 = vpop.f32.mrb[46].mxu0  ;;  %v527_v38 = vld [vmem:[#allocation2 + $0xe0] sm:$0xff] }
 0x1a6   : > { %1546 = vst [vmem:[#allocation2 + $0xa8] sm:$0xff] %v1514_v39  ;;  %v3025_v45 = vadd.f32 %v3024_v43, %v3023_v40  ;;  %v3026_v46 = vpop.f32.mrb[46].mxu1  ;;  %v2915_v47 = vpop.f32.mrb[47].mxu0  ;;  %v528_v43 = vld [vmem:[#allocation2 + $0xe8] sm:$0xff] }
 0x1a7   : > { %v2916_v49 = vadd.f32 %v2915_v47, %v2914_v44  ;;  %v3027_v50 = vpop.f32.mrb[47].mxu1 }
 0x1a8   : > { %v1455_v51 = vadd.f32 %v3025_v45, %v2913_v42  ;;  %v3028_v52 = vadd.f32 %v3027_v50, %v3026_v46 }
 0x1aa   : > { %v1515_v54 = vadd.f32 %v1455_v51, %v521_v48  ;;  %v1458_v55 = vadd.f32 %v3028_v52, %v2916_v49 }
 0x1ab   : > { %v2917_v56 = vpop.f32.mrb[48].mxu0 }
 0x1ac   : > { %1547 = vst [vmem:[#allocation2 + $0xb0] sm:$0xff] %v1515_v54  ;;  %v1516_v57 = vadd.f32 %v1458_v55, %v522_v53  ;;  %v3029_v58 = vpop.f32.mrb[48].mxu1  ;;  %v2918_v59 = vpop.f32.mrb[49].mxu0 }
 0x1ad   : > { %v2919_v60 = vadd.f32 %v2918_v59, %v2917_v56  ;;  %v3030_v61 = vpop.f32.mrb[49].mxu1  ;;  %v2920_v62 = vpop.f32.mrb[50].mxu0  ;;  %v529_v56 = vld [vmem:[#allocation2 + $0xf0] sm:$0xff] }
 0x1ae   : > { %1548 = vst [vmem:[#allocation2 + $0xb8] sm:$0xff] %v1516_v57  ;;  %v3031_v63 = vadd.f32 %v3030_v61, %v3029_v58  ;;  %v3032_v0 = vpop.f32.mrb[50].mxu1  ;;  %v2921_v1 = vpop.f32.mrb[51].mxu0  ;;  %v530_v61 = vld [vmem:[#allocation2 + $0xf8] sm:$0xff] }
 0x1af   : > { %v2922_v3 = vadd.f32 %v2921_v1, %v2920_v62  ;;  %v3033_v4 = vpop.f32.mrb[51].mxu1  ;;  %v3414_v1 = vld [vmem:[%s3992_s4] sm:$0xff] (!%p2633_p13)  }
 0x1b0   : > { %v1463_v5 = vadd.f32 %v3031_v63, %v2919_v60  ;;  %v3034_v6 = vadd.f32 %v3033_v4, %v3032_v0  ;;  %3101 = vmatprep.subr.bf16.mxu1 (!%p2633_p13), %v3414_v1  ;;  %v3417_v4 = vld [vmem:[%s3991_s3 + $0x8] sm:$0xff] (!%p2633_p13)  }
 0x1b1   : > { %3102 = vmatpush3.bf16.msra.mxu1 (!%p2633_p13), %v3414_v1  ;;  %v3441_v1 = vld [vmem:[%s3743_s18 + $0x58] sm:$0xff] (!%p2633_p13)  }
 0x1b2   : > { %v1517_v8 = vadd.f32 %v1463_v5, %v523_v2  ;;  %v1466_v9 = vadd.f32 %v3034_v6, %v2922_v3  ;;  %v3415_v2 = vld [vmem:[%s3991_s3] sm:$0xff] (!%p2633_p13)   ;;  %v3416_v3 = vld [vmem:[%s3992_s4 + $0x8] sm:$0xff] (!%p2633_p13)   ;;  %v3418_v5 = vld [vmem:[%s3992_s4 + $0x10] sm:$0xff] (!%p2633_p13)  }
 0x1b3   : > { %v2923_v10 = vpop.f32.mrb[52].mxu0  ;;  %3149 = vmatprep.subr.bf16.mxu0 (!%p2633_p13), %v3415_v2  ;;  %3103 = vmatprep.subr.bf16.mxu1 (!%p2633_p13), %v3416_v3  ;;  %v3419_v6 = vld [vmem:[%s3991_s3 + $0x10] sm:$0xff] (!%p2633_p13)  }
 0x1b4   : > { %1549 = vst [vmem:[#allocation2 + $0xc0] sm:$0xff] %v1517_v8  ;;  %v1518_v11 = vadd.f32 %v1466_v9, %v524_v7  ;;  %v3035_v12 = vpop.f32.mrb[52].mxu1  ;;  %v2924_v13 = vpop.f32.mrb[53].mxu0  ;;  %3150 = vmatpush3.bf16.msra.mxu0 (!%p2633_p13), %v3415_v2  ;;  %v3420_v7 = vld [vmem:[%s3992_s4 + $0x18] sm:$0xff] (!%p2633_p13)   ;;  %v3422_v9 = vld [vmem:[%s3992_s4 + $0x20] sm:$0xff] (!%p2633_p13)  }
 0x1b5   : > { %v2925_v14 = vadd.f32 %v2924_v13, %v2923_v10  ;;  %v3036_v15 = vpop.f32.mrb[53].mxu1  ;;  %v2926_v16 = vpop.f32.mrb[54].mxu0  ;;  %3151 = vmatprep.subr.bf16.mxu0 (!%p2633_p13), %v3417_v4  ;;  %3104 = vmatpush3.bf16.msra.mxu1 (!%p2633_p13), %v3416_v3  ;;  %v3421_v8 = vld [vmem:[%s3991_s3 + $0x18] sm:$0xff] (!%p2633_p13)   ;;  %v3423_v10 = vld [vmem:[%s3991_s3 + $0x20] sm:$0xff] (!%p2633_p13)  }
 0x1b6   : > { %1550 = vst [vmem:[#allocation2 + $0xc8] sm:$0xff] %v1518_v11  ;;  %v3037_v17 = vadd.f32 %v3036_v15, %v3035_v12  ;;  %v3038_v18 = vpop.f32.mrb[54].mxu1  ;;  %v2927_v19 = vpop.f32.mrb[55].mxu0  ;;  %3105 = vmatprep.subr.bf16.mxu1 (!%p2633_p13), %v3418_v5  ;;  %v3424_v11 = vld [vmem:[%s3992_s4 + $0x28] sm:$0xff] (!%p2633_p13)   ;;  %v3430_v13 = vld [vmem:[%s3743_s18] sm:$0xff] (!%p2633_p13)  }
 0x1b7   : > { %v2928_v21 = vadd.f32 %v2927_v19, %v2926_v16  ;;  %v3039_v22 = vpop.f32.mrb[55].mxu1  ;;  %v3425_v12 = vld [vmem:[%s3991_s3 + $0x28] sm:$0xff] (!%p2633_p13)   ;;  %3117 = vmatprep.mubr.bf16.mxu1 (!%p2633_p13), %v3430_v13  ;;  %v3428_v19 = vld [vmem:[%s3992_s4 + $0x38] sm:$0xff] (!%p2633_p13)   ;;  %v3442_v3 = vld [vmem:[%s3743_s18 + $0x60] sm:$0xff] (!%p2633_p13)  }
 0x1b8   : > { %v1471_v23 = vadd.f32 %v3037_v17, %v2925_v14  ;;  %v3040_v24 = vadd.f32 %v3039_v22, %v3038_v18  ;;  %3152 = vmatpush3.bf16.msra.mxu0 (!%p2633_p13), %v3417_v4  ;;  %v1561_v14 = vld [vmem:[#allocation2] sm:$0xff] (!%p2633_p13)  ;;  %v1562_v15 = vld [vmem:[#allocation2 + $0x8] sm:$0xff] (!%p2633_p13)  ;;  %v3426_v17 = vld [vmem:[%s3992_s4 + $0x30] sm:$0xff] (!%p2633_p13)  }
 0x1b9   : > { %3153 = vmatprep.subr.bf16.mxu0 (!%p2633_p13), %v3419_v6  ;;  %3106 = vmatpush3.bf16.msra.mxu1 (!%p2633_p13), %v3418_v5  ;;  %v1593_v16 = vpack.c.bf16 (!%p2633_p13), %v1562_v15, %v1561_v14  ;;  %v3427_v18 = vld [vmem:[%s3991_s3 + $0x30] sm:$0xff] (!%p2633_p13)   ;;  %v1564_v22 = vld [vmem:[#allocation2 + $0x18] sm:$0xff] (!%p2633_p13) }
 0x1ba   : > { %v1519_v26 = vadd.f32 %v1471_v23, %v525_v20  ;;  %v1474_v27 = vadd.f32 %v3040_v24, %v2928_v21  ;;  %3107 = vmatprep.subr.bf16.mxu1 (!%p2633_p13), %v3420_v7  ;;  %v3429_v20 = vld [vmem:[%s3991_s3 + $0x38] sm:$0xff] (!%p2633_p13)   ;;  %v1563_v21 = vld [vmem:[#allocation2 + $0x10] sm:$0xff] (!%p2633_p13)  ;;  %v1565_v23 = vld [vmem:[#allocation2 + $0x20] sm:$0xff] (!%p2633_p13) }
 0x1bb   : > { %v2929_v28 = vpop.f32.mrb[56].mxu0  ;;  %3165 = vmatprep.mubr.bf16.mxu0 (!%p2633_p13), %v1593_v16  ;;  %v1566_v24 = vld [vmem:[#allocation2 + $0x28] sm:$0xff] (!%p2633_p13)  ;;  %v3445_v15 = vld [vmem:[%s3743_s18 + $0x78] sm:$0xff] (!%p2633_p13)  }
 0x1bc   : > { %1551 = vst [vmem:[#allocation2 + $0xd0] sm:$0xff] %v1519_v26  ;;  %v1520_v29 = vadd.f32 %v1474_v27, %v526_v25  ;;  %v3041_v30 = vpop.f32.mrb[56].mxu1  ;;  %v2930_v31 = vpop.f32.mrb[57].mxu0  ;;  %3154 = vmatpush3.bf16.msra.mxu0 (!%p2633_p13), %v3419_v6  ;;  %v3431_v25 = vld [vmem:[%s3743_s18 + $0x8] sm:$0xff] (!%p2633_p13)   ;;  %v1594_v26 = vpack.c.bf16 (!%p2633_p13), %v1564_v22, %v1563_v21  ;;  %v3432_v27 = vld [vmem:[%s3743_s18 + $0x10] sm:$0xff] (!%p2633_p13)  }
 0x1bd   : > { %v2931_v32 = vadd.f32 %v2930_v31, %v2929_v28  ;;  %v3042_v33 = vpop.f32.mrb[57].mxu1  ;;  %v2932_v34 = vpop.f32.mrb[58].mxu0  ;;  %3155 = vmatprep.subr.bf16.mxu0 (!%p2633_p13), %v3421_v8  ;;  %3108 = vmatpush3.bf16.msra.mxu1 (!%p2633_p13), %v3420_v7  ;;  %v1595_v28 = vpack.c.bf16 (!%p2633_p13), %v1566_v24, %v1565_v23  ;;  %v1569_v31 = vld [vmem:[#allocation2 + $0x40] sm:$0xff] (!%p2633_p13) }
 0x1be   : > { %1552 = vst [vmem:[#allocation2 + $0xd8] sm:$0xff] %v1520_v29  ;;  %v3043_v35 = vadd.f32 %v3042_v33, %v3041_v30  ;;  %v3044_v36 = vpop.f32.mrb[58].mxu1  ;;  %v2933_v37 = vpop.f32.mrb[59].mxu0  ;;  %3109 = vmatprep.subr.bf16.mxu1 (!%p2633_p13), %v3422_v9  ;;  %v1567_v29 = vld [vmem:[#allocation2 + $0x30] sm:$0xff] (!%p2633_p13)  ;;  %v1568_v30 = vld [vmem:[#allocation2 + $0x38] sm:$0xff] (!%p2633_p13) }
 0x1bf   : > { %v2934_v39 = vadd.f32 %v2933_v37, %v2932_v34  ;;  %v3045_v40 = vpop.f32.mrb[59].mxu1  ;;  %v3433_v33 = vld [vmem:[%s3743_s18 + $0x18] sm:$0xff] (!%p2633_p13)   ;;  %v1596_v34 = vpack.c.bf16 (!%p2633_p13), %v1568_v30, %v1567_v29  ;;  %v1571_v37 = vld [vmem:[#allocation2 + $0x50] sm:$0xff] (!%p2633_p13) }
 0x1c0   : > { %v1479_v41 = vadd.f32 %v3043_v35, %v2931_v32  ;;  %v3046_v42 = vadd.f32 %v3045_v40, %v3044_v36  ;;  %3156 = vmatpush3.bf16.msra.mxu0 (!%p2633_p13), %v3421_v8  ;;  %v1570_v32 = vld [vmem:[#allocation2 + $0x48] sm:$0xff] (!%p2633_p13)  ;;  %v3434_v35 = vld [vmem:[%s3743_s18 + $0x20] sm:$0xff] (!%p2633_p13)  }
 0x1c1   : > { %3157 = vmatprep.subr.bf16.mxu0 (!%p2633_p13), %v3423_v10  ;;  %3110 = vmatpush3.bf16.msra.mxu1 (!%p2633_p13), %v3422_v9  ;;  %v1597_v36 = vpack.c.bf16 (!%p2633_p13), %v1570_v32, %v1569_v31  ;;  %v1574_v40 = vld [vmem:[#allocation2 + $0x68] sm:$0xff] (!%p2633_p13) }
 0x1c2   : > { %v1521_v44 = vadd.f32 %v1479_v41, %v527_v38  ;;  %v1482_v45 = vadd.f32 %v3046_v42, %v2934_v39  ;;  %3111 = vmatprep.subr.bf16.mxu1 (!%p2633_p13), %v3424_v11  ;;  %v1572_v38 = vld [vmem:[#allocation2 + $0x58] sm:$0xff] (!%p2633_p13)  ;;  %v1573_v39 = vld [vmem:[#allocation2 + $0x60] sm:$0xff] (!%p2633_p13)  ;;  %v3435_v41 = vld [vmem:[%s3743_s18 + $0x28] sm:$0xff] (!%p2633_p13)  }
 0x1c3   : > { %v2935_v46 = vpop.f32.mrb[60].mxu0  ;;  %v1598_v42 = vpack.c.bf16 (!%p2633_p13), %v1572_v38, %v1571_v37  ;;  %v1587_v5 = vld [vmem:[#allocation2 + $0xd0] sm:$0xff] (!%p2633_p13)  ;;  %v3443_v9 = vld [vmem:[%s3743_s18 + $0x68] sm:$0xff] (!%p2633_p13)  }
 0x1c4   : > { %1553 = vst [vmem:[#allocation2 + $0xe0] sm:$0xff] %v1521_v44  ;;  %v1522_v47 = vadd.f32 %v1482_v45, %v528_v43  ;;  %v3047_v48 = vpop.f32.mrb[60].mxu1  ;;  %v2936_v49 = vpop.f32.mrb[61].mxu0  ;;  %3158 = vmatpush3.bf16.msra.mxu0 (!%p2633_p13), %v3423_v10  ;;  %v3436_v43 = vld [vmem:[%s3743_s18 + $0x30] sm:$0xff] (!%p2633_p13)   ;;  %v1599_v44 = vpack.c.bf16 (!%p2633_p13), %v1574_v40, %v1573_v39 }
 0x1c5   : > { %v2937_v50 = vadd.f32 %v2936_v49, %v2935_v46  ;;  %v3048_v51 = vpop.f32.mrb[61].mxu1  ;;  %v2938_v52 = vpop.f32.mrb[62].mxu0  ;;  %3159 = vmatprep.subr.bf16.mxu0 (!%p2633_p13), %v3425_v12  ;;  %3112 = vmatpush3.bf16.msra.mxu1 (!%p2633_p13), %v3424_v11  ;;  %v1575_v45 = vld [vmem:[#allocation2 + $0x70] sm:$0xff] (!%p2633_p13)  ;;  %v1576_v46 = vld [vmem:[#allocation2 + $0x78] sm:$0xff] (!%p2633_p13) }
 0x1c6   : > { %1554 = vst [vmem:[#allocation2 + $0xe8] sm:$0xff] %v1522_v47  ;;  %v3049_v53 = vadd.f32 %v3048_v51, %v3047_v48  ;;  %v3050_v54 = vpop.f32.mrb[62].mxu1  ;;  %v2939_v55 = vpop.f32.mrb[63].mxu0  ;;  %3113 = vmatprep.subr.bf16.mxu1 (!%p2633_p13), %v3426_v17  ;;  %v1577_v47 = vld [vmem:[#allocation2 + $0x80] sm:$0xff] (!%p2633_p13)  ;;  %v1578_v48 = vld [vmem:[#allocation2 + $0x88] sm:$0xff] (!%p2633_p13)  ;;  %v3437_v49 = vld [vmem:[%s3743_s18 + $0x38] sm:$0xff] (!%p2633_p13)  }
 0x1c7   : > { %v2940_v57 = vadd.f32 %v2939_v55, %v2938_v52  ;;  %v3051_v58 = vpop.f32.mrb[63].mxu1  ;;  %v3438_v51 = vld [vmem:[%s3743_s18 + $0x40] sm:$0xff] (!%p2633_p13)   ;;  %v1601_v52 = vpack.c.bf16 (!%p2633_p13), %v1578_v48, %v1577_v47  ;;  %v1588_v6 = vld [vmem:[#allocation2 + $0xd8] sm:$0xff] (!%p2633_p13)  ;;  %v3444_v11 = vld [vmem:[%s3743_s18 + $0x70] sm:$0xff] (!%p2633_p13)  }
 0x1c8   : > { %v1487_v59 = vadd.f32 %v3049_v53, %v2937_v50  ;;  %v3052_v60 = vadd.f32 %v3051_v58, %v3050_v54  ;;  %1560 = sbr.rel (%p2633_p13) target bundleno = 747 (0x2eb), region = 75  ;;  %3160 = vmatpush3.bf16.msra.mxu0 (!%p2633_p13), %v3425_v12  ;;  %v1600_v50 = vpack.c.bf16 (!%p2633_p13), %v1576_v46, %v1575_v45  ;;  %v1579_v53 = vld [vmem:[#allocation2 + $0x90] sm:$0xff] (!%p2633_p13)  ;;  %v1580_v54 = vld [vmem:[#allocation2 + $0x98] sm:$0xff] (!%p2633_p13)  ;;  %v1581_v55 = vld [vmem:[#allocation2 + $0xa0] sm:$0xff] (!%p2633_p13)  ;;  %v1606_v10 = vpack.c.bf16 (!%p2633_p13), %v1588_v6, %v1587_v5 }
 0x1c9   : > { %3161 = vmatprep.subr.bf16.mxu0 (!%p2633_p13), %v3427_v18  ;;  %3114 = vmatpush3.bf16.msra.mxu1 (!%p2633_p13), %v3426_v17  ;;  %v1602_v58 = vpack.c.bf16 (!%p2633_p13), %v1580_v54, %v1579_v53 }
 0x1ca   : > { %v1523_v62 = vadd.f32 %v1487_v59, %v529_v56  ;;  %v1490_v63 = vadd.f32 %v3052_v60, %v2940_v57  ;;  %3115 = vmatprep.subr.bf16.mxu1 (!%p2633_p13), %v3428_v19  ;;  %v1582_v56 = vld [vmem:[#allocation2 + $0xa8] sm:$0xff] (!%p2633_p13)  ;;  %v3440_v59 = vld [vmem:[%s3743_s18 + $0x50] sm:$0xff] (!%p2633_p13)  }
 0x1cb   : > { %v3439_v57 = vld [vmem:[%s3743_s18 + $0x48] sm:$0xff] (!%p2633_p13)   ;;  %v1603_v60 = vpack.c.bf16 (!%p2633_p13), %v1582_v56, %v1581_v55  ;;  %v1589_v7 = vld [vmem:[#allocation2 + $0xe0] sm:$0xff] (!%p2633_p13) }
 0x1cc   : > { %1555 = vst [vmem:[#allocation2 + $0xf0] sm:$0xff] %v1523_v62  ;;  %v1524_v0 = vadd.f32 %v1490_v63, %v530_v61  ;;  %3162 = vmatpush3.bf16.msra.mxu0 (!%p2633_p13), %v3427_v18  ;;  %v1583_v61 = vld [vmem:[#allocation2 + $0xb0] sm:$0xff] (!%p2633_p13)  ;;  %v1584_v62 = vld [vmem:[#allocation2 + $0xb8] sm:$0xff] (!%p2633_p13)  ;;  %v1585_v63 = vld [vmem:[#allocation2 + $0xc0] sm:$0xff] (!%p2633_p13) }
 0x1cd   : > { %3163 = vmatprep.subr.bf16.mxu0 (!%p2633_p13), %v3429_v20  ;;  %3116 = vmatpush3.bf16.msra.mxu1 (!%p2633_p13), %v3428_v19  ;;  %v1604_v2 = vpack.c.bf16 (!%p2633_p13), %v1584_v62, %v1583_v61  ;;  %v1590_v8 = vld [vmem:[#allocation2 + $0xe8] sm:$0xff] (!%p2633_p13)  ;;  %v3917_v19 = vld [vmem:[%s3993_s5] ss:$0 sm:$0xff] (!%p2633_p13) }
 0x1ce   : > { %1556 = vst [vmem:[#allocation2 + $0xf8] sm:$0xff] %v1524_v0  ;;  %v1586_v0 = vld [vmem:[#allocation2 + $0xc8] sm:$0xff] (!%p2633_p13)  ;;  %v1607_v12 = vpack.c.bf16 (!%p2633_p13), %v1590_v8, %v1589_v7 }
 0x1cf   : > { %v1605_v4 = vpack.c.bf16 %v1586_v0, %v1585_v63 }
 0x1d0   : > { %3164 = vmatpush3.bf16.msra.mxu0 %v3429_v20  ;;  %3118 = vmatmul.mubr.bf16.vlgmr.msra.gmra.mrb[0].mxu1 %v3431_v25 }
 0x1d1   : > { %3121 = vmatprep.mubr.bf16.mxu1 %v3432_v27 }
 0x1d3   : > { %3166 = vmatmul.mubr.bf16.vlgmr.msra.gmra.mrb[0].mxu0 %v1594_v26  ;;  %v1591_v13 = vld [vmem:[#allocation2 + $0xf0] sm:$0xff] }
 0x1d4   : > { %3169 = vmatprep.mubr.bf16.mxu0 %v1595_v28 }
 0x1d5   : > { %v1592_v14 = vld [vmem:[#allocation2 + $0xf8] sm:$0xff] }
 0x1d6   : > { %v1608_v16 = vpack.c.bf16 %v1592_v14, %v1591_v13 }
 0x1d8   : > { %3122 = vmatmul.mubr.bf16.gmra.mrb[4].mxu1 %v3433_v33 }
 0x1d9   : > { %3125 = vmatprep.mubr.bf16.mxu1 %v3434_v35 }
 0x1db   : > { %3170 = vmatmul.mubr.bf16.gmra.mrb[4].mxu0 %v1596_v34 }
 0x1dc   : > { %3173 = vmatprep.mubr.bf16.mxu0 %v1597_v36 }
 0x1e0   : > { %3126 = vmatmul.mubr.bf16.gmra.mrb[8].mxu1 %v3435_v41 }
 0x1e1   : > { %3129 = vmatprep.mubr.bf16.mxu1 %v3436_v43 }
 0x1e3   : > { %3174 = vmatmul.mubr.bf16.gmra.mrb[8].mxu0 %v1598_v42 }
 0x1e4   : > { %3177 = vmatprep.mubr.bf16.mxu0 %v1599_v44 }
 0x1e8   : > { %3130 = vmatmul.mubr.bf16.gmra.mrb[12].mxu1 %v3437_v49 }
 0x1e9   : > { %3133 = vmatprep.mubr.bf16.mxu1 %v3438_v51 }
 0x1eb   : > { %3178 = vmatmul.mubr.bf16.gmra.mrb[12].mxu0 %v1600_v50 }
 0x1ec   : > { %3181 = vmatprep.mubr.bf16.mxu0 %v1601_v52 }
 0x1f0   : > { %3134 = vmatmul.mubr.bf16.gmra.mrb[16].mxu1 %v3439_v57 }
 0x1f1   : > { %3137 = vmatprep.mubr.bf16.mxu1 %v3440_v59 }
 0x1f3   : > { %3182 = vmatmul.mubr.bf16.gmra.mrb[16].mxu0 %v1602_v58 }
 0x1f4   : > { %3185 = vmatprep.mubr.bf16.mxu0 %v1603_v60 }
 0x1f8   : > { %3138 = vmatmul.mubr.bf16.gmra.mrb[20].mxu1 %v3441_v1 }
 0x1f9   : > { %3141 = vmatprep.mubr.bf16.mxu1 %v3442_v3 }
 0x1fb   : > { %3186 = vmatmul.mubr.bf16.gmra.mrb[20].mxu0 %v1604_v2 }
 0x1fc   : > { %3189 = vmatprep.mubr.bf16.mxu0 %v1605_v4 }
 0x200   : > { %3142 = vmatmul.mubr.bf16.gmra.mrb[24].mxu1 %v3443_v9 }
 0x201   : > { %3145 = vmatprep.mubr.bf16.mxu1 %v3444_v11 }
 0x203   : > { %3190 = vmatmul.mubr.bf16.gmra.mrb[24].mxu0 %v1606_v10 }
 0x204   : > { %3193 = vmatprep.mubr.bf16.mxu0 %v1607_v12 }
 0x208   : > { %3146 = vmatmul.mubr.bf16.gmra.mrb[28].mxu1 %v3445_v15 }
 0x20b   : > { %3194 = vmatmul.mubr.bf16.gmra.mrb[28].mxu0 %v1608_v16 }
 0x2a3   : > { %v3119_v17 = vpop.f32.mrb[0].mxu1 }
 0x2a4   : > { %v1851_v20 = vpop.f32.mrb[1].mxu1 }
 0x2a5   : > { %v3120_v23 = vpop.f32.mrb[2].mxu1 }
 0x2a6   : > { %v3167_v18 = vpop.f32.mrb[0].mxu0  ;;  %v1854_v26 = vpop.f32.mrb[3].mxu1 }
 0x2a7   : > { %v2069_v21 = vadd.f32 %v3167_v18, %v3119_v17  ;;  %v2060_v22 = vpop.f32.mrb[1].mxu0 }
 0x2a8   : > { %v2061_v24 = vadd.f32 %v2060_v22, %v1851_v20  ;;  %v3168_v25 = vpop.f32.mrb[2].mxu0 }
 0x2a9   : > { %v2196_v27 = vadd.f32 %v3917_v19, %v2069_v21  ;;  %v2072_v28 = vadd.f32 %v3168_v25, %v3120_v23  ;;  %v2063_v29 = vpop.f32.mrb[3].mxu0 }
 0x2aa   : > { %v2194_v30 = vadd.f32 %v3917_v19, %v2061_v24  ;;  %v2064_v31 = vadd.f32 %v2063_v29, %v1854_v26 }
 0x2ab   : > { %v2197_v32 = vadd.f32 %v3917_v19, %v2072_v28  ;;  %v2228_v34 = vmax.f32 %v2196_v27, 0.0  ;;  %v3123_v36 = vpop.f32.mrb[4].mxu1 }
 0x2ac   : > { %v2195_v33 = vadd.f32 %v3917_v19, %v2064_v31  ;;  %v2226_v37 = vmax.f32 %v2194_v30, 0.0  ;;  %v1867_v40 = vpop.f32.mrb[5].mxu1 }
 0x2ad   : > { %v2229_v35 = vmax.f32 %v2197_v32, 0.0  ;;  %v3124_v44 = vpop.f32.mrb[6].mxu1 }
 0x2ae   : > { %v2227_v38 = vmax.f32 %v2195_v33, 0.0  ;;  %v3171_v39 = vpop.f32.mrb[4].mxu0  ;;  %v1870_v48 = vpop.f32.mrb[7].mxu1 }
 0x2af   : > { %v2742_v41 = vpack.c.bf16 %v2229_v35, %v2228_v34  ;;  %v2085_v42 = vadd.f32 %v3171_v39, %v3123_v36  ;;  %v2076_v43 = vpop.f32.mrb[5].mxu0 }
 0x2b0   : > { %v2737_v45 = vpack.c.bf16 %v2227_v38, %v2226_v37  ;;  %v2077_v46 = vadd.f32 %v2076_v43, %v1867_v40  ;;  %v3172_v47 = vpop.f32.mrb[6].mxu0 }
 0x2b1   : > { %2814 = vst [vmem:[%s3748_s20 + $0x8] sm:$0xff] %v2742_v41   ;;  %v2200_v49 = vadd.f32 %v3917_v19, %v2085_v42  ;;  %v2088_v50 = vadd.f32 %v3172_v47, %v3124_v44  ;;  %v2079_v51 = vpop.f32.mrb[7].mxu0 }
 0x2b2   : > { %2738 = vst [vmem:[%s3748_s20] sm:$0xff] %v2737_v45   ;;  %v2198_v52 = vadd.f32 %v3917_v19, %v2077_v46  ;;  %v2080_v53 = vadd.f32 %v2079_v51, %v1870_v48 }
 0x2b3   : > { %v2201_v54 = vadd.f32 %v3917_v19, %v2088_v50  ;;  %v2232_v56 = vmax.f32 %v2200_v49, 0.0  ;;  %v3127_v58 = vpop.f32.mrb[8].mxu1 }
 0x2b4   : > { %v2199_v55 = vadd.f32 %v3917_v19, %v2080_v53  ;;  %v2230_v59 = vmax.f32 %v2198_v52, 0.0  ;;  %v1883_v62 = vpop.f32.mrb[9].mxu1 }
 0x2b5   : > { %v2233_v57 = vmax.f32 %v2201_v54, 0.0  ;;  %v3128_v2 = vpop.f32.mrb[10].mxu1 }
 0x2b6   : > { %v2231_v60 = vmax.f32 %v2199_v55, 0.0  ;;  %v3175_v61 = vpop.f32.mrb[8].mxu0  ;;  %v1886_v6 = vpop.f32.mrb[11].mxu1 }
 0x2b7   : > { %v2752_v63 = vpack.c.bf16 %v2233_v57, %v2232_v56  ;;  %v2101_v0 = vadd.f32 %v3175_v61, %v3127_v58  ;;  %v2092_v1 = vpop.f32.mrb[9].mxu0 }
 0x2b8   : > { %v2747_v3 = vpack.c.bf16 %v2231_v60, %v2230_v59  ;;  %v2093_v4 = vadd.f32 %v2092_v1, %v1883_v62  ;;  %v3176_v5 = vpop.f32.mrb[10].mxu0 }
 0x2b9   : > { %2816 = vst [vmem:[%s3748_s20 + $0x18] sm:$0xff] %v2752_v63   ;;  %v2204_v7 = vadd.f32 %v3917_v19, %v2101_v0  ;;  %v2104_v8 = vadd.f32 %v3176_v5, %v3128_v2  ;;  %v2095_v9 = vpop.f32.mrb[11].mxu0 }
 0x2ba   : > { %2815 = vst [vmem:[%s3748_s20 + $0x10] sm:$0xff] %v2747_v3   ;;  %v2202_v10 = vadd.f32 %v3917_v19, %v2093_v4  ;;  %v2096_v11 = vadd.f32 %v2095_v9, %v1886_v6 }
 0x2bb   : > { %v2205_v12 = vadd.f32 %v3917_v19, %v2104_v8  ;;  %v2236_v14 = vmax.f32 %v2204_v7, 0.0  ;;  %v3131_v16 = vpop.f32.mrb[12].mxu1 }
 0x2bc   : > { %v2203_v13 = vadd.f32 %v3917_v19, %v2096_v11  ;;  %v2234_v17 = vmax.f32 %v2202_v10, 0.0  ;;  %v1899_v21 = vpop.f32.mrb[13].mxu1 }
 0x2bd   : > { %v2237_v15 = vmax.f32 %v2205_v12, 0.0  ;;  %v3132_v25 = vpop.f32.mrb[14].mxu1 }
 0x2be   : > { %v2235_v18 = vmax.f32 %v2203_v13, 0.0  ;;  %v3179_v20 = vpop.f32.mrb[12].mxu0  ;;  %v1902_v29 = vpop.f32.mrb[15].mxu1 }
 0x2bf   : > { %v2762_v22 = vpack.c.bf16 %v2237_v15, %v2236_v14  ;;  %v2117_v23 = vadd.f32 %v3179_v20, %v3131_v16  ;;  %v2108_v24 = vpop.f32.mrb[13].mxu0 }
 0x2c0   : > { %v2757_v26 = vpack.c.bf16 %v2235_v18, %v2234_v17  ;;  %v2109_v27 = vadd.f32 %v2108_v24, %v1899_v21  ;;  %v3180_v28 = vpop.f32.mrb[14].mxu0 }
 0x2c1   : > { %2818 = vst [vmem:[%s3748_s20 + $0x28] sm:$0xff] %v2762_v22   ;;  %v2208_v30 = vadd.f32 %v3917_v19, %v2117_v23  ;;  %v2120_v31 = vadd.f32 %v3180_v28, %v3132_v25  ;;  %v2111_v32 = vpop.f32.mrb[15].mxu0 }
 0x2c2   : > { %2817 = vst [vmem:[%s3748_s20 + $0x20] sm:$0xff] %v2757_v26   ;;  %v2206_v33 = vadd.f32 %v3917_v19, %v2109_v27  ;;  %v2112_v34 = vadd.f32 %v2111_v32, %v1902_v29 }
 0x2c3   : > { %v2209_v35 = vadd.f32 %v3917_v19, %v2120_v31  ;;  %v2240_v37 = vmax.f32 %v2208_v30, 0.0  ;;  %v3135_v39 = vpop.f32.mrb[16].mxu1 }
 0x2c4   : > { %v2207_v36 = vadd.f32 %v3917_v19, %v2112_v34  ;;  %v2238_v40 = vmax.f32 %v2206_v33, 0.0  ;;  %v1915_v43 = vpop.f32.mrb[17].mxu1 }
 0x2c5   : > { %v2241_v38 = vmax.f32 %v2209_v35, 0.0  ;;  %v3136_v47 = vpop.f32.mrb[18].mxu1 }
 0x2c6   : > { %v2239_v41 = vmax.f32 %v2207_v36, 0.0  ;;  %v3183_v42 = vpop.f32.mrb[16].mxu0  ;;  %v1918_v51 = vpop.f32.mrb[19].mxu1 }
 0x2c7   : > { %v2772_v44 = vpack.c.bf16 %v2241_v38, %v2240_v37  ;;  %v2133_v45 = vadd.f32 %v3183_v42, %v3135_v39  ;;  %v2124_v46 = vpop.f32.mrb[17].mxu0 }
 0x2c8   : > { %v2767_v48 = vpack.c.bf16 %v2239_v41, %v2238_v40  ;;  %v2125_v49 = vadd.f32 %v2124_v46, %v1915_v43  ;;  %v3184_v50 = vpop.f32.mrb[18].mxu0 }
 0x2c9   : > { %2820 = vst [vmem:[%s3748_s20 + $0x38] sm:$0xff] %v2772_v44   ;;  %v2212_v52 = vadd.f32 %v3917_v19, %v2133_v45  ;;  %v2136_v53 = vadd.f32 %v3184_v50, %v3136_v47  ;;  %v2127_v54 = vpop.f32.mrb[19].mxu0 }
 0x2ca   : > { %2819 = vst [vmem:[%s3748_s20 + $0x30] sm:$0xff] %v2767_v48   ;;  %v2210_v55 = vadd.f32 %v3917_v19, %v2125_v49  ;;  %v2128_v56 = vadd.f32 %v2127_v54, %v1918_v51 }
 0x2cb   : > { %v2213_v57 = vadd.f32 %v3917_v19, %v2136_v53  ;;  %v2244_v59 = vmax.f32 %v2212_v52, 0.0  ;;  %v3139_v61 = vpop.f32.mrb[20].mxu1 }
 0x2cc   : > { %v2211_v58 = vadd.f32 %v3917_v19, %v2128_v56  ;;  %v2242_v62 = vmax.f32 %v2210_v55, 0.0  ;;  %v1931_v1 = vpop.f32.mrb[21].mxu1 }
 0x2cd   : > { %v2245_v60 = vmax.f32 %v2213_v57, 0.0  ;;  %v3140_v5 = vpop.f32.mrb[22].mxu1 }
 0x2ce   : > { %v2243_v63 = vmax.f32 %v2211_v58, 0.0  ;;  %v3187_v0 = vpop.f32.mrb[20].mxu0  ;;  %v1934_v9 = vpop.f32.mrb[23].mxu1 }
 0x2cf   : > { %v2782_v2 = vpack.c.bf16 %v2245_v60, %v2244_v59  ;;  %v2149_v3 = vadd.f32 %v3187_v0, %v3139_v61  ;;  %v2140_v4 = vpop.f32.mrb[21].mxu0 }
 0x2d0   : > { %v2777_v6 = vpack.c.bf16 %v2243_v63, %v2242_v62  ;;  %v2141_v7 = vadd.f32 %v2140_v4, %v1931_v1  ;;  %v3188_v8 = vpop.f32.mrb[22].mxu0 }
 0x2d1   : > { %2822 = vst [vmem:[%s3748_s20 + $0x48] sm:$0xff] %v2782_v2   ;;  %v2216_v10 = vadd.f32 %v3917_v19, %v2149_v3  ;;  %v2152_v11 = vadd.f32 %v3188_v8, %v3140_v5  ;;  %v2143_v12 = vpop.f32.mrb[23].mxu0 }
 0x2d2   : > { %2821 = vst [vmem:[%s3748_s20 + $0x40] sm:$0xff] %v2777_v6   ;;  %v2214_v13 = vadd.f32 %v3917_v19, %v2141_v7  ;;  %v2144_v14 = vadd.f32 %v2143_v12, %v1934_v9 }
 0x2d3   : > { %v2217_v15 = vadd.f32 %v3917_v19, %v2152_v11  ;;  %v2248_v17 = vmax.f32 %v2216_v10, 0.0  ;;  %v3143_v20 = vpop.f32.mrb[24].mxu1 }
 0x2d4   : > { %v2215_v16 = vadd.f32 %v3917_v19, %v2144_v14  ;;  %v2246_v21 = vmax.f32 %v2214_v13, 0.0  ;;  %v1947_v24 = vpop.f32.mrb[25].mxu1 }
 0x2d5   : > { %v2249_v18 = vmax.f32 %v2217_v15, 0.0  ;;  %v3144_v28 = vpop.f32.mrb[26].mxu1 }
 0x2d6   : > { %v2247_v22 = vmax.f32 %v2215_v16, 0.0  ;;  %v3191_v23 = vpop.f32.mrb[24].mxu0  ;;  %v1950_v32 = vpop.f32.mrb[27].mxu1 }
 0x2d7   : > { %v2792_v25 = vpack.c.bf16 %v2249_v18, %v2248_v17  ;;  %v2165_v26 = vadd.f32 %v3191_v23, %v3143_v20  ;;  %v2156_v27 = vpop.f32.mrb[25].mxu0 }
 0x2d8   : > { %v2787_v29 = vpack.c.bf16 %v2247_v22, %v2246_v21  ;;  %v2157_v30 = vadd.f32 %v2156_v27, %v1947_v24  ;;  %v3192_v31 = vpop.f32.mrb[26].mxu0 }
 0x2d9   : > { %2824 = vst [vmem:[%s3748_s20 + $0x58] sm:$0xff] %v2792_v25   ;;  %v2220_v33 = vadd.f32 %v3917_v19, %v2165_v26  ;;  %v2168_v34 = vadd.f32 %v3192_v31, %v3144_v28  ;;  %v2159_v35 = vpop.f32.mrb[27].mxu0 }
 0x2da   : > { %2823 = vst [vmem:[%s3748_s20 + $0x50] sm:$0xff] %v2787_v29   ;;  %v2218_v36 = vadd.f32 %v3917_v19, %v2157_v30  ;;  %v2160_v37 = vadd.f32 %v2159_v35, %v1950_v32 }
 0x2db   : > { %v2221_v38 = vadd.f32 %v3917_v19, %v2168_v34  ;;  %v2252_v40 = vmax.f32 %v2220_v33, 0.0  ;;  %v3147_v42 = vpop.f32.mrb[28].mxu1 }
 0x2dc   : > { %v2219_v39 = vadd.f32 %v3917_v19, %v2160_v37  ;;  %v2250_v43 = vmax.f32 %v2218_v36, 0.0  ;;  %v1963_v46 = vpop.f32.mrb[29].mxu1 }
 0x2dd   : > { %v2253_v41 = vmax.f32 %v2221_v38, 0.0  ;;  %v3148_v50 = vpop.f32.mrb[30].mxu1 }
 0x2de   : > { %v2251_v44 = vmax.f32 %v2219_v39, 0.0  ;;  %v3195_v45 = vpop.f32.mrb[28].mxu0  ;;  %v1966_v54 = vpop.f32.mrb[31].mxu1 }
 0x2df   : > { %v2802_v47 = vpack.c.bf16 %v2253_v41, %v2252_v40  ;;  %v2181_v48 = vadd.f32 %v3195_v45, %v3147_v42  ;;  %v2172_v49 = vpop.f32.mrb[29].mxu0 }
 0x2e0   : > { %v2797_v51 = vpack.c.bf16 %v2251_v44, %v2250_v43  ;;  %v2173_v52 = vadd.f32 %v2172_v49, %v1963_v46  ;;  %v3196_v53 = vpop.f32.mrb[30].mxu0 }
 0x2e1   : > { %2826 = vst [vmem:[%s3748_s20 + $0x68] sm:$0xff] %v2802_v47   ;;  %v2224_v55 = vadd.f32 %v3917_v19, %v2181_v48  ;;  %v2184_v56 = vadd.f32 %v3196_v53, %v3148_v50  ;;  %v2175_v57 = vpop.f32.mrb[31].mxu0 }
 0x2e2   : > { %2825 = vst [vmem:[%s3748_s20 + $0x60] sm:$0xff] %v2797_v51   ;;  %v2222_v58 = vadd.f32 %v3917_v19, %v2173_v52  ;;  %v2176_v59 = vadd.f32 %v2175_v57, %v1966_v54 }
 0x2e3   : > { %v2225_v60 = vadd.f32 %v3917_v19, %v2184_v56  ;;  %v2256_v62 = vmax.f32 %v2224_v55, 0.0 }
 0x2e4   : > { %v2223_v61 = vadd.f32 %v3917_v19, %v2176_v59  ;;  %v2254_v0 = vmax.f32 %v2222_v58, 0.0 }
 0x2e5   : > { %v2257_v63 = vmax.f32 %v2225_v60, 0.0 }
 0x2e6   : > { %v2255_v1 = vmax.f32 %v2223_v61, 0.0 }
 0x2e7   : > { %v2812_v2 = vpack.c.bf16 %v2257_v63, %v2256_v62 }
 0x2e8   : > { %v2807_v3 = vpack.c.bf16 %v2255_v1, %v2254_v0 }
 0x2e9   : > { %2828 = vst [vmem:[%s3748_s20 + $0x78] sm:$0xff] %v2812_v2  }
 0x2ea   : > { %2827 = vst [vmem:[%s3748_s20 + $0x70] sm:$0xff] %v2807_v3  }
 0x2eb PF: > { %s16_s27 = sadd.s32 1, %s3500_s27   ;;  %s3995_s21 = smov %s3480_s22 }
 0x2ec   : > { %p13_p0 = scmp.ge.s32.totalorder %s16_s27, 10   ;;  %s3996_s22 = smov %s3589_s10 }
 0x2ed   : > { %s3997_s23 = smov %s3492_s25  ;;  %s3998_s24 = smov %s3496_s26 }
 0x2ee   : > { %s3999_s25 = smov %s4002_s28  ;;  %s4000_s26 = smov %s4006_s29 }
 0x2ef   :  { %15 = sbr.rel (!%p13_p0) target bundleno = 4 (0x4), region = 116 }

// kernel: graphsage_forward.3
= control target key start
LH: loop header
LB: loop body
LE: loop exit
PB: predicated region body
PF: predicated region fallthrough
CT: control target
= control target key end

     0   :  { %s4572_s0 = inlined_call_operand.vmem [shape: bf16[1024,1024], index: 0, kind: input, shape index: {}]   ;;  %s4573_s1 = inlined_call_operand.vmem [shape: bf16[1024,128], index: 1, kind: input, shape index: {}, may-alias: {1,2}]   ;;  %s4574_s2 = inlined_call_operand.vmem [shape: bf16[1024,128], index: 2, kind: input, shape index: {}, may-alias: {1,2}]   ;;  %s4575_s3 = inlined_call_operand.vmem [shape: bf16[128,128], index: 3, kind: input, shape index: {}]   ;;  %s4576_s4 = inlined_call_operand.vmem [shape: bf16[128,128], index: 4, kind: input, shape index: {}]   ;;  %s4577_s5 = inlined_call_operand.vmem [shape: f32[1,128], index: 5, kind: input, shape index: {}]   ;;  %s4578_s6 = inlined_call_operand.vmem [shape: bf16[128,128], index: 6, kind: input, shape index: {}]   ;;  %s4579_s7 = inlined_call_operand.vmem [shape: f32[1,128], index: 7, kind: input, shape index: {}]   ;;  %s4580_s8 = inlined_call_operand.vmem [shape: bf16[1,128], index: 8, kind: input, shape index: {}]   ;;  %s4581_s9 = inlined_call_operand.<no memory space> [shape: f32[1], index: 9, kind: input, shape index: {}]   ;;  %s4582_s10 = inlined_call_operand.hbm [shape: f32[4,1,256], index: 10, kind: output, shape index: {}]  }
   0x1   :  { %4591 = sst [smem:[#allocation14_spill]] %s4572_s0 }
   0x2   :  { %4592 = sst [smem:[#allocation15_spill]] %s4582_s10 }
   0x3   :  { %15 = sst [smem:[#allocation3]] %s4581_s9 }
   0x4   :  { %16 = vsyncpa [#allocation6], 0 }
   0x5   :  { %18 = vsyncpa [#allocation6 + $0x1], 0  ;;  %s3912_s15 = smov 0   ;;  %s3914_s16 = smov 0  }
   0x6   :  { %s3916_s17 = smov 0   ;;  %s3918_s18 = smov 0  }
   0x7   :  { %s3920_s19 = smov 0   ;;  %s3922_s20 = smov 0  }
   0x8   :  { %s3924_s21 = smov 0   ;;  %s3926_s22 = smov 0  }
   0x9   :  { %s3928_s23 = smov 0   ;;  %s3930_s9 = smov 0  }
   0xa LB: > { %4593 = sst [smem:[#allocation8_spill]] %s3813_s15  ;;  %s2813_s24 = sadd.s32 4294967295, %s3849_s9   ;;  %s3849_s9 = sphi %s3930_s9, %s24_s9   ;;  %s3845_s23 = sphi %s3928_s23, %s4610_s23   ;;  %s3841_s22 = sphi %s3926_s22, %s4609_s22   ;;  %s3837_s21 = sphi %s3924_s21, %s4608_s21   ;;  %s3833_s20 = sphi %s3922_s20, %s4607_s20   ;;  %s3829_s19 = sphi %s3920_s19, %s4615_s19   ;;  %s3825_s18 = sphi %s3918_s18, %s4614_s18   ;;  %s3821_s17 = sphi %s3916_s17, %s4613_s17   ;;  %s3817_s16 = sphi %s3914_s16, %s4612_s16   ;;  %s3813_s15 = sphi %s3912_s15, %s4611_s15  }
   0xb   : > { %4594 = sst [smem:[#allocation9_spill]] %s3841_s22  ;;  %s2814_s25 = sadd.s32 4294967294, %s3849_s9  }
   0xc   : > { %4595 = sst [smem:[#allocation10_spill]] %s3845_s23  ;;  %s33_s26 = sadd.s32 1, %s3841_s22 }
   0xd   : > { %s36_s27 = sadd.s32 1, %s3845_s23  ;;  %p34_p0 = scmp.ge.s32.totalorder %s33_s26, 2 }
   0xe   : > { %s45_s28 = sadd.s32 1, %s3829_s19  ;;  %p52_p1 = scmp.ne.s32.totalorder %s3829_s19, %s3825_s18 }
   0xf   : > { %p53_p2 = scmp.eq.s32.totalorder %s3849_s9, 0  ;;  %s4617_s26 = smov (%p34_p0, %s33_s26), 0 }
  0x10   : > { %4596 = sst [smem:[#allocation11_spill]] %s4617_s26  ;;  %s4619_s27 = smov (!%p34_p0, %s36_s27), %s3845_s23 }
  0x11   : > { %s41_s29 = ssub.s32 %s3841_s22, %s4617_s26  ;;  %p3975_p3 = por %p53_p2, %p52_p1 }
  0x12   : > { %p38_p4 = scmp.ge.s32.totalorder %s4619_s27, 4  ;;  %s270_s11 = sadd.s32 1, %s3821_s17 }
  0x13   : > { %p280_p5 = scmp.ne.s32.totalorder %s3821_s17, %s3817_s16  ;;  %p281_p6 = scmp.eq.s32.totalorder %s2813_s24, 7 }
  0x14   : > { %s4621_s27 = smov (%p38_p4, %s4619_s27), 0  ;;  %p286_p8 = scmp.ne.s32.totalorder %s3817_s16, %s3813_s15 }
  0x15   : > { %4598 = sst [smem:[#allocation12_spill]] %s4621_s27  ;;  %p3984_p7 = por %p281_p6, %p280_p5 }
  0x16   : > { %s40_s13 = ssub.s32 %s3845_s23, %s4621_s27  ;;  %p287_p9 = scmp.eq.s32.totalorder %s2814_s25, 7 }
  0x17   : > { %s42_s14 = sor.u32 %s41_s29, %s40_s13  ;;  %p268_p10 = scmp.eq.s32.totalorder %s40_s13, 0 }
  0x18   : > { %p43_p11 = scmp.eq.s32.totalorder %s42_s14, 0  ;;  %p3992_p12 = por %p287_p9, %p286_p8 }
  0x19   : > { %s3997_s10 = scalar_select %p268_p10, %s3821_s17, %s270_s11  }
  0x1a   : > { %s4600_s26 = scalar_select %p3992_p12, 1, 0 }
  0x1b   : > { %s4000_s24 = scalar_select %p43_p11, %s3829_s19, %s45_s28  }
  0x1c   : > { %4601 = sst [smem:[#allocation13_spill]] %s4600_s26  ;;  %p2816_p13 = scmp.ge.s32.totalorder %s3849_s9, 8 }
  0x1e   : > { %324 = sbr.rel (%p2816_p13) target bundleno = 79 (0x4f), region = 44 }
  0x25   : > { %327 = sbr.rel (!%p3975_p3) target bundleno = 79 (0x4f), region = 48  ;;  %s329_s25 = sand.u32 (%p3975_p3), 1, %s3829_s19  }
  0x26   : > { %s2819_s29 = sshll.u32 (%p3975_p3), %s3841_s22, 2  ;;  %s2817_s13 = sshll.u32 (%p3975_p3), %s329_s25, 9 }
  0x27   : > { %s2974_s14 = sshll.u32 (%p3975_p3), %s3845_s23, 8  ;;  %s4602_s0 = sld [smem:[#allocation14_spill]] (%p3975_p3) }
  0x28   : > { %s335_s27 = sadd.s32 (%p3975_p3), %s2974_s14, %s2819_s29  ;;  %s4016_s30 = scalar_lea.vmem (%p3975_p3), [#allocation4], %s2817_s13 }
  0x29   : > { %s2821_s15 = sshll.u32 (%p3975_p3), %s335_s27, 2 }
  0x2d   : > { %s4011_s28 = scalar_lea.vmem %s4602_s0, %s2821_s15 }
  0x2e   : > { %v350_v0 = vld [vmem:[%s4011_s28] sm:$0xff]  ;;  %v352_v1 = vld [vmem:[%s4011_s28 + $0x8] sm:$0xff] }
  0x2f   : > { %v354_v2 = vld [vmem:[%s4011_s28 + $0x20] sm:$0xff]  ;;  %351 = vst [vmem:[%s4016_s30] sm:$0xff] %v350_v0  ;;  %353 = vst [vmem:[%s4016_s30 + $0x8] sm:$0xff] %v352_v1  ;;  %v356_v3 = vld [vmem:[%s4011_s28 + $0x28] sm:$0xff] }
  0x30   : > { %355 = vst [vmem:[%s4016_s30 + $0x10] sm:$0xff] %v354_v2  ;;  %v358_v4 = vld [vmem:[%s4011_s28 + $0x40] sm:$0xff]  ;;  %v360_v5 = vld [vmem:[%s4011_s28 + $0x48] sm:$0xff]  ;;  %357 = vst [vmem:[%s4016_s30 + $0x18] sm:$0xff] %v356_v3 }
  0x31   : > { %359 = vst [vmem:[%s4016_s30 + $0x20] sm:$0xff] %v358_v4  ;;  %361 = vst [vmem:[%s4016_s30 + $0x28] sm:$0xff] %v360_v5  ;;  %v362_v6 = vld [vmem:[%s4011_s28 + $0x60] sm:$0xff]  ;;  %v364_v7 = vld [vmem:[%s4011_s28 + $0x68] sm:$0xff] }
  0x32   : > { %v366_v8 = vld [vmem:[%s4011_s28 + $0x80] sm:$0xff]  ;;  %363 = vst [vmem:[%s4016_s30 + $0x30] sm:$0xff] %v362_v6  ;;  %365 = vst [vmem:[%s4016_s30 + $0x38] sm:$0xff] %v364_v7  ;;  %v368_v9 = vld [vmem:[%s4011_s28 + $0x88] sm:$0xff] }
  0x33   : > { %367 = vst [vmem:[%s4016_s30 + $0x40] sm:$0xff] %v366_v8  ;;  %v370_v10 = vld [vmem:[%s4011_s28 + $0xa0] sm:$0xff]  ;;  %v372_v11 = vld [vmem:[%s4011_s28 + $0xa8] sm:$0xff]  ;;  %369 = vst [vmem:[%s4016_s30 + $0x48] sm:$0xff] %v368_v9 }
  0x34   : > { %371 = vst [vmem:[%s4016_s30 + $0x50] sm:$0xff] %v370_v10  ;;  %373 = vst [vmem:[%s4016_s30 + $0x58] sm:$0xff] %v372_v11  ;;  %v374_v12 = vld [vmem:[%s4011_s28 + $0xc0] sm:$0xff]  ;;  %v376_v13 = vld [vmem:[%s4011_s28 + $0xc8] sm:$0xff] }
  0x35   : > { %v378_v14 = vld [vmem:[%s4011_s28 + $0xe0] sm:$0xff]  ;;  %375 = vst [vmem:[%s4016_s30 + $0x60] sm:$0xff] %v374_v12  ;;  %377 = vst [vmem:[%s4016_s30 + $0x68] sm:$0xff] %v376_v13  ;;  %v380_v15 = vld [vmem:[%s4011_s28 + $0xe8] sm:$0xff] }
  0x36   : > { %379 = vst [vmem:[%s4016_s30 + $0x70] sm:$0xff] %v378_v14  ;;  %v382_v16 = vld [vmem:[%s4011_s28 + $0x100] sm:$0xff]  ;;  %v384_v17 = vld [vmem:[%s4011_s28 + $0x108] sm:$0xff]  ;;  %381 = vst [vmem:[%s4016_s30 + $0x78] sm:$0xff] %v380_v15 }
  0x37   : > { %383 = vst [vmem:[%s4016_s30 + $0x80] sm:$0xff] %v382_v16  ;;  %385 = vst [vmem:[%s4016_s30 + $0x88] sm:$0xff] %v384_v17  ;;  %v386_v18 = vld [vmem:[%s4011_s28 + $0x120] sm:$0xff]  ;;  %v388_v19 = vld [vmem:[%s4011_s28 + $0x128] sm:$0xff] }
  0x38   : > { %v390_v20 = vld [vmem:[%s4011_s28 + $0x140] sm:$0xff]  ;;  %387 = vst [vmem:[%s4016_s30 + $0x90] sm:$0xff] %v386_v18  ;;  %389 = vst [vmem:[%s4016_s30 + $0x98] sm:$0xff] %v388_v19  ;;  %v392_v21 = vld [vmem:[%s4011_s28 + $0x148] sm:$0xff] }
  0x39   : > { %391 = vst [vmem:[%s4016_s30 + $0xa0] sm:$0xff] %v390_v20  ;;  %v394_v22 = vld [vmem:[%s4011_s28 + $0x160] sm:$0xff]  ;;  %v396_v23 = vld [vmem:[%s4011_s28 + $0x168] sm:$0xff]  ;;  %393 = vst [vmem:[%s4016_s30 + $0xa8] sm:$0xff] %v392_v21 }
  0x3a   : > { %395 = vst [vmem:[%s4016_s30 + $0xb0] sm:$0xff] %v394_v22  ;;  %397 = vst [vmem:[%s4016_s30 + $0xb8] sm:$0xff] %v396_v23  ;;  %v398_v24 = vld [vmem:[%s4011_s28 + $0x180] sm:$0xff]  ;;  %v400_v25 = vld [vmem:[%s4011_s28 + $0x188] sm:$0xff] }
  0x3b   : > { %v402_v26 = vld [vmem:[%s4011_s28 + $0x1a0] sm:$0xff]  ;;  %399 = vst [vmem:[%s4016_s30 + $0xc0] sm:$0xff] %v398_v24  ;;  %401 = vst [vmem:[%s4016_s30 + $0xc8] sm:$0xff] %v400_v25  ;;  %v404_v27 = vld [vmem:[%s4011_s28 + $0x1a8] sm:$0xff] }
  0x3c   : > { %403 = vst [vmem:[%s4016_s30 + $0xd0] sm:$0xff] %v402_v26  ;;  %v406_v28 = vld [vmem:[%s4011_s28 + $0x1c0] sm:$0xff]  ;;  %v408_v29 = vld [vmem:[%s4011_s28 + $0x1c8] sm:$0xff]  ;;  %405 = vst [vmem:[%s4016_s30 + $0xd8] sm:$0xff] %v404_v27 }
  0x3d   : > { %407 = vst [vmem:[%s4016_s30 + $0xe0] sm:$0xff] %v406_v28  ;;  %409 = vst [vmem:[%s4016_s30 + $0xe8] sm:$0xff] %v408_v29  ;;  %v410_v30 = vld [vmem:[%s4011_s28 + $0x1e0] sm:$0xff]  ;;  %v412_v31 = vld [vmem:[%s4011_s28 + $0x1e8] sm:$0xff] }
  0x3e   : > { %v414_v32 = vld [vmem:[%s4011_s28 + $0x200] sm:$0xff]  ;;  %411 = vst [vmem:[%s4016_s30 + $0xf0] sm:$0xff] %v410_v30  ;;  %413 = vst [vmem:[%s4016_s30 + $0xf8] sm:$0xff] %v412_v31  ;;  %v416_v33 = vld [vmem:[%s4011_s28 + $0x208] sm:$0xff] }
  0x3f   : > { %415 = vst [vmem:[%s4016_s30 + $0x100] sm:$0xff] %v414_v32  ;;  %v418_v34 = vld [vmem:[%s4011_s28 + $0x220] sm:$0xff]  ;;  %v420_v35 = vld [vmem:[%s4011_s28 + $0x228] sm:$0xff]  ;;  %417 = vst [vmem:[%s4016_s30 + $0x108] sm:$0xff] %v416_v33 }
  0x40   : > { %419 = vst [vmem:[%s4016_s30 + $0x110] sm:$0xff] %v418_v34  ;;  %421 = vst [vmem:[%s4016_s30 + $0x118] sm:$0xff] %v420_v35  ;;  %v422_v36 = vld [vmem:[%s4011_s28 + $0x240] sm:$0xff]  ;;  %v424_v37 = vld [vmem:[%s4011_s28 + $0x248] sm:$0xff] }
  0x41   : > { %v426_v38 = vld [vmem:[%s4011_s28 + $0x260] sm:$0xff]  ;;  %423 = vst [vmem:[%s4016_s30 + $0x120] sm:$0xff] %v422_v36  ;;  %425 = vst [vmem:[%s4016_s30 + $0x128] sm:$0xff] %v424_v37  ;;  %v428_v39 = vld [vmem:[%s4011_s28 + $0x268] sm:$0xff] }
  0x42   : > { %427 = vst [vmem:[%s4016_s30 + $0x130] sm:$0xff] %v426_v38  ;;  %v430_v40 = vld [vmem:[%s4011_s28 + $0x280] sm:$0xff]  ;;  %v432_v41 = vld [vmem:[%s4011_s28 + $0x288] sm:$0xff]  ;;  %429 = vst [vmem:[%s4016_s30 + $0x138] sm:$0xff] %v428_v39 }
  0x43   : > { %431 = vst [vmem:[%s4016_s30 + $0x140] sm:$0xff] %v430_v40  ;;  %433 = vst [vmem:[%s4016_s30 + $0x148] sm:$0xff] %v432_v41  ;;  %v434_v42 = vld [vmem:[%s4011_s28 + $0x2a0] sm:$0xff]  ;;  %v436_v43 = vld [vmem:[%s4011_s28 + $0x2a8] sm:$0xff] }
  0x44   : > { %v438_v44 = vld [vmem:[%s4011_s28 + $0x2c0] sm:$0xff]  ;;  %435 = vst [vmem:[%s4016_s30 + $0x150] sm:$0xff] %v434_v42  ;;  %437 = vst [vmem:[%s4016_s30 + $0x158] sm:$0xff] %v436_v43  ;;  %v440_v45 = vld [vmem:[%s4011_s28 + $0x2c8] sm:$0xff] }
  0x45   : > { %439 = vst [vmem:[%s4016_s30 + $0x160] sm:$0xff] %v438_v44  ;;  %v442_v46 = vld [vmem:[%s4011_s28 + $0x2e0] sm:$0xff]  ;;  %v444_v47 = vld [vmem:[%s4011_s28 + $0x2e8] sm:$0xff]  ;;  %441 = vst [vmem:[%s4016_s30 + $0x168] sm:$0xff] %v440_v45 }
  0x46   : > { %443 = vst [vmem:[%s4016_s30 + $0x170] sm:$0xff] %v442_v46  ;;  %445 = vst [vmem:[%s4016_s30 + $0x178] sm:$0xff] %v444_v47  ;;  %v446_v48 = vld [vmem:[%s4011_s28 + $0x300] sm:$0xff]  ;;  %v448_v49 = vld [vmem:[%s4011_s28 + $0x308] sm:$0xff] }
  0x47   : > { %v450_v50 = vld [vmem:[%s4011_s28 + $0x320] sm:$0xff]  ;;  %447 = vst [vmem:[%s4016_s30 + $0x180] sm:$0xff] %v446_v48  ;;  %449 = vst [vmem:[%s4016_s30 + $0x188] sm:$0xff] %v448_v49  ;;  %v452_v51 = vld [vmem:[%s4011_s28 + $0x328] sm:$0xff] }
  0x48   : > { %451 = vst [vmem:[%s4016_s30 + $0x190] sm:$0xff] %v450_v50  ;;  %v454_v52 = vld [vmem:[%s4011_s28 + $0x340] sm:$0xff]  ;;  %v456_v53 = vld [vmem:[%s4011_s28 + $0x348] sm:$0xff]  ;;  %453 = vst [vmem:[%s4016_s30 + $0x198] sm:$0xff] %v452_v51 }
  0x49   : > { %455 = vst [vmem:[%s4016_s30 + $0x1a0] sm:$0xff] %v454_v52  ;;  %457 = vst [vmem:[%s4016_s30 + $0x1a8] sm:$0xff] %v456_v53  ;;  %v458_v54 = vld [vmem:[%s4011_s28 + $0x360] sm:$0xff]  ;;  %v460_v55 = vld [vmem:[%s4011_s28 + $0x368] sm:$0xff] }
  0x4a   : > { %v462_v56 = vld [vmem:[%s4011_s28 + $0x380] sm:$0xff]  ;;  %459 = vst [vmem:[%s4016_s30 + $0x1b0] sm:$0xff] %v458_v54  ;;  %461 = vst [vmem:[%s4016_s30 + $0x1b8] sm:$0xff] %v460_v55  ;;  %v464_v57 = vld [vmem:[%s4011_s28 + $0x388] sm:$0xff] }
  0x4b   : > { %463 = vst [vmem:[%s4016_s30 + $0x1c0] sm:$0xff] %v462_v56  ;;  %v466_v58 = vld [vmem:[%s4011_s28 + $0x3a0] sm:$0xff]  ;;  %v468_v59 = vld [vmem:[%s4011_s28 + $0x3a8] sm:$0xff]  ;;  %465 = vst [vmem:[%s4016_s30 + $0x1c8] sm:$0xff] %v464_v57 }
  0x4c   : > { %467 = vst [vmem:[%s4016_s30 + $0x1d0] sm:$0xff] %v466_v58  ;;  %469 = vst [vmem:[%s4016_s30 + $0x1d8] sm:$0xff] %v468_v59  ;;  %v470_v60 = vld [vmem:[%s4011_s28 + $0x3c0] sm:$0xff]  ;;  %v472_v61 = vld [vmem:[%s4011_s28 + $0x3c8] sm:$0xff] }
  0x4d   : > { %v474_v62 = vld [vmem:[%s4011_s28 + $0x3e0] sm:$0xff]  ;;  %471 = vst [vmem:[%s4016_s30 + $0x1e0] sm:$0xff] %v470_v60  ;;  %473 = vst [vmem:[%s4016_s30 + $0x1e8] sm:$0xff] %v472_v61  ;;  %v476_v63 = vld [vmem:[%s4011_s28 + $0x3e8] sm:$0xff] }
  0x4e   : > { %475 = vst [vmem:[%s4016_s30 + $0x1f0] sm:$0xff] %v474_v62  ;;  %477 = vst [vmem:[%s4016_s30 + $0x1f8] sm:$0xff] %v476_v63 }
  0x4f PF: > { %p2822_p0 = scmp.ge.s32.totalorder %s3849_s9, 1  ;;  %p500_p1 = scmp.lt.s32.totalorder %s3849_s9, 9 }
  0x51   : > { %p501_p2 = pnand %p2822_p0, %p500_p1 }
  0x52   : > { %s507_s15 = sand.u32 (!%p501_p2), 1, %s3825_s18   ;;  %s4588_s26 = sand.u32 (!%p501_p2), 1, %s3817_s16  }
  0x53   : > { %504 = sbr.rel (%p501_p2) target bundleno = 1306 (0x51a), region = 79  ;;  %s2823_s27 = sshll.u32 (!%p501_p2), %s507_s15, 9 }
  0x54   : > { %s4149_s25 = sshll.u32 (!%p501_p2), %s4588_s26, 1  ;;  %s2825_s29 = sshll.u32 (!%p501_p2), %s3833_s20, 6 }
  0x55   : > { %s4153_s13 = sshll.u32 (!%p501_p2), %s3837_s21, 5  ;;  %p557_p3 = scmp.lt.s32.totalorder (!%p501_p2), %s2825_s29, 127 }
  0x56   : > { %p563_p4 = scmp.lt.s32.totalorder (!%p501_p2), %s4153_s13, 127  ;;  %s4167_s21 = scalar_lea.vmem (!%p501_p2), [#allocation4], %s2823_s27 }
  0x57   : > { %s553_s22 = scalar_lea.vmem (!%p501_p2), [#allocation5], %s4149_s25  ;;  %p2829_p5 = scmp.ne.s32.totalorder (!%p501_p2), %s3833_s20, 0 }
  0x5a   : > { %s4623_s29 = smov (!%p557_p3, %s2825_s29), 127  ;;  %572 = sbr.rel (%p2829_p5) target bundleno = 109 (0x6d), region = 87 }
  0x5b   : > { %s564_s14 = scalar_select %p563_p4, %s4153_s13, 127 }
  0x5c   : > { %s2826_s11 = sshll.u32 %s4623_s29, 2  ;;  %v3851_v0 = vmov (!%p2829_p5), 0.0  }
  0x5d   : > { %s4160_s18 = scalar_lea.vmem %s4573_s1, %s2826_s11  ;;  %s2828_s15 = sshll.u32 %s564_s14, 2  ;;  %573 = vst [vmem:[#allocation2] sm:$0xff] (!%p2829_p5), %v3851_v0  ;;  %574 = vst [vmem:[#allocation2 + $0x8] sm:$0xff] (!%p2829_p5), %v3851_v0 }
  0x5e   : > { %s4165_s23 = scalar_lea.vmem %s4574_s2, %s2828_s15  ;;  %575 = vst [vmem:[#allocation2 + $0x10] sm:$0xff] (!%p2829_p5), %v3851_v0  ;;  %576 = vst [vmem:[#allocation2 + $0x18] sm:$0xff] (!%p2829_p5), %v3851_v0 }
  0x5f   : > { %577 = vst [vmem:[#allocation2 + $0x20] sm:$0xff] (!%p2829_p5), %v3851_v0  ;;  %578 = vst [vmem:[#allocation2 + $0x28] sm:$0xff] (!%p2829_p5), %v3851_v0 }
  0x60   : > { %579 = vst [vmem:[#allocation2 + $0x30] sm:$0xff] (!%p2829_p5), %v3851_v0  ;;  %580 = vst [vmem:[#allocation2 + $0x38] sm:$0xff] (!%p2829_p5), %v3851_v0 }
  0x61   : > { %581 = vst [vmem:[#allocation2 + $0x40] sm:$0xff] %v3851_v0  ;;  %582 = vst [vmem:[#allocation2 + $0x48] sm:$0xff] %v3851_v0 }
  0x62   : > { %583 = vst [vmem:[#allocation2 + $0x50] sm:$0xff] %v3851_v0  ;;  %584 = vst [vmem:[#allocation2 + $0x58] sm:$0xff] %v3851_v0 }
  0x63   : > { %585 = vst [vmem:[#allocation2 + $0x60] sm:$0xff] %v3851_v0  ;;  %586 = vst [vmem:[#allocation2 + $0x68] sm:$0xff] %v3851_v0 }
  0x64   : > { %587 = vst [vmem:[#allocation2 + $0x70] sm:$0xff] %v3851_v0  ;;  %588 = vst [vmem:[#allocation2 + $0x78] sm:$0xff] %v3851_v0 }
  0x65   : > { %589 = vst [vmem:[#allocation2 + $0x80] sm:$0xff] %v3851_v0  ;;  %590 = vst [vmem:[#allocation2 + $0x88] sm:$0xff] %v3851_v0 }
  0x66   : > { %591 = vst [vmem:[#allocation2 + $0x90] sm:$0xff] %v3851_v0  ;;  %592 = vst [vmem:[#allocation2 + $0x98] sm:$0xff] %v3851_v0 }
  0x67   : > { %593 = vst [vmem:[#allocation2 + $0xa0] sm:$0xff] %v3851_v0  ;;  %594 = vst [vmem:[#allocation2 + $0xa8] sm:$0xff] %v3851_v0 }
  0x68   : > { %595 = vst [vmem:[#allocation2 + $0xb0] sm:$0xff] %v3851_v0  ;;  %596 = vst [vmem:[#allocation2 + $0xb8] sm:$0xff] %v3851_v0 }
  0x69   : > { %597 = vst [vmem:[#allocation2 + $0xc0] sm:$0xff] %v3851_v0  ;;  %598 = vst [vmem:[#allocation2 + $0xc8] sm:$0xff] %v3851_v0 }
  0x6a   : > { %599 = vst [vmem:[#allocation2 + $0xd0] sm:$0xff] %v3851_v0  ;;  %600 = vst [vmem:[#allocation2 + $0xd8] sm:$0xff] %v3851_v0 }
  0x6b   : > { %601 = vst [vmem:[#allocation2 + $0xe0] sm:$0xff] %v3851_v0  ;;  %602 = vst [vmem:[#allocation2 + $0xe8] sm:$0xff] %v3851_v0 }
  0x6c   : > { %603 = vst [vmem:[#allocation2 + $0xf0] sm:$0xff] %v3851_v0  ;;  %604 = vst [vmem:[#allocation2 + $0xf8] sm:$0xff] %v3851_v0 }
  0x6d PF: > { %v3571_v1 = vld [vmem:[%s4160_s18 + $0x40] sm:$0xff]   ;;  %v3575_v5 = vld [vmem:[%s4160_s18 + $0x48] sm:$0xff]   ;;  %v3579_v9 = vld [vmem:[%s4160_s18 + $0x50] sm:$0xff]   ;;  %p2926_p6 = scmp.ne.s32.totalorder %s3833_s20, 1 }
  0x6e   : > { %v3572_v2 = vld [vmem:[%s4160_s18 + $0xc0] sm:$0xff]   ;;  %2976 = vmatprep.subr.bf16.mxu0 %v3571_v1  ;;  %v3576_v6 = vld [vmem:[%s4160_s18 + $0xc8] sm:$0xff]   ;;  %v3580_v10 = vld [vmem:[%s4160_s18 + $0xd0] sm:$0xff]   ;;  %s2629_s11 = sld [smem:[#allocation3]] (!%p2926_p6) }
  0x6f   : > { %v3573_v3 = vld [vmem:[%s4160_s18] sm:$0xff]   ;;  %3088 = vmatprep.subr.bf16.mxu1 %v3572_v2  ;;  %v3577_v7 = vld [vmem:[%s4160_s18 + $0x8] sm:$0xff]   ;;  %v3581_v11 = vld [vmem:[%s4160_s18 + $0x10] sm:$0xff]  }
  0x70   : > { %v3574_v4 = vld [vmem:[%s4160_s18 + $0x80] sm:$0xff]   ;;  %2977 = vmatpush3.bf16.msra.mxu0 %v3573_v3  ;;  %v3578_v8 = vld [vmem:[%s4160_s18 + $0x88] sm:$0xff]   ;;  %v3582_v12 = vld [vmem:[%s4160_s18 + $0x90] sm:$0xff]  }
  0x71   : > { %3089 = vmatpush3.bf16.msra.mxu1 %v3574_v4  ;;  %2978 = vmatprep.subr.bf16.mxu0 %v3575_v5  ;;  %v3583_v13 = vld [vmem:[%s4160_s18 + $0x58] sm:$0xff]   ;;  %v3587_v17 = vld [vmem:[%s4160_s18 + $0x60] sm:$0xff]   ;;  %v3591_v21 = vld [vmem:[%s4160_s18 + $0x68] sm:$0xff]  }
  0x72   : > { %3090 = vmatprep.subr.bf16.mxu1 %v3576_v6  ;;  %v3584_v14 = vld [vmem:[%s4160_s18 + $0xd8] sm:$0xff]   ;;  %v3588_v18 = vld [vmem:[%s4160_s18 + $0xe0] sm:$0xff]   ;;  %v3592_v22 = vld [vmem:[%s4160_s18 + $0xe8] sm:$0xff]  }
  0x73   : > { %v3585_v15 = vld [vmem:[%s4160_s18 + $0x18] sm:$0xff]   ;;  %v3589_v19 = vld [vmem:[%s4160_s18 + $0x20] sm:$0xff]   ;;  %v3593_v23 = vld [vmem:[%s4160_s18 + $0x28] sm:$0xff]  }
  0x74   : > { %2979 = vmatpush3.bf16.msra.mxu0 %v3577_v7  ;;  %v3586_v16 = vld [vmem:[%s4160_s18 + $0x98] sm:$0xff]   ;;  %v3590_v20 = vld [vmem:[%s4160_s18 + $0xa0] sm:$0xff]   ;;  %v3594_v24 = vld [vmem:[%s4160_s18 + $0xa8] sm:$0xff]  }
  0x75   : > { %3091 = vmatpush3.bf16.msra.mxu1 %v3578_v8  ;;  %2980 = vmatprep.subr.bf16.mxu0 %v3579_v9  ;;  %v3595_v25 = vld [vmem:[%s4160_s18 + $0x70] sm:$0xff]   ;;  %v3599_v29 = vld [vmem:[%s4160_s18 + $0x78] sm:$0xff]  }
  0x76   : > { %3092 = vmatprep.subr.bf16.mxu1 %v3580_v10  ;;  %v3596_v26 = vld [vmem:[%s4160_s18 + $0xf0] sm:$0xff]   ;;  %v3600_v30 = vld [vmem:[%s4160_s18 + $0xf8] sm:$0xff]  }
  0x77   : > { %v3597_v27 = vld [vmem:[%s4160_s18 + $0x30] sm:$0xff]   ;;  %v3601_v31 = vld [vmem:[%s4160_s18 + $0x38] sm:$0xff]  }
  0x78   : > { %2981 = vmatpush3.bf16.msra.mxu0 %v3581_v11  ;;  %v3598_v28 = vld [vmem:[%s4160_s18 + $0xb0] sm:$0xff]   ;;  %v3602_v32 = vld [vmem:[%s4160_s18 + $0xb8] sm:$0xff]  }
  0x79   : > { %3093 = vmatpush3.bf16.msra.mxu1 %v3582_v12  ;;  %2982 = vmatprep.subr.bf16.mxu0 %v3583_v13  ;;  %v3603_v33 = vld [vmem:[%s4167_s21] ss:$16 sps:$4 sm:$0xff]   ;;  %v3605_v34 = vld [vmem:[%s4167_s21 + $0x4] ss:$16 sps:$4 sm:$0xff]   ;;  %v3606_v35 = vld [vmem:[%s4167_s21 + $0x8] ss:$16 sps:$4 sm:$0xff]  }
  0x7a   : > { %3094 = vmatprep.subr.bf16.mxu1 %v3584_v14  ;;  %v3608_v36 = vld [vmem:[%s4167_s21 + $0xc] ss:$16 sps:$4 sm:$0xff]   ;;  %1309 = vmatprep.mubr.bf16.mxu0 %v3605_v34  ;;  %v3609_v37 = vld [vmem:[%s4167_s21 + $0x24] ss:$16 sps:$4 sm:$0xff]   ;;  %v3613_v39 = vld [vmem:[%s4167_s21 + $0x20] ss:$16 sps:$4 sm:$0xff]  }
  0x7b   : > { %1470 = vmatprep.mubr.bf16.mxu1 %v3608_v36  ;;  %v3611_v38 = vld [vmem:[%s4167_s21 + $0x2c] ss:$16 sps:$4 sm:$0xff]   ;;  %v3614_v40 = vld [vmem:[%s4167_s21 + $0x28] ss:$16 sps:$4 sm:$0xff]   ;;  %v3615_v41 = vld [vmem:[%s4167_s21 + $0x44] ss:$16 sps:$4 sm:$0xff]  }
  0x7c   : > { %2983 = vmatpush3.bf16.msra.mxu0 %v3585_v15  ;;  %v3617_v42 = vld [vmem:[%s4167_s21 + $0x4c] ss:$16 sps:$4 sm:$0xff]   ;;  %v3619_v43 = vld [vmem:[%s4167_s21 + $0x40] ss:$16 sps:$4 sm:$0xff]   ;;  %v3620_v44 = vld [vmem:[%s4167_s21 + $0x48] ss:$16 sps:$4 sm:$0xff]  }
  0x7d   : > { %3095 = vmatpush3.bf16.msra.mxu1 %v3586_v16  ;;  %2984 = vmatprep.subr.bf16.mxu0 %v3587_v17  ;;  %v3621_v45 = vld [vmem:[%s4167_s21 + $0x64] ss:$16 sps:$4 sm:$0xff]   ;;  %v3623_v46 = vld [vmem:[%s4167_s21 + $0x6c] ss:$16 sps:$4 sm:$0xff]   ;;  %v3625_v47 = vld [vmem:[%s4167_s21 + $0x60] ss:$16 sps:$4 sm:$0xff]  }
  0x7e   : > { %3096 = vmatprep.subr.bf16.mxu1 %v3588_v18  ;;  %v3626_v48 = vld [vmem:[%s4167_s21 + $0x68] ss:$16 sps:$4 sm:$0xff]   ;;  %v3627_v49 = vld [vmem:[%s4167_s21 + $0x84] ss:$16 sps:$4 sm:$0xff]   ;;  %v3629_v50 = vld [vmem:[%s4167_s21 + $0x8c] ss:$16 sps:$4 sm:$0xff]  }
  0x7f   : > { %v3631_v51 = vld [vmem:[%s4167_s21 + $0x80] ss:$16 sps:$4 sm:$0xff]   ;;  %v3632_v52 = vld [vmem:[%s4167_s21 + $0x88] ss:$16 sps:$4 sm:$0xff]   ;;  %v3633_v53 = vld [vmem:[%s4167_s21 + $0xa4] ss:$16 sps:$4 sm:$0xff]  }
  0x80   : > { %2985 = vmatpush3.bf16.msra.mxu0 %v3589_v19  ;;  %v3635_v54 = vld [vmem:[%s4167_s21 + $0xac] ss:$16 sps:$4 sm:$0xff]   ;;  %v3637_v55 = vld [vmem:[%s4167_s21 + $0xa0] ss:$16 sps:$4 sm:$0xff]   ;;  %v3638_v56 = vld [vmem:[%s4167_s21 + $0xa8] ss:$16 sps:$4 sm:$0xff]  }
  0x81   : > { %3097 = vmatpush3.bf16.msra.mxu1 %v3590_v20  ;;  %2986 = vmatprep.subr.bf16.mxu0 %v3591_v21  ;;  %v3639_v57 = vld [vmem:[%s4167_s21 + $0xc4] ss:$16 sps:$4 sm:$0xff]   ;;  %v3641_v58 = vld [vmem:[%s4167_s21 + $0xcc] ss:$16 sps:$4 sm:$0xff]   ;;  %v3643_v59 = vld [vmem:[%s4167_s21 + $0xc0] ss:$16 sps:$4 sm:$0xff]  }
  0x82   : > { %3098 = vmatprep.subr.bf16.mxu1 %v3592_v22  ;;  %v3644_v60 = vld [vmem:[%s4167_s21 + $0xc8] ss:$16 sps:$4 sm:$0xff]   ;;  %v3645_v61 = vld [vmem:[%s4167_s21 + $0xe4] ss:$16 sps:$4 sm:$0xff]   ;;  %v3647_v62 = vld [vmem:[%s4167_s21 + $0xec] ss:$16 sps:$4 sm:$0xff]  }
  0x83   : > { %v3649_v63 = vld [vmem:[%s4167_s21 + $0xe0] ss:$16 sps:$4 sm:$0xff]   ;;  %v3650_v0 = vld [vmem:[%s4167_s21 + $0xe8] ss:$16 sps:$4 sm:$0xff]   ;;  %v3651_v1 = vld [vmem:[%s4167_s21 + $0x104] ss:$16 sps:$4 sm:$0xff]  }
  0x84   : > { %2987 = vmatpush3.bf16.msra.mxu0 %v3593_v23  ;;  %v3653_v2 = vld [vmem:[%s4167_s21 + $0x10c] ss:$16 sps:$4 sm:$0xff]   ;;  %v3655_v3 = vld [vmem:[%s4167_s21 + $0x100] ss:$16 sps:$4 sm:$0xff]   ;;  %v3656_v4 = vld [vmem:[%s4167_s21 + $0x108] ss:$16 sps:$4 sm:$0xff]  }
  0x85   : > { %3099 = vmatpush3.bf16.msra.mxu1 %v3594_v24  ;;  %2988 = vmatprep.subr.bf16.mxu0 %v3595_v25  ;;  %v3657_v5 = vld [vmem:[%s4167_s21 + $0x124] ss:$16 sps:$4 sm:$0xff]   ;;  %v3659_v6 = vld [vmem:[%s4167_s21 + $0x12c] ss:$16 sps:$4 sm:$0xff]   ;;  %v3661_v7 = vld [vmem:[%s4167_s21 + $0x120] ss:$16 sps:$4 sm:$0xff]  }
  0x86   : > { %3100 = vmatprep.subr.bf16.mxu1 %v3596_v26  ;;  %v3662_v8 = vld [vmem:[%s4167_s21 + $0x128] ss:$16 sps:$4 sm:$0xff]   ;;  %v3663_v9 = vld [vmem:[%s4167_s21 + $0x144] ss:$16 sps:$4 sm:$0xff]   ;;  %v3665_v10 = vld [vmem:[%s4167_s21 + $0x14c] ss:$16 sps:$4 sm:$0xff]  }
  0x87   : > { %v3667_v11 = vld [vmem:[%s4167_s21 + $0x140] ss:$16 sps:$4 sm:$0xff]   ;;  %v3668_v12 = vld [vmem:[%s4167_s21 + $0x148] ss:$16 sps:$4 sm:$0xff]   ;;  %v3669_v13 = vld [vmem:[%s4167_s21 + $0x164] ss:$16 sps:$4 sm:$0xff]  }
  0x88   : > { %2989 = vmatpush3.bf16.msra.mxu0 %v3597_v27  ;;  %v3671_v14 = vld [vmem:[%s4167_s21 + $0x16c] ss:$16 sps:$4 sm:$0xff]   ;;  %v3673_v15 = vld [vmem:[%s4167_s21 + $0x160] ss:$16 sps:$4 sm:$0xff]   ;;  %v3674_v16 = vld [vmem:[%s4167_s21 + $0x168] ss:$16 sps:$4 sm:$0xff]  }
  0x89   : > { %3101 = vmatpush3.bf16.msra.mxu1 %v3598_v28  ;;  %2990 = vmatprep.subr.bf16.mxu0 %v3599_v29  ;;  %v3675_v17 = vld [vmem:[%s4167_s21 + $0x184] ss:$16 sps:$4 sm:$0xff]   ;;  %v3677_v18 = vld [vmem:[%s4167_s21 + $0x18c] ss:$16 sps:$4 sm:$0xff]   ;;  %v3679_v19 = vld [vmem:[%s4167_s21 + $0x180] ss:$16 sps:$4 sm:$0xff]  }
  0x8a   : > { %3102 = vmatprep.subr.bf16.mxu1 %v3600_v30  ;;  %v3680_v20 = vld [vmem:[%s4167_s21 + $0x188] ss:$16 sps:$4 sm:$0xff]   ;;  %v3681_v21 = vld [vmem:[%s4167_s21 + $0x1a4] ss:$16 sps:$4 sm:$0xff]   ;;  %v3683_v22 = vld [vmem:[%s4167_s21 + $0x1ac] ss:$16 sps:$4 sm:$0xff]  }
  0x8b   : > { %v3685_v23 = vld [vmem:[%s4167_s21 + $0x1a0] ss:$16 sps:$4 sm:$0xff]   ;;  %v3686_v24 = vld [vmem:[%s4167_s21 + $0x1a8] ss:$16 sps:$4 sm:$0xff]   ;;  %v3687_v25 = vld [vmem:[%s4167_s21 + $0x1c4] ss:$16 sps:$4 sm:$0xff]  }
  0x8c   : > { %2991 = vmatpush3.bf16.msra.mxu0 %v3601_v31  ;;  %v3689_v26 = vld [vmem:[%s4167_s21 + $0x1cc] ss:$16 sps:$4 sm:$0xff]   ;;  %v3691_v27 = vld [vmem:[%s4167_s21 + $0x1c0] ss:$16 sps:$4 sm:$0xff]   ;;  %v3692_v28 = vld [vmem:[%s4167_s21 + $0x1c8] ss:$16 sps:$4 sm:$0xff]  }
  0x8d   : > { %3103 = vmatpush3.bf16.msra.mxu1 %v3602_v32  ;;  %v3693_v29 = vld [vmem:[%s4167_s21 + $0x1e4] ss:$16 sps:$4 sm:$0xff]   ;;  %v3695_v30 = vld [vmem:[%s4167_s21 + $0x1ec] ss:$16 sps:$4 sm:$0xff]   ;;  %v3697_v31 = vld [vmem:[%s4167_s21 + $0x1e0] ss:$16 sps:$4 sm:$0xff]  }
  0x8e   : > { %v3698_v32 = vld [vmem:[%s4167_s21 + $0x1e8] ss:$16 sps:$4 sm:$0xff]  }
  0x8f   : > { %1310 = vmatmul.mubr.bf16.vlgmr.msra.gmra.mrb[0].mxu0 %v3603_v33 }
  0x90   : > { %1471 = vmatmul.mubr.bf16.vlgmr.msra.gmra.mrb[0].mxu1 %v3606_v35  ;;  %1317 = vmatprep.mubr.bf16.mxu0 %v3609_v37 }
  0x91   : > { %1478 = vmatprep.mubr.bf16.mxu1 %v3611_v38 }
  0x97   : > { %1318 = vmatmul.mubr.bf16.gmra.mrb[4].mxu0 %v3613_v39 }
  0x98   : > { %1479 = vmatmul.mubr.bf16.gmra.mrb[4].mxu1 %v3614_v40  ;;  %1325 = vmatprep.mubr.bf16.mxu0 %v3615_v41 }
  0x99   : > { %1486 = vmatprep.mubr.bf16.mxu1 %v3617_v42  ;;  %v605_v42 = vld [vmem:[#allocation2] sm:$0xff] }
  0x9f   : > { %1326 = vmatmul.mubr.bf16.gmra.mrb[8].mxu0 %v3619_v43 }
  0xa0   : > { %1487 = vmatmul.mubr.bf16.gmra.mrb[8].mxu1 %v3620_v44  ;;  %1333 = vmatprep.mubr.bf16.mxu0 %v3621_v45 }
  0xa1   : > { %1494 = vmatprep.mubr.bf16.mxu1 %v3623_v46 }
  0xa7   : > { %1334 = vmatmul.mubr.bf16.gmra.mrb[12].mxu0 %v3625_v47  ;;  %v606_v47 = vld [vmem:[#allocation2 + $0x8] sm:$0xff] }
  0xa8   : > { %1495 = vmatmul.mubr.bf16.gmra.mrb[12].mxu1 %v3626_v48  ;;  %1341 = vmatprep.mubr.bf16.mxu0 %v3627_v49 }
  0xa9   : > { %1502 = vmatprep.mubr.bf16.mxu1 %v3629_v50 }
  0xaf   : > { %1342 = vmatmul.mubr.bf16.gmra.mrb[16].mxu0 %v3631_v51 }
  0xb0   : > { %1503 = vmatmul.mubr.bf16.gmra.mrb[16].mxu1 %v3632_v52  ;;  %1349 = vmatprep.mubr.bf16.mxu0 %v3633_v53 }
  0xb1   : > { %1510 = vmatprep.mubr.bf16.mxu1 %v3635_v54 }
  0xb7   : > { %1350 = vmatmul.mubr.bf16.gmra.mrb[20].mxu0 %v3637_v55 }
  0xb8   : > { %1511 = vmatmul.mubr.bf16.gmra.mrb[20].mxu1 %v3638_v56  ;;  %1357 = vmatprep.mubr.bf16.mxu0 %v3639_v57 }
  0xb9   : > { %1518 = vmatprep.mubr.bf16.mxu1 %v3641_v58 }
  0xbf   : > { %1358 = vmatmul.mubr.bf16.gmra.mrb[24].mxu0 %v3643_v59 }
  0xc0   : > { %1519 = vmatmul.mubr.bf16.gmra.mrb[24].mxu1 %v3644_v60  ;;  %1365 = vmatprep.mubr.bf16.mxu0 %v3645_v61  ;;  %v607_v60 = vld [vmem:[#allocation2 + $0x10] sm:$0xff] }
  0xc1   : > { %1526 = vmatprep.mubr.bf16.mxu1 %v3647_v62 }
  0xc7   : > { %1366 = vmatmul.mubr.bf16.gmra.mrb[28].mxu0 %v3649_v63 }
  0xc8   : > { %1527 = vmatmul.mubr.bf16.gmra.mrb[28].mxu1 %v3650_v0  ;;  %1373 = vmatprep.mubr.bf16.mxu0 %v3651_v1  ;;  %v608_v1 = vld [vmem:[#allocation2 + $0x18] sm:$0xff] }
  0xc9   : > { %1534 = vmatprep.mubr.bf16.mxu1 %v3653_v2 }
  0xcf   : > { %1374 = vmatmul.mubr.bf16.gmra.mrb[32].mxu0 %v3655_v3 }
  0xd0   : > { %1535 = vmatmul.mubr.bf16.gmra.mrb[32].mxu1 %v3656_v4  ;;  %1381 = vmatprep.mubr.bf16.mxu0 %v3657_v5 }
  0xd1   : > { %1542 = vmatprep.mubr.bf16.mxu1 %v3659_v6 }
  0xd7   : > { %1382 = vmatmul.mubr.bf16.gmra.mrb[36].mxu0 %v3661_v7 }
  0xd8   : > { %1543 = vmatmul.mubr.bf16.gmra.mrb[36].mxu1 %v3662_v8  ;;  %1389 = vmatprep.mubr.bf16.mxu0 %v3663_v9 }
  0xd9   : > { %1550 = vmatprep.mubr.bf16.mxu1 %v3665_v10 }
  0xdf   : > { %1390 = vmatmul.mubr.bf16.gmra.mrb[40].mxu0 %v3667_v11 }
  0xe0   : > { %1551 = vmatmul.mubr.bf16.gmra.mrb[40].mxu1 %v3668_v12  ;;  %1397 = vmatprep.mubr.bf16.mxu0 %v3669_v13 }
  0xe1   : > { %1558 = vmatprep.mubr.bf16.mxu1 %v3671_v14  ;;  %v609_v14 = vld [vmem:[#allocation2 + $0x20] sm:$0xff] }
  0xe7   : > { %1398 = vmatmul.mubr.bf16.gmra.mrb[44].mxu0 %v3673_v15 }
  0xe8   : > { %1559 = vmatmul.mubr.bf16.gmra.mrb[44].mxu1 %v3674_v16  ;;  %1405 = vmatprep.mubr.bf16.mxu0 %v3675_v17 }
  0xe9   : > { %1566 = vmatprep.mubr.bf16.mxu1 %v3677_v18 }
  0xef   : > { %1406 = vmatmul.mubr.bf16.gmra.mrb[48].mxu0 %v3679_v19  ;;  %v610_v19 = vld [vmem:[#allocation2 + $0x28] sm:$0xff] }
  0xf0   : > { %1567 = vmatmul.mubr.bf16.gmra.mrb[48].mxu1 %v3680_v20  ;;  %1413 = vmatprep.mubr.bf16.mxu0 %v3681_v21 }
  0xf1   : > { %1574 = vmatprep.mubr.bf16.mxu1 %v3683_v22 }
  0xf7   : > { %1414 = vmatmul.mubr.bf16.gmra.mrb[52].mxu0 %v3685_v23 }
  0xf8   : > { %1575 = vmatmul.mubr.bf16.gmra.mrb[52].mxu1 %v3686_v24  ;;  %1421 = vmatprep.mubr.bf16.mxu0 %v3687_v25 }
  0xf9   : > { %1582 = vmatprep.mubr.bf16.mxu1 %v3689_v26 }
  0xff   : > { %1422 = vmatmul.mubr.bf16.gmra.mrb[56].mxu0 %v3691_v27 }
 0x100   : > { %1583 = vmatmul.mubr.bf16.gmra.mrb[56].mxu1 %v3692_v28  ;;  %1429 = vmatprep.mubr.bf16.mxu0 %v3693_v29 }
 0x101   : > { %1590 = vmatprep.mubr.bf16.mxu1 %v3695_v30 }
 0x107   : > { %1430 = vmatmul.mubr.bf16.gmra.mrb[60].mxu0 %v3697_v31 }
 0x108   : > { %1591 = vmatmul.mubr.bf16.gmra.mrb[60].mxu1 %v3698_v32  ;;  %v611_v32 = vld [vmem:[#allocation2 + $0x30] sm:$0xff] }
 0x162   : > { %v2992_v33 = vpop.f32.mrb[0].mxu0 }
 0x163   : > { %v3104_v34 = vpop.f32.mrb[0].mxu1  ;;  %v2993_v35 = vpop.f32.mrb[1].mxu0 }
 0x164   : > { %v2994_v36 = vadd.f32 %v2993_v35, %v2992_v33  ;;  %v3105_v37 = vpop.f32.mrb[1].mxu1  ;;  %v2995_v38 = vpop.f32.mrb[2].mxu0 }
 0x165   : > { %v3106_v39 = vadd.f32 %v3105_v37, %v3104_v34  ;;  %v3107_v40 = vpop.f32.mrb[2].mxu1  ;;  %v2996_v41 = vpop.f32.mrb[3].mxu0  ;;  %v612_v37 = vld [vmem:[#allocation2 + $0x38] sm:$0xff] }
 0x166   : > { %v2997_v43 = vadd.f32 %v2996_v41, %v2995_v38  ;;  %v3108_v44 = vpop.f32.mrb[3].mxu1 }
 0x167   : > { %v1473_v45 = vadd.f32 %v3106_v39, %v2994_v36  ;;  %v3109_v46 = vadd.f32 %v3108_v44, %v3107_v40 }
 0x169   : > { %v1599_v48 = vadd.f32 %v1473_v45, %v605_v42  ;;  %v1476_v49 = vadd.f32 %v3109_v46, %v2997_v43 }
 0x16a   : > { %v2998_v50 = vpop.f32.mrb[4].mxu0 }
 0x16b   : > { %1631 = vst [vmem:[#allocation2] sm:$0xff] %v1599_v48  ;;  %v1600_v51 = vadd.f32 %v1476_v49, %v606_v47  ;;  %v3110_v52 = vpop.f32.mrb[4].mxu1  ;;  %v2999_v53 = vpop.f32.mrb[5].mxu0 }
 0x16c   : > { %v3000_v54 = vadd.f32 %v2999_v53, %v2998_v50  ;;  %v3111_v55 = vpop.f32.mrb[5].mxu1  ;;  %v3001_v56 = vpop.f32.mrb[6].mxu0  ;;  %v613_v50 = vld [vmem:[#allocation2 + $0x40] sm:$0xff] }
 0x16d   : > { %1632 = vst [vmem:[#allocation2 + $0x8] sm:$0xff] %v1600_v51  ;;  %v3112_v57 = vadd.f32 %v3111_v55, %v3110_v52  ;;  %v3113_v58 = vpop.f32.mrb[6].mxu1  ;;  %v3002_v59 = vpop.f32.mrb[7].mxu0  ;;  %v614_v55 = vld [vmem:[#allocation2 + $0x48] sm:$0xff] }
 0x16e   : > { %v3003_v61 = vadd.f32 %v3002_v59, %v3001_v56  ;;  %v3114_v62 = vpop.f32.mrb[7].mxu1 }
 0x16f   : > { %v1481_v63 = vadd.f32 %v3112_v57, %v3000_v54  ;;  %v3115_v0 = vadd.f32 %v3114_v62, %v3113_v58 }
 0x171   : > { %v1601_v2 = vadd.f32 %v1481_v63, %v607_v60  ;;  %v1484_v3 = vadd.f32 %v3115_v0, %v3003_v61 }
 0x172   : > { %v3004_v4 = vpop.f32.mrb[8].mxu0 }
 0x173   : > { %1633 = vst [vmem:[#allocation2 + $0x10] sm:$0xff] %v1601_v2  ;;  %v1602_v5 = vadd.f32 %v1484_v3, %v608_v1  ;;  %v3116_v6 = vpop.f32.mrb[8].mxu1  ;;  %v3005_v7 = vpop.f32.mrb[9].mxu0 }
 0x174   : > { %v3006_v8 = vadd.f32 %v3005_v7, %v3004_v4  ;;  %v3117_v9 = vpop.f32.mrb[9].mxu1  ;;  %v3007_v10 = vpop.f32.mrb[10].mxu0  ;;  %v615_v4 = vld [vmem:[#allocation2 + $0x50] sm:$0xff] }
 0x175   : > { %1634 = vst [vmem:[#allocation2 + $0x18] sm:$0xff] %v1602_v5  ;;  %v3118_v11 = vadd.f32 %v3117_v9, %v3116_v6  ;;  %v3119_v12 = vpop.f32.mrb[10].mxu1  ;;  %v3008_v13 = vpop.f32.mrb[11].mxu0  ;;  %v616_v9 = vld [vmem:[#allocation2 + $0x58] sm:$0xff] }
 0x176   : > { %v3009_v15 = vadd.f32 %v3008_v13, %v3007_v10  ;;  %v3120_v16 = vpop.f32.mrb[11].mxu1 }
 0x177   : > { %v1489_v17 = vadd.f32 %v3118_v11, %v3006_v8  ;;  %v3121_v18 = vadd.f32 %v3120_v16, %v3119_v12 }
 0x179   : > { %v1603_v20 = vadd.f32 %v1489_v17, %v609_v14  ;;  %v1492_v21 = vadd.f32 %v3121_v18, %v3009_v15 }
 0x17a   : > { %v3010_v22 = vpop.f32.mrb[12].mxu0 }
 0x17b   : > { %1635 = vst [vmem:[#allocation2 + $0x20] sm:$0xff] %v1603_v20  ;;  %v1604_v23 = vadd.f32 %v1492_v21, %v610_v19  ;;  %v3122_v24 = vpop.f32.mrb[12].mxu1  ;;  %v3011_v25 = vpop.f32.mrb[13].mxu0 }
 0x17c   : > { %v3012_v26 = vadd.f32 %v3011_v25, %v3010_v22  ;;  %v3123_v27 = vpop.f32.mrb[13].mxu1  ;;  %v3013_v28 = vpop.f32.mrb[14].mxu0  ;;  %v617_v22 = vld [vmem:[#allocation2 + $0x60] sm:$0xff] }
 0x17d   : > { %1636 = vst [vmem:[#allocation2 + $0x28] sm:$0xff] %v1604_v23  ;;  %v3124_v29 = vadd.f32 %v3123_v27, %v3122_v24  ;;  %v3125_v30 = vpop.f32.mrb[14].mxu1  ;;  %v3014_v31 = vpop.f32.mrb[15].mxu0  ;;  %v618_v27 = vld [vmem:[#allocation2 + $0x68] sm:$0xff] }
 0x17e   : > { %v3015_v33 = vadd.f32 %v3014_v31, %v3013_v28  ;;  %v3126_v34 = vpop.f32.mrb[15].mxu1 }
 0x17f   : > { %v1497_v35 = vadd.f32 %v3124_v29, %v3012_v26  ;;  %v3127_v36 = vadd.f32 %v3126_v34, %v3125_v30 }
 0x181   : > { %v1605_v38 = vadd.f32 %v1497_v35, %v611_v32  ;;  %v1500_v39 = vadd.f32 %v3127_v36, %v3015_v33 }
 0x182   : > { %v3016_v40 = vpop.f32.mrb[16].mxu0 }
 0x183   : > { %1637 = vst [vmem:[#allocation2 + $0x30] sm:$0xff] %v1605_v38  ;;  %v1606_v41 = vadd.f32 %v1500_v39, %v612_v37  ;;  %v3128_v42 = vpop.f32.mrb[16].mxu1  ;;  %v3017_v43 = vpop.f32.mrb[17].mxu0 }
 0x184   : > { %v3018_v44 = vadd.f32 %v3017_v43, %v3016_v40  ;;  %v3129_v45 = vpop.f32.mrb[17].mxu1  ;;  %v3019_v46 = vpop.f32.mrb[18].mxu0  ;;  %v619_v40 = vld [vmem:[#allocation2 + $0x70] sm:$0xff] }
 0x185   : > { %1638 = vst [vmem:[#allocation2 + $0x38] sm:$0xff] %v1606_v41  ;;  %v3130_v47 = vadd.f32 %v3129_v45, %v3128_v42  ;;  %v3131_v48 = vpop.f32.mrb[18].mxu1  ;;  %v3020_v49 = vpop.f32.mrb[19].mxu0  ;;  %v620_v45 = vld [vmem:[#allocation2 + $0x78] sm:$0xff] }
 0x186   : > { %v3021_v51 = vadd.f32 %v3020_v49, %v3019_v46  ;;  %v3132_v52 = vpop.f32.mrb[19].mxu1 }
 0x187   : > { %v1505_v53 = vadd.f32 %v3130_v47, %v3018_v44  ;;  %v3133_v54 = vadd.f32 %v3132_v52, %v3131_v48 }
 0x189   : > { %v1607_v56 = vadd.f32 %v1505_v53, %v613_v50  ;;  %v1508_v57 = vadd.f32 %v3133_v54, %v3021_v51 }
 0x18a   : > { %v3022_v58 = vpop.f32.mrb[20].mxu0 }
 0x18b   : > { %1639 = vst [vmem:[#allocation2 + $0x40] sm:$0xff] %v1607_v56  ;;  %v1608_v59 = vadd.f32 %v1508_v57, %v614_v55  ;;  %v3134_v60 = vpop.f32.mrb[20].mxu1  ;;  %v3023_v61 = vpop.f32.mrb[21].mxu0 }
 0x18c   : > { %v3024_v62 = vadd.f32 %v3023_v61, %v3022_v58  ;;  %v3135_v63 = vpop.f32.mrb[21].mxu1  ;;  %v3025_v0 = vpop.f32.mrb[22].mxu0  ;;  %v621_v58 = vld [vmem:[#allocation2 + $0x80] sm:$0xff] }
 0x18d   : > { %1640 = vst [vmem:[#allocation2 + $0x48] sm:$0xff] %v1608_v59  ;;  %v3136_v1 = vadd.f32 %v3135_v63, %v3134_v60  ;;  %v3137_v2 = vpop.f32.mrb[22].mxu1  ;;  %v3026_v3 = vpop.f32.mrb[23].mxu0  ;;  %v622_v63 = vld [vmem:[#allocation2 + $0x88] sm:$0xff] }
 0x18e   : > { %v3027_v5 = vadd.f32 %v3026_v3, %v3025_v0  ;;  %v3138_v6 = vpop.f32.mrb[23].mxu1 }
 0x18f   : > { %v1513_v7 = vadd.f32 %v3136_v1, %v3024_v62  ;;  %v3139_v8 = vadd.f32 %v3138_v6, %v3137_v2 }
 0x191   : > { %v1609_v10 = vadd.f32 %v1513_v7, %v615_v4  ;;  %v1516_v11 = vadd.f32 %v3139_v8, %v3027_v5 }
 0x192   : > { %v3028_v12 = vpop.f32.mrb[24].mxu0 }
 0x193   : > { %1641 = vst [vmem:[#allocation2 + $0x50] sm:$0xff] %v1609_v10  ;;  %v1610_v13 = vadd.f32 %v1516_v11, %v616_v9  ;;  %v3140_v14 = vpop.f32.mrb[24].mxu1  ;;  %v3029_v15 = vpop.f32.mrb[25].mxu0 }
 0x194   : > { %v3030_v16 = vadd.f32 %v3029_v15, %v3028_v12  ;;  %v3141_v17 = vpop.f32.mrb[25].mxu1  ;;  %v3031_v18 = vpop.f32.mrb[26].mxu0  ;;  %v623_v12 = vld [vmem:[#allocation2 + $0x90] sm:$0xff] }
 0x195   : > { %1642 = vst [vmem:[#allocation2 + $0x58] sm:$0xff] %v1610_v13  ;;  %v3142_v19 = vadd.f32 %v3141_v17, %v3140_v14  ;;  %v3143_v20 = vpop.f32.mrb[26].mxu1  ;;  %v3032_v21 = vpop.f32.mrb[27].mxu0  ;;  %v624_v17 = vld [vmem:[#allocation2 + $0x98] sm:$0xff] }
 0x196   : > { %v3033_v23 = vadd.f32 %v3032_v21, %v3031_v18  ;;  %v3144_v24 = vpop.f32.mrb[27].mxu1 }
 0x197   : > { %v1521_v25 = vadd.f32 %v3142_v19, %v3030_v16  ;;  %v3145_v26 = vadd.f32 %v3144_v24, %v3143_v20 }
 0x199   : > { %v1611_v28 = vadd.f32 %v1521_v25, %v617_v22  ;;  %v1524_v29 = vadd.f32 %v3145_v26, %v3033_v23 }
 0x19a   : > { %v3034_v30 = vpop.f32.mrb[28].mxu0 }
 0x19b   : > { %1643 = vst [vmem:[#allocation2 + $0x60] sm:$0xff] %v1611_v28  ;;  %v1612_v31 = vadd.f32 %v1524_v29, %v618_v27  ;;  %v3146_v32 = vpop.f32.mrb[28].mxu1  ;;  %v3035_v33 = vpop.f32.mrb[29].mxu0 }
 0x19c   : > { %v3036_v34 = vadd.f32 %v3035_v33, %v3034_v30  ;;  %v3147_v35 = vpop.f32.mrb[29].mxu1  ;;  %v3037_v36 = vpop.f32.mrb[30].mxu0  ;;  %v625_v30 = vld [vmem:[#allocation2 + $0xa0] sm:$0xff] }
 0x19d   : > { %1644 = vst [vmem:[#allocation2 + $0x68] sm:$0xff] %v1612_v31  ;;  %v3148_v37 = vadd.f32 %v3147_v35, %v3146_v32  ;;  %v3149_v38 = vpop.f32.mrb[30].mxu1  ;;  %v3038_v39 = vpop.f32.mrb[31].mxu0  ;;  %v626_v35 = vld [vmem:[#allocation2 + $0xa8] sm:$0xff] }
 0x19e   : > { %v3039_v41 = vadd.f32 %v3038_v39, %v3037_v36  ;;  %v3150_v42 = vpop.f32.mrb[31].mxu1 }
 0x19f   : > { %v1529_v43 = vadd.f32 %v3148_v37, %v3036_v34  ;;  %v3151_v44 = vadd.f32 %v3150_v42, %v3149_v38 }
 0x1a1   : > { %v1613_v46 = vadd.f32 %v1529_v43, %v619_v40  ;;  %v1532_v47 = vadd.f32 %v3151_v44, %v3039_v41 }
 0x1a2   : > { %v3040_v48 = vpop.f32.mrb[32].mxu0 }
 0x1a3   : > { %1645 = vst [vmem:[#allocation2 + $0x70] sm:$0xff] %v1613_v46  ;;  %v1614_v49 = vadd.f32 %v1532_v47, %v620_v45  ;;  %v3152_v50 = vpop.f32.mrb[32].mxu1  ;;  %v3041_v51 = vpop.f32.mrb[33].mxu0 }
 0x1a4   : > { %v3042_v52 = vadd.f32 %v3041_v51, %v3040_v48  ;;  %v3153_v53 = vpop.f32.mrb[33].mxu1  ;;  %v3043_v54 = vpop.f32.mrb[34].mxu0  ;;  %v627_v48 = vld [vmem:[#allocation2 + $0xb0] sm:$0xff] }
 0x1a5   : > { %1646 = vst [vmem:[#allocation2 + $0x78] sm:$0xff] %v1614_v49  ;;  %v3154_v55 = vadd.f32 %v3153_v53, %v3152_v50  ;;  %v3155_v56 = vpop.f32.mrb[34].mxu1  ;;  %v3044_v57 = vpop.f32.mrb[35].mxu0  ;;  %v628_v53 = vld [vmem:[#allocation2 + $0xb8] sm:$0xff] }
 0x1a6   : > { %v3045_v59 = vadd.f32 %v3044_v57, %v3043_v54  ;;  %v3156_v60 = vpop.f32.mrb[35].mxu1 }
 0x1a7   : > { %v1537_v61 = vadd.f32 %v3154_v55, %v3042_v52  ;;  %v3157_v62 = vadd.f32 %v3156_v60, %v3155_v56 }
 0x1a9   : > { %v1615_v0 = vadd.f32 %v1537_v61, %v621_v58  ;;  %v1540_v1 = vadd.f32 %v3157_v62, %v3045_v59 }
 0x1aa   : > { %v3046_v2 = vpop.f32.mrb[36].mxu0 }
 0x1ab   : > { %1647 = vst [vmem:[#allocation2 + $0x80] sm:$0xff] %v1615_v0  ;;  %v1616_v3 = vadd.f32 %v1540_v1, %v622_v63  ;;  %v3158_v4 = vpop.f32.mrb[36].mxu1  ;;  %v3047_v5 = vpop.f32.mrb[37].mxu0 }
 0x1ac   : > { %v3048_v6 = vadd.f32 %v3047_v5, %v3046_v2  ;;  %v3159_v7 = vpop.f32.mrb[37].mxu1  ;;  %v3049_v8 = vpop.f32.mrb[38].mxu0  ;;  %v629_v2 = vld [vmem:[#allocation2 + $0xc0] sm:$0xff] }
 0x1ad   : > { %1648 = vst [vmem:[#allocation2 + $0x88] sm:$0xff] %v1616_v3  ;;  %v3160_v9 = vadd.f32 %v3159_v7, %v3158_v4  ;;  %v3161_v10 = vpop.f32.mrb[38].mxu1  ;;  %v3050_v11 = vpop.f32.mrb[39].mxu0  ;;  %v630_v7 = vld [vmem:[#allocation2 + $0xc8] sm:$0xff] }
 0x1ae   : > { %v3051_v13 = vadd.f32 %v3050_v11, %v3049_v8  ;;  %v3162_v14 = vpop.f32.mrb[39].mxu1 }
 0x1af   : > { %v1545_v15 = vadd.f32 %v3160_v9, %v3048_v6  ;;  %v3163_v16 = vadd.f32 %v3162_v14, %v3161_v10 }
 0x1b1   : > { %v1617_v18 = vadd.f32 %v1545_v15, %v623_v12  ;;  %v1548_v19 = vadd.f32 %v3163_v16, %v3051_v13 }
 0x1b2   : > { %v3052_v20 = vpop.f32.mrb[40].mxu0 }
 0x1b3   : > { %1649 = vst [vmem:[#allocation2 + $0x90] sm:$0xff] %v1617_v18  ;;  %v1618_v21 = vadd.f32 %v1548_v19, %v624_v17  ;;  %v3164_v22 = vpop.f32.mrb[40].mxu1  ;;  %v3053_v23 = vpop.f32.mrb[41].mxu0 }
 0x1b4   : > { %v3054_v24 = vadd.f32 %v3053_v23, %v3052_v20  ;;  %v3165_v25 = vpop.f32.mrb[41].mxu1  ;;  %v3055_v26 = vpop.f32.mrb[42].mxu0  ;;  %v631_v20 = vld [vmem:[#allocation2 + $0xd0] sm:$0xff] }
 0x1b5   : > { %1650 = vst [vmem:[#allocation2 + $0x98] sm:$0xff] %v1618_v21  ;;  %v3166_v27 = vadd.f32 %v3165_v25, %v3164_v22  ;;  %v3167_v28 = vpop.f32.mrb[42].mxu1  ;;  %v3056_v29 = vpop.f32.mrb[43].mxu0  ;;  %v632_v25 = vld [vmem:[#allocation2 + $0xd8] sm:$0xff] }
 0x1b6   : > { %v3057_v31 = vadd.f32 %v3056_v29, %v3055_v26  ;;  %v3168_v32 = vpop.f32.mrb[43].mxu1 }
 0x1b7   : > { %v1553_v33 = vadd.f32 %v3166_v27, %v3054_v24  ;;  %v3169_v34 = vadd.f32 %v3168_v32, %v3167_v28 }
 0x1b9   : > { %v1619_v36 = vadd.f32 %v1553_v33, %v625_v30  ;;  %v1556_v37 = vadd.f32 %v3169_v34, %v3057_v31 }
 0x1ba   : > { %v3058_v38 = vpop.f32.mrb[44].mxu0 }
 0x1bb   : > { %1651 = vst [vmem:[#allocation2 + $0xa0] sm:$0xff] %v1619_v36  ;;  %v1620_v39 = vadd.f32 %v1556_v37, %v626_v35  ;;  %v3170_v40 = vpop.f32.mrb[44].mxu1  ;;  %v3059_v41 = vpop.f32.mrb[45].mxu0 }
 0x1bc   : > { %v3060_v42 = vadd.f32 %v3059_v41, %v3058_v38  ;;  %v3171_v43 = vpop.f32.mrb[45].mxu1  ;;  %v3061_v44 = vpop.f32.mrb[46].mxu0  ;;  %v633_v38 = vld [vmem:[#allocation2 + $0xe0] sm:$0xff] }
 0x1bd   : > { %1652 = vst [vmem:[#allocation2 + $0xa8] sm:$0xff] %v1620_v39  ;;  %v3172_v45 = vadd.f32 %v3171_v43, %v3170_v40  ;;  %v3173_v46 = vpop.f32.mrb[46].mxu1  ;;  %v3062_v47 = vpop.f32.mrb[47].mxu0  ;;  %v634_v43 = vld [vmem:[#allocation2 + $0xe8] sm:$0xff] }
 0x1be   : > { %v3063_v49 = vadd.f32 %v3062_v47, %v3061_v44  ;;  %v3174_v50 = vpop.f32.mrb[47].mxu1 }
 0x1bf   : > { %v1561_v51 = vadd.f32 %v3172_v45, %v3060_v42  ;;  %v3175_v52 = vadd.f32 %v3174_v50, %v3173_v46 }
 0x1c1   : > { %v1621_v54 = vadd.f32 %v1561_v51, %v627_v48  ;;  %v1564_v55 = vadd.f32 %v3175_v52, %v3063_v49 }
 0x1c2   : > { %v3064_v56 = vpop.f32.mrb[48].mxu0 }
 0x1c3   : > { %1653 = vst [vmem:[#allocation2 + $0xb0] sm:$0xff] %v1621_v54  ;;  %v1622_v57 = vadd.f32 %v1564_v55, %v628_v53  ;;  %v3176_v58 = vpop.f32.mrb[48].mxu1  ;;  %v3065_v59 = vpop.f32.mrb[49].mxu0 }
 0x1c4   : > { %v3066_v60 = vadd.f32 %v3065_v59, %v3064_v56  ;;  %v3177_v61 = vpop.f32.mrb[49].mxu1  ;;  %v3067_v62 = vpop.f32.mrb[50].mxu0  ;;  %v635_v56 = vld [vmem:[#allocation2 + $0xf0] sm:$0xff] }
 0x1c5   : > { %1654 = vst [vmem:[#allocation2 + $0xb8] sm:$0xff] %v1622_v57  ;;  %v3178_v63 = vadd.f32 %v3177_v61, %v3176_v58  ;;  %v3179_v0 = vpop.f32.mrb[50].mxu1  ;;  %v3068_v1 = vpop.f32.mrb[51].mxu0  ;;  %v636_v61 = vld [vmem:[#allocation2 + $0xf8] sm:$0xff] }
 0x1c6   : > { %v3069_v3 = vadd.f32 %v3068_v1, %v3067_v62  ;;  %v3180_v4 = vpop.f32.mrb[51].mxu1  ;;  %v3699_v1 = vld [vmem:[%s4576_s4] sm:$0xff] (!%p2926_p6)  }
 0x1c7   : > { %v1569_v5 = vadd.f32 %v3178_v63, %v3066_v60  ;;  %v3181_v6 = vadd.f32 %v3180_v4, %v3179_v0  ;;  %3290 = vmatprep.subr.bf16.mxu0 (!%p2926_p6), %v3699_v1  ;;  %3434 = vmatprep.subr.bf16.mxu1 (!%p2926_p6), %v3699_v1  ;;  %v3702_v4 = vld [vmem:[%s4576_s4 + $0x18] sm:$0xff] (!%p2926_p6)  }
 0x1c8   : > { %3291 = vmatpush3.bf16.msra.mxu0 (!%p2926_p6), %v3699_v1  ;;  %3442 = vmatpush3.bf16.msra.mxu1 (!%p2926_p6), %v3699_v1 }
 0x1c9   : > { %v1623_v8 = vadd.f32 %v1569_v5, %v629_v2  ;;  %v1572_v9 = vadd.f32 %v3181_v6, %v3069_v3  ;;  %v3700_v2 = vld [vmem:[%s4576_s4 + $0x8] sm:$0xff] (!%p2926_p6)   ;;  %v3701_v3 = vld [vmem:[%s4576_s4 + $0x10] sm:$0xff] (!%p2926_p6)   ;;  %v3707_v5 = vld [vmem:[%s4165_s23] sm:$0xff] (!%p2926_p6)  }
 0x1ca   : > { %v3070_v10 = vpop.f32.mrb[52].mxu0  ;;  %3292 = vmatprep.subr.bf16.mxu0 (!%p2926_p6), %v3700_v2  ;;  %3435 = vmatprep.subr.bf16.mxu1 (!%p2926_p6), %v3700_v2  ;;  %v3703_v6 = vld [vmem:[%s4576_s4 + $0x20] sm:$0xff] (!%p2926_p6)  }
 0x1cb   : > { %1655 = vst [vmem:[#allocation2 + $0xc0] sm:$0xff] %v1623_v8  ;;  %v1624_v11 = vadd.f32 %v1572_v9, %v630_v7  ;;  %v3182_v12 = vpop.f32.mrb[52].mxu1  ;;  %v3071_v13 = vpop.f32.mrb[53].mxu0  ;;  %3306 = vmatprep.mubr.bf16.mxu0 (!%p2926_p6), %v3707_v5  ;;  %v3704_v7 = vld [vmem:[%s4576_s4 + $0x28] sm:$0xff] (!%p2926_p6)   ;;  %v3705_v8 = vld [vmem:[%s4576_s4 + $0x30] sm:$0xff] (!%p2926_p6)   ;;  %v3706_v9 = vld [vmem:[%s4576_s4 + $0x38] sm:$0xff] (!%p2926_p6)  }
 0x1cc   : > { %v3072_v14 = vadd.f32 %v3071_v13, %v3070_v10  ;;  %v3183_v15 = vpop.f32.mrb[53].mxu1  ;;  %v3073_v16 = vpop.f32.mrb[54].mxu0  ;;  %3293 = vmatpush3.bf16.msra.mxu0 (!%p2926_p6), %v3700_v2  ;;  %3443 = vmatpush3.bf16.msra.mxu1 (!%p2926_p6), %v3700_v2  ;;  %v3709_v10 = vld [vmem:[%s4575_s3] sm:$0xff] (!%p2926_p6)   ;;  %v3711_v13 = vld [vmem:[%s4165_s23 + $0x10] sm:$0xff] (!%p2926_p6)   ;;  %v1688_v5 = vld [vmem:[#allocation2 + $0xa8] sm:$0xff] (!%p2926_p6) }
 0x1cd   : > { %1656 = vst [vmem:[#allocation2 + $0xc8] sm:$0xff] %v1624_v11  ;;  %v3184_v17 = vadd.f32 %v3183_v15, %v3182_v12  ;;  %v3185_v18 = vpop.f32.mrb[54].mxu1  ;;  %v3074_v19 = vpop.f32.mrb[55].mxu0  ;;  %3294 = vmatprep.subr.bf16.mxu0 (!%p2926_p6), %v3701_v3  ;;  %3436 = vmatprep.subr.bf16.mxu1 (!%p2926_p6), %v3701_v3  ;;  %v3708_v11 = vld [vmem:[%s4165_s23 + $0x8] sm:$0xff] (!%p2926_p6)   ;;  %v3723_v12 = vld [vmem:[%s4165_s23 + $0x40] sm:$0xff] (!%p2926_p6)   ;;  %v1685_v2 = vld [vmem:[#allocation2 + $0x90] sm:$0xff] (!%p2926_p6) }
 0x1ce   : > { %v3075_v21 = vadd.f32 %v3074_v19, %v3073_v16  ;;  %v3186_v22 = vpop.f32.mrb[55].mxu1  ;;  %v3710_v15 = vld [vmem:[%s4575_s3 + $0x8] sm:$0xff] (!%p2926_p6)   ;;  %3322 = vmatprep.mubr.bf16.mxu1 (!%p2926_p6), %v3723_v12  ;;  %v3725_v16 = vld [vmem:[%s4165_s23 + $0x50] sm:$0xff] (!%p2926_p6)   ;;  %v3726_v19 = vld [vmem:[%s4165_s23 + $0x58] sm:$0xff] (!%p2926_p6)  }
 0x1cf   : > { %v1577_v23 = vadd.f32 %v3184_v17, %v3072_v14  ;;  %v3187_v24 = vadd.f32 %v3186_v22, %v3185_v18  ;;  %v3724_v14 = vld [vmem:[%s4165_s23 + $0x48] sm:$0xff] (!%p2926_p6)   ;;  %v3713_v17 = vld [vmem:[%s4575_s3 + $0x10] sm:$0xff] (!%p2926_p6)   ;;  %v3712_v18 = vld [vmem:[%s4165_s23 + $0x18] sm:$0xff] (!%p2926_p6)  }
 0x1d0   : > { %3295 = vmatpush3.bf16.msra.mxu0 (!%p2926_p6), %v3701_v3  ;;  %3444 = vmatpush3.bf16.msra.mxu1 (!%p2926_p6), %v3701_v3  ;;  %v3727_v22 = vld [vmem:[%s4165_s23 + $0x60] sm:$0xff] (!%p2926_p6)   ;;  %v1686_v3 = vld [vmem:[#allocation2 + $0x98] sm:$0xff] (!%p2926_p6) }
 0x1d1   : > { %v1625_v26 = vadd.f32 %v1577_v23, %v631_v20  ;;  %v1580_v27 = vadd.f32 %v3187_v24, %v3075_v21  ;;  %3296 = vmatprep.subr.bf16.mxu0 (!%p2926_p6), %v3702_v4  ;;  %3437 = vmatprep.subr.bf16.mxu1 (!%p2926_p6), %v3702_v4  ;;  %v3715_v20 = vld [vmem:[%s4165_s23 + $0x20] sm:$0xff] (!%p2926_p6)   ;;  %v3714_v21 = vld [vmem:[%s4575_s3 + $0x18] sm:$0xff] (!%p2926_p6)  }
 0x1d2   : > { %v3076_v28 = vpop.f32.mrb[56].mxu0  ;;  %v3717_v23 = vld [vmem:[%s4575_s3 + $0x20] sm:$0xff] (!%p2926_p6)  }
 0x1d3   : > { %1657 = vst [vmem:[#allocation2 + $0xd0] sm:$0xff] %v1625_v26  ;;  %v1626_v29 = vadd.f32 %v1580_v27, %v632_v25  ;;  %v3188_v30 = vpop.f32.mrb[56].mxu1  ;;  %v3077_v31 = vpop.f32.mrb[57].mxu0  ;;  %v3731_v24 = vld [vmem:[%s4578_s6] sm:$0xff] (!%p2926_p6)   ;;  %v3732_v25 = vld [vmem:[%s4578_s6 + $0x8] sm:$0xff] (!%p2926_p6)  }
 0x1d4   : > { %v3078_v32 = vadd.f32 %v3077_v31, %v3076_v28  ;;  %v3189_v33 = vpop.f32.mrb[57].mxu1  ;;  %v3079_v34 = vpop.f32.mrb[58].mxu0  ;;  %3297 = vmatpush3.bf16.msra.mxu0 (!%p2926_p6), %v3702_v4  ;;  %3445 = vmatpush3.bf16.msra.mxu1 (!%p2926_p6), %v3702_v4  ;;  %v3716_v26 = vld [vmem:[%s4165_s23 + $0x28] sm:$0xff] (!%p2926_p6)   ;;  %v3733_v31 = vld [vmem:[%s4578_s6 + $0x10] sm:$0xff] (!%p2926_p6)   ;;  %v1687_v4 = vld [vmem:[#allocation2 + $0xa0] sm:$0xff] (!%p2926_p6) }
 0x1d5   : > { %1658 = vst [vmem:[#allocation2 + $0xd8] sm:$0xff] %v1626_v29  ;;  %v3190_v35 = vadd.f32 %v3189_v33, %v3188_v30  ;;  %v3191_v36 = vpop.f32.mrb[58].mxu1  ;;  %v3080_v37 = vpop.f32.mrb[59].mxu0  ;;  %3298 = vmatprep.subr.bf16.mxu0 (!%p2926_p6), %v3703_v6  ;;  %3438 = vmatprep.subr.bf16.mxu1 (!%p2926_p6), %v3703_v6  ;;  %v3718_v27 = vld [vmem:[%s4575_s3 + $0x28] sm:$0xff] (!%p2926_p6)   ;;  %v3719_v29 = vld [vmem:[%s4165_s23 + $0x30] sm:$0xff] (!%p2926_p6)   ;;  %v1667_v33 = vld [vmem:[#allocation2] sm:$0xff] (!%p2926_p6) }
 0x1d6   : > { %v3081_v39 = vadd.f32 %v3080_v37, %v3079_v34  ;;  %v3192_v40 = vpop.f32.mrb[59].mxu1  ;;  %v3728_v28 = vld [vmem:[%s4165_s23 + $0x68] sm:$0xff] (!%p2926_p6)   ;;  %v3729_v30 = vld [vmem:[%s4165_s23 + $0x70] sm:$0xff] (!%p2926_p6)  }
 0x1d7   : > { %v1585_v41 = vadd.f32 %v3190_v35, %v3078_v32  ;;  %v3193_v42 = vadd.f32 %v3192_v40, %v3191_v36  ;;  %v3721_v32 = vld [vmem:[%s4575_s3 + $0x30] sm:$0xff] (!%p2926_p6)   ;;  %v1668_v34 = vld [vmem:[#allocation2 + $0x8] sm:$0xff] (!%p2926_p6)  ;;  %v3720_v35 = vld [vmem:[%s4165_s23 + $0x38] sm:$0xff] (!%p2926_p6)  }
 0x1d8   : > { %3299 = vmatpush3.bf16.msra.mxu0 (!%p2926_p6), %v3703_v6  ;;  %3446 = vmatpush3.bf16.msra.mxu1 (!%p2926_p6), %v3703_v6  ;;  %v3730_v36 = vld [vmem:[%s4165_s23 + $0x78] sm:$0xff] (!%p2926_p6)   ;;  %v1699_v37 = vpack.c.bf16 (!%p2926_p6), %v1668_v34, %v1667_v33  ;;  %v3735_v40 = vld [vmem:[%s4578_s6 + $0x20] sm:$0xff] (!%p2926_p6)   ;;  %v1708_v6 = vpack.c.bf16 (!%p2926_p6), %v1686_v3, %v1685_v2 }
 0x1d9   : > { %v1627_v44 = vadd.f32 %v1585_v41, %v633_v38  ;;  %v1588_v45 = vadd.f32 %v3193_v42, %v3081_v39  ;;  %3300 = vmatprep.subr.bf16.mxu0 (!%p2926_p6), %v3704_v7  ;;  %3439 = vmatprep.subr.bf16.mxu1 (!%p2926_p6), %v3704_v7  ;;  %v3722_v38 = vld [vmem:[%s4575_s3 + $0x38] sm:$0xff] (!%p2926_p6)   ;;  %v1669_v41 = vld [vmem:[#allocation2 + $0x10] sm:$0xff] (!%p2926_p6) }
 0x1da   : > { %v3082_v46 = vpop.f32.mrb[60].mxu0  ;;  %v3734_v39 = vld [vmem:[%s4578_s6 + $0x18] sm:$0xff] (!%p2926_p6)  }
 0x1db   : > { %1659 = vst [vmem:[#allocation2 + $0xe0] sm:$0xff] %v1627_v44  ;;  %v1628_v47 = vadd.f32 %v1588_v45, %v634_v43  ;;  %v3194_v48 = vpop.f32.mrb[60].mxu1  ;;  %v3083_v49 = vpop.f32.mrb[61].mxu0  ;;  %v1670_v42 = vld [vmem:[#allocation2 + $0x18] sm:$0xff] (!%p2926_p6)  ;;  %v1671_v43 = vld [vmem:[#allocation2 + $0x20] sm:$0xff] (!%p2926_p6)  ;;  %v1672_v44 = vld [vmem:[#allocation2 + $0x28] sm:$0xff] (!%p2926_p6) }
 0x1dc   : > { %v3084_v50 = vadd.f32 %v3083_v49, %v3082_v46  ;;  %v3195_v51 = vpop.f32.mrb[61].mxu1  ;;  %v3085_v52 = vpop.f32.mrb[62].mxu0  ;;  %3301 = vmatpush3.bf16.msra.mxu0 (!%p2926_p6), %v3704_v7  ;;  %3447 = vmatpush3.bf16.msra.mxu1 (!%p2926_p6), %v3704_v7  ;;  %v1700_v45 = vpack.c.bf16 (!%p2926_p6), %v1670_v42, %v1669_v41  ;;  %v3736_v46 = vld [vmem:[%s4578_s6 + $0x28] sm:$0xff] (!%p2926_p6)   ;;  %v1674_v49 = vld [vmem:[#allocation2 + $0x38] sm:$0xff] (!%p2926_p6)  ;;  %v1709_v7 = vpack.c.bf16 (!%p2926_p6), %v1688_v5, %v1687_v4  ;;  %v4391_v42 = vld [vmem:[%s4577_s5] ss:$0 sm:$0xff] (!%p2926_p6) }
 0x1dd   : > { %1660 = vst [vmem:[#allocation2 + $0xe8] sm:$0xff] %v1628_v47  ;;  %v3196_v53 = vadd.f32 %v3195_v51, %v3194_v48  ;;  %v3197_v54 = vpop.f32.mrb[62].mxu1  ;;  %v3086_v55 = vpop.f32.mrb[63].mxu0  ;;  %3302 = vmatprep.subr.bf16.mxu0 (!%p2926_p6), %v3705_v8  ;;  %3440 = vmatprep.subr.bf16.mxu1 (!%p2926_p6), %v3705_v8  ;;  %v1701_v47 = vpack.c.bf16 (!%p2926_p6), %v1672_v44, %v1671_v43  ;;  %v1673_v48 = vld [vmem:[#allocation2 + $0x30] sm:$0xff] (!%p2926_p6)  ;;  %v1676_v51 = vld [vmem:[#allocation2 + $0x48] sm:$0xff] (!%p2926_p6) }
 0x1de   : > { %v3087_v57 = vadd.f32 %v3086_v55, %v3085_v52  ;;  %v3198_v58 = vpop.f32.mrb[63].mxu1  ;;  %v1702_v52 = vpack.c.bf16 (!%p2926_p6), %v1674_v49, %v1673_v48  ;;  %v1678_v55 = vld [vmem:[#allocation2 + $0x58] sm:$0xff] (!%p2926_p6) }
 0x1df   : > { %v1593_v59 = vadd.f32 %v3196_v53, %v3084_v50  ;;  %v3199_v60 = vadd.f32 %v3198_v58, %v3197_v54  ;;  %1666 = sbr.rel (%p2926_p6) target bundleno = 1280 (0x500), region = 91  ;;  %v1675_v50 = vld [vmem:[#allocation2 + $0x40] sm:$0xff] (!%p2926_p6)  ;;  %v1677_v54 = vld [vmem:[#allocation2 + $0x50] sm:$0xff] (!%p2926_p6) }
 0x1e0   : > { %3303 = vmatpush3.bf16.msra.mxu0 (!%p2926_p6), %v3705_v8  ;;  %3448 = vmatpush3.bf16.msra.mxu1 (!%p2926_p6), %v3705_v8  ;;  %v1703_v53 = vpack.c.bf16 (!%p2926_p6), %v1676_v51, %v1675_v50  ;;  %v1704_v58 = vpack.c.bf16 (!%p2926_p6), %v1678_v55, %v1677_v54  ;;  %v1689_v8 = vld [vmem:[#allocation2 + $0xb0] sm:$0xff] (!%p2926_p6) }
 0x1e1   : > { %v1629_v62 = vadd.f32 %v1593_v59, %v635_v56  ;;  %v1596_v63 = vadd.f32 %v3199_v60, %v3087_v57  ;;  %3304 = vmatprep.subr.bf16.mxu0 (!%p2926_p6), %v3706_v9  ;;  %3441 = vmatprep.subr.bf16.mxu1 (!%p2926_p6), %v3706_v9  ;;  %v1679_v56 = vld [vmem:[#allocation2 + $0x60] sm:$0xff] (!%p2926_p6)  ;;  %v1680_v57 = vld [vmem:[#allocation2 + $0x68] sm:$0xff] (!%p2926_p6)  ;;  %v1681_v60 = vld [vmem:[#allocation2 + $0x70] sm:$0xff] (!%p2926_p6) }
 0x1e2   : > { %v1705_v59 = vpack.c.bf16 (!%p2926_p6), %v1680_v57, %v1679_v56 }
 0x1e3   : > { %1661 = vst [vmem:[#allocation2 + $0xf0] sm:$0xff] %v1629_v62  ;;  %v1630_v0 = vadd.f32 %v1596_v63, %v636_v61  ;;  %v1682_v61 = vld [vmem:[#allocation2 + $0x78] sm:$0xff] (!%p2926_p6)  ;;  %v1683_v62 = vld [vmem:[#allocation2 + $0x80] sm:$0xff] (!%p2926_p6)  ;;  %v1684_v63 = vld [vmem:[#allocation2 + $0x88] sm:$0xff] (!%p2926_p6) }
 0x1e4   : > { %3305 = vmatpush3.bf16.msra.mxu0 (!%p2926_p6), %v3706_v9  ;;  %3449 = vmatpush3.bf16.msra.mxu1 (!%p2926_p6), %v3706_v9  ;;  %v1707_v1 = vpack.c.bf16 (!%p2926_p6), %v1684_v63, %v1683_v62  ;;  %v1690_v9 = vld [vmem:[#allocation2 + $0xb8] sm:$0xff] (!%p2926_p6) }
 0x1e5   : > { %1662 = vst [vmem:[#allocation2 + $0xf8] sm:$0xff] %v1630_v0  ;;  %3338 = vmatprep.subr.bf16.mxu0 (!%p2926_p6), %v3709_v10  ;;  %3386 = vmatprep.subr.bf16.mxu1 (!%p2926_p6), %v3731_v24  ;;  %v1706_v0 = vpack.c.bf16 (!%p2926_p6), %v1682_v61, %v1681_v60  ;;  %v1710_v12 = vpack.c.bf16 (!%p2926_p6), %v1690_v9, %v1689_v8 }
 0x1e7   : > { %3307 = vmatmul.mubr.bf16.vlgmr.msra.gmra.mrb[0].mxu0 %v3708_v11  ;;  %3323 = vmatmul.mubr.bf16.vlgmr.msra.gmra.mrb[0].mxu1 %v3724_v14  ;;  %v1692_v11 = vld [vmem:[#allocation2 + $0xc8] sm:$0xff]  ;;  %v1693_v14 = vld [vmem:[#allocation2 + $0xd0] sm:$0xff] }
 0x1e8   : > { %3339 = vmatpush3.bf16.msra.mxu0 %v3709_v10  ;;  %3310 = vmatprep.mubr.bf16.mxu0 %v3711_v13  ;;  %v1691_v10 = vld [vmem:[#allocation2 + $0xc0] sm:$0xff] }
 0x1e9   : > { %3340 = vmatprep.subr.bf16.mxu0 %v3710_v15  ;;  %3326 = vmatprep.mubr.bf16.mxu1 %v3725_v16  ;;  %v1711_v13 = vpack.c.bf16 %v1692_v11, %v1691_v10  ;;  %v1695_v16 = vld [vmem:[#allocation2 + $0xe0] sm:$0xff] }
 0x1ea   : > { %3387 = vmatpush3.bf16.msra.mxu1 %v3731_v24  ;;  %v3738_v24 = vld [vmem:[%s4578_s6 + $0x38] sm:$0xff]  }
 0x1eb   : > { %3388 = vmatprep.subr.bf16.mxu1 %v3732_v25 }
 0x1ec   : > { %3341 = vmatpush3.bf16.msra.mxu0 %v3710_v15  ;;  %v1694_v15 = vld [vmem:[#allocation2 + $0xd8] sm:$0xff] }
 0x1ed   : > { %3342 = vmatprep.subr.bf16.mxu0 %v3713_v17 }
 0x1ee   : > { %3389 = vmatpush3.bf16.msra.mxu1 %v3732_v25 }
 0x1ef   : > { %3311 = vmatmul.mubr.bf16.gmra.mrb[4].mxu0 %v3712_v18  ;;  %3327 = vmatmul.mubr.bf16.gmra.mrb[4].mxu1 %v3726_v19  ;;  %v1712_v18 = vpack.c.bf16 %v1694_v15, %v1693_v14 }
 0x1f0   : > { %3343 = vmatpush3.bf16.msra.mxu0 %v3713_v17  ;;  %3314 = vmatprep.mubr.bf16.mxu0 %v3715_v20  ;;  %v1696_v17 = vld [vmem:[#allocation2 + $0xe8] sm:$0xff]  ;;  %v1697_v20 = vld [vmem:[#allocation2 + $0xf0] sm:$0xff] }
 0x1f1   : > { %3344 = vmatprep.subr.bf16.mxu0 %v3714_v21  ;;  %3330 = vmatprep.mubr.bf16.mxu1 %v3727_v22  ;;  %v1713_v19 = vpack.c.bf16 %v1696_v17, %v1695_v16 }
 0x1f2   : > { %3390 = vmatprep.subr.bf16.mxu1 %v3733_v31 }
 0x1f3   : > { %3391 = vmatpush3.bf16.msra.mxu1 %v3733_v31 }
 0x1f4   : > { %3345 = vmatpush3.bf16.msra.mxu0 %v3714_v21  ;;  %3392 = vmatprep.subr.bf16.mxu1 %v3734_v39  ;;  %v1698_v21 = vld [vmem:[#allocation2 + $0xf8] sm:$0xff] }
 0x1f5   : > { %3346 = vmatprep.subr.bf16.mxu0 %v3717_v23  ;;  %v1714_v22 = vpack.c.bf16 %v1698_v21, %v1697_v20 }
 0x1f7   : > { %3315 = vmatmul.mubr.bf16.gmra.mrb[8].mxu0 %v3716_v26  ;;  %3331 = vmatmul.mubr.bf16.gmra.mrb[8].mxu1 %v3728_v28 }
 0x1f8   : > { %3347 = vmatpush3.bf16.msra.mxu0 %v3717_v23  ;;  %3318 = vmatprep.mubr.bf16.mxu0 %v3719_v29  ;;  %v3737_v23 = vld [vmem:[%s4578_s6 + $0x30] sm:$0xff]  }
 0x1f9   : > { %3348 = vmatprep.subr.bf16.mxu0 %v3718_v27  ;;  %3334 = vmatprep.mubr.bf16.mxu1 %v3729_v30 }
 0x1fa   : > { %3393 = vmatpush3.bf16.msra.mxu1 %v3734_v39 }
 0x1fb   : > { %3394 = vmatprep.subr.bf16.mxu1 %v3735_v40 }
 0x1fc   : > { %3349 = vmatpush3.bf16.msra.mxu0 %v3718_v27 }
 0x1fd   : > { %3350 = vmatprep.subr.bf16.mxu0 %v3721_v32 }
 0x1fe   : > { %3395 = vmatpush3.bf16.msra.mxu1 %v3735_v40 }
 0x1ff   : > { %3319 = vmatmul.mubr.bf16.gmra.mrb[12].mxu0 %v3720_v35  ;;  %3335 = vmatmul.mubr.bf16.gmra.mrb[12].mxu1 %v3730_v36 }
 0x200   : > { %3351 = vmatpush3.bf16.msra.mxu0 %v3721_v32  ;;  %3354 = vmatprep.mubr.bf16.mxu0 %v1699_v37 }
 0x201   : > { %3352 = vmatprep.subr.bf16.mxu0 %v3722_v38  ;;  %3396 = vmatprep.subr.bf16.mxu1 %v3736_v46 }
 0x202   : > { %3397 = vmatpush3.bf16.msra.mxu1 %v3736_v46 }
 0x203   : > { %3398 = vmatprep.subr.bf16.mxu1 %v3737_v23 }
 0x204   : > { %3353 = vmatpush3.bf16.msra.mxu0 %v3722_v38 }
 0x206   : > { %3399 = vmatpush3.bf16.msra.mxu1 %v3737_v23 }
 0x207   : > { %3355 = vmatmul.mubr.bf16.vlgmr.msra.gmra.mrb[0].mxu0 %v1700_v45  ;;  %3400 = vmatprep.subr.bf16.mxu1 %v3738_v24 }
 0x208   : > { %3358 = vmatprep.mubr.bf16.mxu0 %v1701_v47 }
 0x20a   : > { %3401 = vmatpush3.bf16.msra.mxu1 %v3738_v24 }
 0x20f   : > { %3359 = vmatmul.mubr.bf16.gmra.mrb[4].mxu0 %v1702_v52 }
 0x210   : > { %3362 = vmatprep.mubr.bf16.mxu0 %v1703_v53 }
 0x217   : > { %3363 = vmatmul.mubr.bf16.gmra.mrb[8].mxu0 %v1704_v58 }
 0x218   : > { %3366 = vmatprep.mubr.bf16.mxu0 %v1705_v59 }
 0x21f   : > { %3367 = vmatmul.mubr.bf16.gmra.mrb[12].mxu0 %v1706_v0 }
 0x220   : > { %3370 = vmatprep.mubr.bf16.mxu0 %v1707_v1 }
 0x227   : > { %3371 = vmatmul.mubr.bf16.gmra.mrb[16].mxu0 %v1708_v6 }
 0x228   : > { %3374 = vmatprep.mubr.bf16.mxu0 %v1709_v7 }
 0x22f   : > { %3375 = vmatmul.mubr.bf16.gmra.mrb[20].mxu0 %v1710_v12 }
 0x230   : > { %3378 = vmatprep.mubr.bf16.mxu0 %v1711_v13 }
 0x237   : > { %3379 = vmatmul.mubr.bf16.gmra.mrb[24].mxu0 %v1712_v18 }
 0x238   : > { %3382 = vmatprep.mubr.bf16.mxu0 %v1713_v19 }
 0x23f   : > { %3383 = vmatmul.mubr.bf16.gmra.mrb[28].mxu0 %v1714_v22 }
 0x2ba   : > { %v4356_v25 = vpop.f32.mrb[0].mxu1 }
 0x2bb   : > { %v4358_v26 = vpop.f32.mrb[1].mxu1 }
 0x2bc   : > { %v4360_v27 = vpop.f32.mrb[2].mxu1 }
 0x2bd   : > { %v4362_v28 = vpop.f32.mrb[3].mxu1 }
 0x2c2   : > { %v4364_v29 = vpop.f32.mrb[4].mxu1 }
 0x2c3   : > { %v4366_v30 = vpop.f32.mrb[5].mxu1 }
 0x2c4   : > { %v4368_v31 = vpop.f32.mrb[6].mxu1 }
 0x2c5   : > { %v4370_v32 = vpop.f32.mrb[7].mxu1 }
 0x2ca   : > { %v4372_v33 = vpop.f32.mrb[8].mxu1 }
 0x2cb   : > { %v4374_v34 = vpop.f32.mrb[9].mxu1 }
 0x2cc   : > { %v4376_v35 = vpop.f32.mrb[10].mxu1 }
 0x2cd   : > { %v4378_v36 = vpop.f32.mrb[11].mxu1 }
 0x2d2   : > { %v4380_v37 = vpop.f32.mrb[12].mxu1 }
 0x2d3   : > { %v4382_v38 = vpop.f32.mrb[13].mxu1 }
 0x2d4   : > { %v4384_v39 = vpop.f32.mrb[14].mxu1 }
 0x2d5   : > { %v4386_v40 = vpop.f32.mrb[15].mxu1 }
 0x2da   : > { %v3356_v41 = vpop.f32.mrb[0].mxu0 }
 0x2db   : > { %v2166_v43 = vpop.f32.mrb[1].mxu0  ;;  %v2302_v45 = vadd.f32 %v3356_v41, %v4391_v42 }
 0x2dc   : > { %v3357_v44 = vpop.f32.mrb[2].mxu0  ;;  %v2300_v48 = vadd.f32 %v4391_v42, %v2166_v43 }
 0x2dd   : > { %v2303_v46 = vadd.f32 %v3357_v44, %v4391_v42  ;;  %v2169_v47 = vpop.f32.mrb[3].mxu0 }
 0x2de   : > { %v2301_v49 = vadd.f32 %v4391_v42, %v2169_v47 }
 0x2df   : > { %v2333_v50 = vpack.c.bf16 %v2303_v46, %v2302_v45 }
 0x2e0   : > { %v2332_v51 = vpack.c.bf16 %v2301_v49, %v2300_v48 }
 0x2e2   : > { %v3360_v52 = vpop.f32.mrb[4].mxu0  ;;  %3402 = vmatprep.mubr.bf16.mxu1 %v2332_v51 }
 0x2e3   : > { %v2182_v53 = vpop.f32.mrb[5].mxu0  ;;  %3403 = vmatmul.mubr.bf16.vlgmr.msra.gmra.mrb[16].mxu1 %v2333_v50  ;;  %v2306_v55 = vadd.f32 %v3360_v52, %v4391_v42 }
 0x2e4   : > { %v3361_v54 = vpop.f32.mrb[6].mxu0  ;;  %v2304_v58 = vadd.f32 %v4391_v42, %v2182_v53 }
 0x2e5   : > { %v2307_v56 = vadd.f32 %v3361_v54, %v4391_v42  ;;  %v2185_v57 = vpop.f32.mrb[7].mxu0 }
 0x2e6   : > { %v2305_v59 = vadd.f32 %v4391_v42, %v2185_v57 }
 0x2e7   : > { %v2335_v60 = vpack.c.bf16 %v2307_v56, %v2306_v55 }
 0x2e8   : > { %v2334_v61 = vpack.c.bf16 %v2305_v59, %v2304_v58 }
 0x2ea   : > { %v3364_v62 = vpop.f32.mrb[8].mxu0  ;;  %3406 = vmatprep.mubr.bf16.mxu1 %v2334_v61 }
 0x2eb   : > { %v2198_v63 = vpop.f32.mrb[9].mxu0  ;;  %3407 = vmatmul.mubr.bf16.gmra.mrb[20].mxu1 %v2335_v60  ;;  %v2310_v1 = vadd.f32 %v3364_v62, %v4391_v42 }
 0x2ec   : > { %v3365_v0 = vpop.f32.mrb[10].mxu0  ;;  %v2308_v4 = vadd.f32 %v4391_v42, %v2198_v63 }
 0x2ed   : > { %v2311_v2 = vadd.f32 %v3365_v0, %v4391_v42  ;;  %v2201_v3 = vpop.f32.mrb[11].mxu0 }
 0x2ee   : > { %v2309_v5 = vadd.f32 %v4391_v42, %v2201_v3 }
 0x2ef   : > { %v2337_v6 = vpack.c.bf16 %v2311_v2, %v2310_v1 }
 0x2f0   : > { %v2336_v7 = vpack.c.bf16 %v2309_v5, %v2308_v4 }
 0x2f2   : > { %v3368_v8 = vpop.f32.mrb[12].mxu0  ;;  %3410 = vmatprep.mubr.bf16.mxu1 %v2336_v7 }
 0x2f3   : > { %v2214_v9 = vpop.f32.mrb[13].mxu0  ;;  %3411 = vmatmul.mubr.bf16.gmra.mrb[24].mxu1 %v2337_v6  ;;  %v2314_v11 = vadd.f32 %v3368_v8, %v4391_v42 }
 0x2f4   : > { %v3369_v10 = vpop.f32.mrb[14].mxu0  ;;  %v2312_v14 = vadd.f32 %v4391_v42, %v2214_v9 }
 0x2f5   : > { %v2315_v12 = vadd.f32 %v3369_v10, %v4391_v42  ;;  %v2217_v13 = vpop.f32.mrb[15].mxu0 }
 0x2f6   : > { %v2313_v15 = vadd.f32 %v4391_v42, %v2217_v13 }
 0x2f7   : > { %v2339_v16 = vpack.c.bf16 %v2315_v12, %v2314_v11 }
 0x2f8   : > { %v2338_v17 = vpack.c.bf16 %v2313_v15, %v2312_v14 }
 0x2fa   : > { %v3372_v18 = vpop.f32.mrb[16].mxu0  ;;  %3414 = vmatprep.mubr.bf16.mxu1 %v2338_v17 }
 0x2fb   : > { %v2239_v19 = vadd.f32 %v3372_v18, %v4356_v25  ;;  %v2230_v20 = vpop.f32.mrb[17].mxu0  ;;  %3415 = vmatmul.mubr.bf16.gmra.mrb[28].mxu1 %v2339_v16 }
 0x2fc   : > { %v2231_v21 = vadd.f32 %v2230_v20, %v4358_v26  ;;  %v3373_v22 = vpop.f32.mrb[18].mxu0 }
 0x2fd   : > { %v2242_v23 = vadd.f32 %v3373_v22, %v4360_v27  ;;  %v2233_v24 = vpop.f32.mrb[19].mxu0  ;;  %v2318_v43 = vadd.f32 %v4391_v42, %v2239_v19 }
 0x2fe   : > { %v2234_v41 = vadd.f32 %v2233_v24, %v4362_v28  ;;  %v2316_v45 = vadd.f32 %v4391_v42, %v2231_v21 }
 0x2ff   : > { %v2319_v44 = vadd.f32 %v4391_v42, %v2242_v23 }
 0x300   : > { %v2317_v46 = vadd.f32 %v4391_v42, %v2234_v41 }
 0x301   : > { %v2341_v47 = vpack.c.bf16 %v2319_v44, %v2318_v43 }
 0x302   : > { %v3376_v25 = vpop.f32.mrb[20].mxu0  ;;  %v2340_v48 = vpack.c.bf16 %v2317_v46, %v2316_v45 }
 0x303   : > { %v2255_v49 = vadd.f32 %v3376_v25, %v4364_v29  ;;  %v2246_v26 = vpop.f32.mrb[21].mxu0 }
 0x304   : > { %v2247_v50 = vadd.f32 %v2246_v26, %v4366_v30  ;;  %3418 = vmatprep.mubr.bf16.mxu1 %v2340_v48  ;;  %v3377_v27 = vpop.f32.mrb[22].mxu0 }
 0x305   : > { %v2322_v28 = vadd.f32 %v4391_v42, %v2255_v49  ;;  %v2258_v51 = vadd.f32 %v3377_v27, %v4368_v31  ;;  %3419 = vmatmul.mubr.bf16.gmra.mrb[32].mxu1 %v2341_v47  ;;  %v2249_v52 = vpop.f32.mrb[23].mxu0 }
 0x306   : > { %v2320_v53 = vadd.f32 %v4391_v42, %v2247_v50  ;;  %v2250_v54 = vadd.f32 %v2249_v52, %v4370_v32 }
 0x307   : > { %v2323_v55 = vadd.f32 %v4391_v42, %v2258_v51 }
 0x308   : > { %v2321_v56 = vadd.f32 %v4391_v42, %v2250_v54 }
 0x309   : > { %v2343_v29 = vpack.c.bf16 %v2323_v55, %v2322_v28 }
 0x30a   : > { %v2342_v57 = vpack.c.bf16 %v2321_v56, %v2320_v53  ;;  %v3380_v58 = vpop.f32.mrb[24].mxu0 }
 0x30b   : > { %v2271_v30 = vadd.f32 %v3380_v58, %v4372_v33  ;;  %v2262_v59 = vpop.f32.mrb[25].mxu0 }
 0x30c   : > { %3422 = vmatprep.mubr.bf16.mxu1 %v2342_v57  ;;  %v2263_v60 = vadd.f32 %v2262_v59, %v4374_v34  ;;  %v3381_v31 = vpop.f32.mrb[26].mxu0 }
 0x30d   : > { %3423 = vmatmul.mubr.bf16.gmra.mrb[36].mxu1 %v2343_v29  ;;  %v2326_v61 = vadd.f32 %v4391_v42, %v2271_v30  ;;  %v2274_v62 = vadd.f32 %v3381_v31, %v4376_v35  ;;  %v2265_v32 = vpop.f32.mrb[27].mxu0 }
 0x30e   : > { %v2324_v63 = vadd.f32 %v4391_v42, %v2263_v60  ;;  %v2266_v0 = vadd.f32 %v2265_v32, %v4378_v36 }
 0x30f   : > { %v2327_v1 = vadd.f32 %v4391_v42, %v2274_v62 }
 0x310   : > { %v2325_v2 = vadd.f32 %v4391_v42, %v2266_v0 }
 0x311   : > { %v2345_v33 = vpack.c.bf16 %v2327_v1, %v2326_v61 }
 0x312   : > { %v2344_v3 = vpack.c.bf16 %v2325_v2, %v2324_v63  ;;  %v3384_v4 = vpop.f32.mrb[28].mxu0 }
 0x313   : > { %v2287_v34 = vadd.f32 %v3384_v4, %v4380_v37  ;;  %v2278_v5 = vpop.f32.mrb[29].mxu0 }
 0x314   : > { %3426 = vmatprep.mubr.bf16.mxu1 %v2344_v3  ;;  %v2279_v6 = vadd.f32 %v2278_v5, %v4382_v38  ;;  %v3385_v7 = vpop.f32.mrb[30].mxu0  ;;  %v4444_v38 = vld [vmem:[%s4580_s8] sm:$0x1] }
 0x315   : > { %3427 = vmatmul.mubr.bf16.gmra.mrb[40].mxu1 %v2345_v33  ;;  %v2330_v35 = vadd.f32 %v4391_v42, %v2287_v34  ;;  %v2290_v8 = vadd.f32 %v3385_v7, %v4384_v39  ;;  %v2281_v36 = vpop.f32.mrb[31].mxu0  ;;  %v4450_v39 = vld [vmem:[%s4579_s7] ss:$0 sm:$0xff] }
 0x316   : > { %v2328_v9 = vadd.f32 %v4391_v42, %v2279_v6  ;;  %v2282_v10 = vadd.f32 %v2281_v36, %v4386_v40 }
 0x317   : > { %v2331_v11 = vadd.f32 %v4391_v42, %v2290_v8 }
 0x318   : > { %v2329_v12 = vadd.f32 %v4391_v42, %v2282_v10 }
 0x319   : > { %v2347_v37 = vpack.c.bf16 %v2331_v11, %v2330_v35 }
 0x31a   : > { %v2346_v13 = vpack.c.bf16 %v2329_v12, %v2328_v9 }
 0x31c   : > { %3430 = vmatprep.mubr.bf16.mxu1 %v2346_v13 }
 0x31d   : > { %3431 = vmatmul.mubr.bf16.gmra.mrb[44].mxu1 %v2347_v37 }
 0x31e   : > { %3288 = vmatprep.mubr.bf16.mxu1 %v4444_v38 }
 0x3b6   : > { %v3404_v40 = vpop.f32.mrb[16].mxu1 }
 0x3b7   : > { %v2462_v14 = vadd.f32 %v3404_v40, %v4450_v39  ;;  %v2453_v42 = vpop.f32.mrb[17].mxu1 }
 0x3b8   : > { %v2454_v15 = vadd.f32 %v4450_v39, %v2453_v42  ;;  %v3405_v16 = vpop.f32.mrb[18].mxu1 }
 0x3b9   : > { %v2465_v17 = vadd.f32 %v3405_v16, %v4450_v39  ;;  %v2456_v18 = vpop.f32.mrb[19].mxu1  ;;  %v2582_v20 = vmax.f32 %v2462_v14, 0.0 }
 0x3ba   : > { %v2457_v19 = vadd.f32 %v4450_v39, %v2456_v18  ;;  %v2580_v22 = vmax.f32 %v2454_v15, 0.0 }
 0x3bb   : > { %v2583_v21 = vmax.f32 %v2465_v17, 0.0 }
 0x3bc   : > { %v2581_v23 = vmax.f32 %v2457_v19, 0.0 }
 0x3bd   : > { %v4456_v24 = vpack.c.bf16 %v2583_v21, %v2582_v20 }
 0x3be   : > { %v4458_v41 = vpack.c.bf16 %v2581_v23, %v2580_v22  ;;  %v3408_v43 = vpop.f32.mrb[20].mxu1 }
 0x3bf   : > { %v2478_v44 = vadd.f32 %v3408_v43, %v4450_v39  ;;  %v2469_v45 = vpop.f32.mrb[21].mxu1 }
 0x3c0   : > { %v2470_v46 = vadd.f32 %v4450_v39, %v2469_v45  ;;  %v3409_v47 = vpop.f32.mrb[22].mxu1 }
 0x3c1   : > { %v2481_v25 = vadd.f32 %v3409_v47, %v4450_v39  ;;  %v2472_v48 = vpop.f32.mrb[23].mxu1  ;;  %v2586_v26 = vmax.f32 %v2478_v44, 0.0 }
 0x3c2   : > { %v2473_v49 = vadd.f32 %v4450_v39, %v2472_v48  ;;  %v2584_v27 = vmax.f32 %v2470_v46, 0.0 }
 0x3c3   : > { %v2587_v50 = vmax.f32 %v2481_v25, 0.0 }
 0x3c4   : > { %v2585_v28 = vmax.f32 %v2473_v49, 0.0 }
 0x3c5   : > { %v4464_v51 = vpack.c.bf16 %v2587_v50, %v2586_v26 }
 0x3c6   : > { %v4466_v52 = vpack.c.bf16 %v2585_v28, %v2584_v27  ;;  %v3412_v53 = vpop.f32.mrb[24].mxu1 }
 0x3c7   : > { %v2494_v54 = vadd.f32 %v3412_v53, %v4450_v39  ;;  %v2485_v55 = vpop.f32.mrb[25].mxu1 }
 0x3c8   : > { %v2486_v56 = vadd.f32 %v4450_v39, %v2485_v55  ;;  %v3413_v29 = vpop.f32.mrb[26].mxu1 }
 0x3c9   : > { %v2497_v57 = vadd.f32 %v3413_v29, %v4450_v39  ;;  %v2488_v58 = vpop.f32.mrb[27].mxu1  ;;  %v2590_v59 = vmax.f32 %v2494_v54, 0.0 }
 0x3ca   : > { %v2489_v30 = vadd.f32 %v4450_v39, %v2488_v58  ;;  %v2588_v31 = vmax.f32 %v2486_v56, 0.0 }
 0x3cb   : > { %v2591_v60 = vmax.f32 %v2497_v57, 0.0 }
 0x3cc   : > { %v2589_v61 = vmax.f32 %v2489_v30, 0.0 }
 0x3cd   : > { %v4472_v62 = vpack.c.bf16 %v2591_v60, %v2590_v59 }
 0x3ce   : > { %v4474_v32 = vpack.c.bf16 %v2589_v61, %v2588_v31  ;;  %v3416_v63 = vpop.f32.mrb[28].mxu1 }
 0x3cf   : > { %v2510_v0 = vadd.f32 %v3416_v63, %v4450_v39  ;;  %v2501_v1 = vpop.f32.mrb[29].mxu1 }
 0x3d0   : > { %v2502_v2 = vadd.f32 %v4450_v39, %v2501_v1  ;;  %v3417_v33 = vpop.f32.mrb[30].mxu1 }
 0x3d1   : > { %v2513_v3 = vadd.f32 %v3417_v33, %v4450_v39  ;;  %v2504_v4 = vpop.f32.mrb[31].mxu1  ;;  %v2594_v5 = vmax.f32 %v2510_v0, 0.0 }
 0x3d2   : > { %v2505_v34 = vadd.f32 %v4450_v39, %v2504_v4  ;;  %v2592_v7 = vmax.f32 %v2502_v2, 0.0 }
 0x3d3   : > { %v2595_v6 = vmax.f32 %v2513_v3, 0.0 }
 0x3d4   : > { %v2593_v35 = vmax.f32 %v2505_v34, 0.0 }
 0x3d5   : > { %v4480_v8 = vpack.c.bf16 %v2595_v6, %v2594_v5 }
 0x3d6   : > { %v4482_v36 = vpack.c.bf16 %v2593_v35, %v2592_v7 }
 0x3d8   : > { %v3420_v9 = vpop.f32.mrb[32].mxu1 }
 0x3d9   : > { %v2526_v10 = vadd.f32 %v3420_v9, %v4450_v39  ;;  %v2517_v11 = vpop.f32.mrb[33].mxu1  ;;  %v2678_v9 = vlaneseq }
 0x3da   : > { %v2518_v12 = vadd.f32 %v4450_v39, %v2517_v11  ;;  %v3421_v37 = vpop.f32.mrb[34].mxu1 }
 0x3db   : > { %v2529_v13 = vadd.f32 %v3421_v37, %v4450_v39  ;;  %v2520_v40 = vpop.f32.mrb[35].mxu1  ;;  %v2598_v42 = vmax.f32 %v2526_v10, 0.0  ;;  %v2679_v11 = vshrl.u32 %v2678_v9, 7  ;;  %vm2692_vm0 = vcmp.lt.s32.totalorder %v2678_v9, 256 }
 0x3dc   : > { %v2521_v14 = vadd.f32 %v4450_v39, %v2520_v40  ;;  %v2596_v16 = vmax.f32 %v2518_v12, 0.0 }
 0x3dd   : > { %v2599_v15 = vmax.f32 %v2529_v13, 0.0 }
 0x3de   : > { %v2597_v17 = vmax.f32 %v2521_v14, 0.0 }
 0x3df   : > { %v2622_v18 = vpack.c.bf16 %v2599_v15, %v2598_v42 }
 0x3e0   : > { %v2621_v19 = vpack.c.bf16 %v2597_v17, %v2596_v16  ;;  %v3424_v20 = vpop.f32.mrb[36].mxu1 }
 0x3e1   : > { %v2542_v21 = vadd.f32 %v3424_v20, %v4450_v39  ;;  %v2533_v22 = vpop.f32.mrb[37].mxu1 }
 0x3e2   : > { %v2534_v23 = vadd.f32 %v4450_v39, %v2533_v22  ;;  %3272 = vmatprep.subr.bf16.mxu1 %v2621_v19  ;;  %v3425_v43 = vpop.f32.mrb[38].mxu1 }
 0x3e3   : > { %v2602_v44 = vmax.f32 %v2542_v21, 0.0  ;;  %v2545_v45 = vadd.f32 %v3425_v43, %v4450_v39  ;;  %3273 = vmatpush3.bf16.xpose.msra.mxu1 %v4458_v41  ;;  %v2536_v46 = vpop.f32.mrb[39].mxu1 }
 0x3e4   : > { %v2600_v47 = vmax.f32 %v2534_v23, 0.0  ;;  %v2537_v25 = vadd.f32 %v4450_v39, %v2536_v46  ;;  %3274 = vmatprep.subr.bf16.mxu1 %v2622_v18 }
 0x3e5   : > { %v2603_v48 = vmax.f32 %v2545_v45, 0.0 }
 0x3e6   : > { %v2601_v49 = vmax.f32 %v2537_v25, 0.0 }
 0x3e7   : > { %v2624_v26 = vpack.c.bf16 %v2603_v48, %v2602_v44 }
 0x3e8   : > { %v2623_v50 = vpack.c.bf16 %v2601_v49, %v2600_v47  ;;  %v3428_v27 = vpop.f32.mrb[40].mxu1 }
 0x3e9   : > { %v2558_v28 = vadd.f32 %v3428_v27, %v4450_v39  ;;  %v2549_v53 = vpop.f32.mrb[41].mxu1 }
 0x3ea   : > { %v2550_v54 = vadd.f32 %v4450_v39, %v2549_v53  ;;  %v3429_v55 = vpop.f32.mrb[42].mxu1 }
 0x3eb   : > { %3275 = vmatpush3.bf16.xpose.msra.mxu1 %v4456_v24  ;;  %v2606_v56 = vmax.f32 %v2558_v28, 0.0  ;;  %v2561_v41 = vadd.f32 %v3429_v55, %v4450_v39  ;;  %v2552_v29 = vpop.f32.mrb[43].mxu1 }
 0x3ec   : > { %3276 = vmatprep.subr.bf16.mxu1 %v2623_v50  ;;  %v2604_v57 = vmax.f32 %v2550_v54, 0.0  ;;  %v2553_v58 = vadd.f32 %v4450_v39, %v2552_v29 }
 0x3ed   : > { %v2607_v30 = vmax.f32 %v2561_v41, 0.0 }
 0x3ee   : > { %v2605_v59 = vmax.f32 %v2553_v58, 0.0 }
 0x3ef   : > { %v2626_v60 = vpack.c.bf16 %v2607_v30, %v2606_v56 }
 0x3f0   : > { %v2625_v31 = vpack.c.bf16 %v2605_v59, %v2604_v57  ;;  %v3432_v61 = vpop.f32.mrb[44].mxu1 }
 0x3f1   : > { %v2574_v63 = vadd.f32 %v3432_v61, %v4450_v39  ;;  %v2565_v0 = vpop.f32.mrb[45].mxu1 }
 0x3f2   : > { %v2566_v1 = vadd.f32 %v4450_v39, %v2565_v0  ;;  %v3433_v2 = vpop.f32.mrb[46].mxu1 }
 0x3f3   : > { %3277 = vmatpush3.bf16.xpose.msra.mxu1 %v4466_v52  ;;  %v2610_v24 = vmax.f32 %v2574_v63, 0.0  ;;  %v2577_v33 = vadd.f32 %v3433_v2, %v4450_v39  ;;  %v2568_v3 = vpop.f32.mrb[47].mxu1 }
 0x3f4   : > { %3278 = vmatprep.subr.bf16.mxu1 %v2624_v26  ;;  %v2608_v4 = vmax.f32 %v2566_v1, 0.0  ;;  %v2569_v34 = vadd.f32 %v4450_v39, %v2568_v3  ;;  %v3852_v39 = vmov 1966171168  }
 0x3f5   : > { %v2611_v5 = vmax.f32 %v2577_v33, 0.0  ;;  %v2676_v52 = vunpack.c.l.s4 %v3852_v39 }
 0x3f6   : > { %v2609_v6 = vmax.f32 %v2569_v34, 0.0 }
 0x3f7   : > { %v2628_v7 = vpack.c.bf16 %v2611_v5, %v2610_v24  ;;  %v2677_v10 = vunpack.c.0.s8 %v2676_v52 }
 0x3f8   : > { %v2627_v35 = vpack.c.bf16 %v2609_v6, %v2608_v4 }
 0x3f9   : > { %v2680_v13 = vsub.s32 %v2677_v10, %v2679_v11 }
 0x3fb   : > { %3279 = vmatpush3.bf16.xpose.msra.mxu1 %v4464_v51  ;;  %v2630_v51 = vstv %s2629_s11 }
 0x3fc   : > { %3280 = vmatprep.subr.bf16.mxu1 %v2625_v31 }
 0x403   : > { %3281 = vmatpush3.bf16.xpose.msra.mxu1 %v4474_v32 }
 0x404   : > { %3282 = vmatprep.subr.bf16.mxu1 %v2626_v60 }
 0x40b   : > { %3283 = vmatpush3.bf16.xpose.msra.mxu1 %v4472_v62 }
 0x40c   : > { %3284 = vmatprep.subr.bf16.mxu1 %v2627_v35 }
 0x413   : > { %3285 = vmatpush3.bf16.xpose.msra.mxu1 %v4482_v36 }
 0x414   : > { %3286 = vmatprep.subr.bf16.mxu1 %v2628_v7 }
 0x41b   : > { %3287 = vmatpush3.bf16.xpose.msra.mxu1 %v4480_v8 }
 0x422   : > { %3289 = vmatmul.mubr.bf16.vlgmr.msra.gmra.mrb[48].mxu1 %v4444_v38 }
 0x4f5   : > { %v2665_v32 = vpop.f32.mrb[48].mxu1 }
 0x4f6   : > { %v2666_v12 = vadd.f32 %v2665_v32, %v2630_v51  ;;  %v2667_v37 = vpop.f32.mrb[49].mxu1 }
 0x4f7   : > { %v2668_v62 = vadd.f32 %v2667_v37, %v2630_v51  ;;  %v2669_v40 = vpop.f32.mrb[50].mxu1 }
 0x4f8   : > { %v2670_v36 = vpop.f32.mrb[51].mxu1 }
 0x4f9   : > { %v2674_v14 = vcombine.low %v2666_v12, %v2668_v62 }
 0x4fb   : > { %v2681_v42 = vrot.slane %v2674_v14, %v2680_v13 }
 0x4fd   : > { %v2688_v8 = vrot.slane %v2681_v42, %v2680_v13 }
 0x4ff   : > { %2694 = vst.msk [vmem:[%s553_s22] sm:$0x3] %vm2692_vm0, %v2688_v8 }
 0x500 PF: > { %s4603_s28 = sld [smem:[#allocation15_spill]]  ;;  %s2710_s18 = sshll.u32 %s553_s22, 4  ;;  %s2711_s18 = int_to_ptr.vmem [resolvable:$true] %s2710_s18 }
 0x501   : > { %s4604_s15 = sand.u32 1, %s3817_s16   ;;  %s3739_s0 = scalar_lea.vmem %s2711_s18, 32 }
 0x502   : > { %s2696_s21 = scalar_lea.sflag [#allocation6], %s4604_s15  ;;  %p3740_p8 = scmp.ne.s32.totalorder %s2711_s18, %s3739_s0 }
 0x503   : > { %s3853_s26 = smov [#allocation5]  }
 0x504   : > { %p3741_p9 = pnand %p3740_p8, %p3984_p7  ;;  %s3743_s27 = sshll.u32 %s3853_s26, 4  ;;  %s3744_s27 = int_to_ptr.vmem [resolvable:$false] %s3743_s27 }
 0x505   : > { %s3745_s29 = scalar_lea.vmem %s3744_s27, 64  ;;  %p3746_p11 = scmp.lt.s32.totalorder %s2711_s18, %s3744_s27 }
 0x506   : > { %s4515_s30 = scalar_lea.hbm %s4603_s28, %s4153_s13  ;;  %p3742_p10 = pneg %p3741_p9 }
 0x507   : > { %p3747_p13 = scmp.lt.s32.totalorder %s3745_s29, %s3739_s0 }
 0x509   : > { %p3748_p0 = por %p3747_p13, %p3746_p11 }
 0x50b   : > { %p3749_p1 = pnand %p3748_p0, %p3742_p10 }
 0x50d   : > { %3752 = shalt.err (!%p3749_p1)
}
 0x50e   : > { %s3753_s22 = scalar_lea.hbm %s4515_s30, 32  ;;  %s3757_s14 = scalar_lea.hbm %s4603_s28, 128 }
 0x50f   : > { %p3754_p2 = scmp.ne.s32.totalorder %s4515_s30, %s3753_s22  ;;  %p3758_p5 = scmp.lt.u32.totalorder %s4515_s30, %s4603_s28 }
 0x510   : > { %p3759_p6 = scmp.lt.u32.totalorder %s3757_s14, %s3753_s22  ;;  %p3761_p9 = scmp.lt.u32.totalorder %s3753_s22, %s4515_s30 }
 0x511   : > { %p3755_p3 = pnand %p3754_p2, %p3984_p7 }
 0x512   : > { %p3760_p8 = por %p3759_p6, %p3758_p5 }
 0x513   : > { %p3756_p4 = pneg %p3755_p3 }
 0x514   : > { %p3762_p10 = por %p3761_p9, %p3760_p8 }
 0x516   : > { %p3763_p11 = pnand %p3762_p10, %p3756_p4 }
 0x518   : > { %3766 = shalt.err (!%p3763_p11)
}
 0x519   : > { %3482 = dma.vmem_to_hbm [thread:$0]  (%p3984_p7), %s2711_s18, 32, %s4515_s30, %s2696_s21  }
 0x51a PF: > { %s4605_s20 = sld [smem:[#allocation8_spill]]  ;;  %p3488_p13 = scmp.ge.s32.totalorder %s3849_s9, 2 }
 0x51c   : > { %p3485_p0 = pnand %p3488_p13, %p3992_p12 }
 0x520   : > { %s2722_s0 = sand.u32 1, %s4605_s20  }
 0x521   : > { %s2723_s26 = scalar_lea.sflag [#allocation6], %s2722_s0 }
 0x522   : > { %3808 = dma.done.wait (!%p3485_p0), %s2723_s26, 32  }
 0x523   : > { %3810 = vsyncadd (!%p3485_p0), %s2723_s26, 4294967264  ;;  %s24_s9 = sadd.s32 1, %s3849_s9   ;;  %s4607_s20 = sld [smem:[#allocation9_spill]] }
 0x524   : > { %p21_p1 = scmp.ge.s32.totalorder %s24_s9, 10   ;;  %s4608_s21 = sld [smem:[#allocation10_spill]] }
 0x525   : > { %s4609_s22 = sld [smem:[#allocation11_spill]]  ;;  %s4610_s23 = sld [smem:[#allocation12_spill]] }
 0x526   : > { %s4611_s15 = smov %s3817_s16  ;;  %s4612_s16 = smov %s3821_s17 }
 0x527   : > { %s4613_s17 = smov %s3997_s10  ;;  %s4614_s18 = smov %s3829_s19 }
 0x528   : > { %s4615_s19 = smov %s4000_s24  ;;  %23 = sbr.rel (!%p21_p1) target bundleno = 10 (0xa), region = 137 }
 0x52f   :  { %2728 = vsyncpa [#allocation6], 1 }
 0x530   :  { %2730 = vsyncpa [#allocation6 + $0x1], 1 }

</bundles_post_ra>
